<compile_context>
chip_gen: v7x
topology: tpu7x:2x2x1
jax: 0.10.0
libtpu: 0.0.40
codegen_flags: <defaults>
</compile_context>

<pallas_src>
import functools

import jax
import jax.numpy as jnp
import numpy as np
from jax.experimental import pallas as pl
from jax.experimental.pallas import tpu as pltpu


def _lstm2_kernel(x_ref, wih0_ref, whh0_ref, b0_ref, w1s_ref, b1_ref,
                  out_ref, xproj_ref, h0_ref, c0_ref, h1_ref, c1_ref,
                  *, chunk_t, batch, d_model):
    TC, B, D = chunk_t, batch, d_model
    cdt = wih0_ref.dtype          # MXU input dtype (bf16 fast / f32 exact)

    def sigmoid(z):               # 1 EUP push (tanh) instead of exp + recip
        return 0.5 * jnp.tanh(0.5 * z) + 0.5

    def gate_update(gates, c_prev):
        # PyTorch gate order [i, f, g, o]; D multiple of 128 keeps slices
        # lane-aligned.
        i = sigmoid(gates[:, 0:D])
        f = sigmoid(gates[:, D:2 * D])
        g = jnp.tanh(gates[:, 2 * D:3 * D])
        o = sigmoid(gates[:, 3 * D:4 * D])
        c_new = f * c_prev + i * g
        h_new = o * jnp.tanh(c_new)
        return h_new, c_new

    # -------- init carried state on the first chunk --------
    @pl.when(pl.program_id(0) == 0)
    def _():
        zeros = jnp.zeros((B, D), jnp.float32)
        h0_ref[...] = zeros
        c0_ref[...] = zeros
        h1_ref[...] = zeros
        c1_ref[...] = zeros

    # -------- hoisted layer-0 input projection: one chunk-wide GEMM --------
    xproj_ref[...] = jnp.dot(x_ref[...], wih0_ref[...],
                             preferred_element_type=jnp.float32) + b0_ref[...]

    whh0 = whh0_ref[...]
    w1s = w1s_ref[...]
    b1 = b1_ref[...]

    h0 = h0_ref[...]
    c0 = c0_ref[...]
    h1 = h1_ref[...]
    c1 = c1_ref[...]

    # -------- prologue: layer-0 step 0 of this chunk --------
    g0 = xproj_ref[pl.ds(0, B), :] + jnp.dot(
        h0.astype(cdt), whh0, preferred_element_type=jnp.float32)
    h0, c0 = gate_update(g0, c0)

    # -------- wavefront: iteration i = layer-0 step i + layer-1 step i-1 ----
    def wave(i, carry):
        h0, c0, h1, c1 = carry
        h0c = h0.astype(cdt)                 # shared by both layers this iter

        row0 = pl.multiple_of(i * B, B)
        g0 = xproj_ref[pl.ds(row0, B), :] + jnp.dot(
            h0c, whh0, preferred_element_type=jnp.float32)

        h01 = jnp.concatenate([h0c, h1.astype(cdt)], axis=1)      # (B, 2D)
        g1 = jnp.dot(h01, w1s, preferred_element_type=jnp.float32) + b1

        h0n, c0n = gate_update(g0, c0)
        h1n, c1n = gate_update(g1, c1)

        row1 = pl.multiple_of((i - 1) * B, B)
        out_ref[pl.ds(row1, B), :] = h1n.astype(out_ref.dtype)
        return h0n, c0n, h1n, c1n

    unroll = True if TC <= 8 else 4
    h0, c0, h1, c1 = jax.lax.fori_loop(1, TC, wave, (h0, c0, h1, c1),
                                       unroll=unroll)

    # -------- epilogue: layer-1 step TC-1 (catch up before chunk ends) -----
    h01 = jnp.concatenate([h0.astype(cdt), h1.astype(cdt)], axis=1)
    g1 = jnp.dot(h01, w1s, preferred_element_type=jnp.float32) + b1
    h1, c1 = gate_update(g1, c1)
    out_ref[pl.ds(pl.multiple_of((TC - 1) * B, B), B), :] = h1.astype(out_ref.dtype)

    # -------- store carried state for the next chunk --------
    h0_ref[...] = h0
    c0_ref[...] = c0
    h1_ref[...] = h1
    c1_ref[...] = c1


def _nbytes(shape, dtype):
    return int(np.prod(shape)) * jnp.dtype(dtype).itemsize


def _auto_chunk_t(T, B, D, cdt_bytes, out_bytes,
                  budget_bytes=40 << 20, max_chunk_t=64):
    """Largest divisor of T (<= max_chunk_t) whose chunk footprint fits."""
    best = 1
    for c in range(1, min(T, max_chunk_t) + 1):
        if T % c:
            continue
        rows = c * B
        fp = (rows * 4 * D * 4                 # xproj scratch (f32)
              + 2 * rows * D * cdt_bytes       # x chunk, double-buffered
              + 2 * rows * D * out_bytes)      # out chunk, double-buffered
        if fp <= budget_bytes:
            best = c
    return best


def lstm_decoder_forward(latent, params, compute_dtype=jnp.bfloat16,
                         out_dtype=None, chunk_t=None):
    """latent: (B, T, D) batch_first, like the PyTorch module."""
    B, T, D = latent.shape
    cdt = compute_dtype
    out_dtype = latent.dtype if out_dtype is None else out_dtype

    if chunk_t is None:
        chunk_t = _auto_chunk_t(T, B, D, jnp.dtype(cdt).itemsize,
                                jnp.dtype(out_dtype).itemsize)
    assert T % chunk_t == 0, "chunk_t must divide T"
    rows = chunk_t * B
    n_chunks = T // chunk_t

    # Time-major, pre-flattened (T*B, D): no reshapes / relayouts in-kernel.
    x_flat = jnp.transpose(latent, (1, 0, 2)).reshape(T * B, D).astype(cdt)

    wih0 = params["weight_ih_l0"].T.astype(cdt)                  # (D, 4D)
    whh0 = params["weight_hh_l0"].T.astype(cdt)                  # (D, 4D)
    b0 = (params["bias_ih_l0"] + params["bias_hh_l0"]
          ).reshape(1, 4 * D).astype(jnp.float32)
    # Stacked layer-1 weights: concat(h0_t, h1_{t-1}) @ [W_ih1; W_hh1].
    w1s = jnp.concatenate(
        [params["weight_ih_l1"].T, params["weight_hh_l1"].T],
        axis=0).astype(cdt)                                      # (2D, 4D)
    b1 = (params["bias_ih_l1"] + params["bias_hh_l1"]
          ).reshape(1, 4 * D).astype(jnp.float32)

    # Resident-footprint-derived scoped-VMEM limit (with headroom).
    resident = (
        2 * _nbytes((rows, D), cdt)            # x chunk (double-buffered)
        + 2 * _nbytes((rows, D), out_dtype)    # out chunk (double-buffered)
        + 2 * (_nbytes((D, 4 * D), cdt) + _nbytes((D, 4 * D), cdt)
               + _nbytes((2 * D, 4 * D), cdt))
        + 4 * _nbytes((1, 4 * D), jnp.float32)
        + _nbytes((rows, 4 * D), jnp.float32)  # xproj scratch
        + 4 * _nbytes((B, D), jnp.float32)     # carried (h, c) state
    )
    vmem_limit = int(min(max(resident * 3 // 2 + (2 << 20), 32 << 20),
                         128 << 20))

    kernel = functools.partial(_lstm2_kernel, chunk_t=chunk_t, batch=B,
                               d_model=D)

    out_flat = pl.pallas_call(
        kernel,
        out_shape=jax.ShapeDtypeStruct((T * B, D), out_dtype),
        grid_spec=pltpu.PrefetchScalarGridSpec(
            num_scalar_prefetch=0,
            grid=(n_chunks,),
            in_specs=[
                pl.BlockSpec((rows, D), lambda c: (c, 0)),          # x chunk
                pl.BlockSpec((D, 4 * D), lambda c: (0, 0)),         # W_ih l0
                pl.BlockSpec((D, 4 * D), lambda c: (0, 0)),         # W_hh l0
                pl.BlockSpec((1, 4 * D), lambda c: (0, 0)),         # b l0
                pl.BlockSpec((2 * D, 4 * D), lambda c: (0, 0)),     # W l1 stk
                pl.BlockSpec((1, 4 * D), lambda c: (0, 0)),         # b l1
            ],
            out_specs=pl.BlockSpec((rows, D), lambda c: (c, 0)),
            scratch_shapes=[
                pltpu.VMEM((rows, 4 * D), jnp.float32),   # hoisted l0 gates
                pltpu.VMEM((B, D), jnp.float32),          # h0 carry
                pltpu.VMEM((B, D), jnp.float32),          # c0 carry
                pltpu.VMEM((B, D), jnp.float32),          # h1 carry
                pltpu.VMEM((B, D), jnp.float32),          # c1 carry
            ],
        ),
        compiler_params=pltpu.CompilerParams(
            dimension_semantics=("arbitrary",),
            vmem_limit_bytes=vmem_limit,
        ),
    )(x_flat, wih0, whh0, b0, w1s, b1)

    return jnp.transpose(out_flat.reshape(T, B, D), (1, 0, 2))   # (B, T, D)


def init_lstm_params(key, d_model):
    """PyTorch nn.LSTM init: U(-k, k) with k = 1/sqrt(hidden_size)."""
    k = 1.0 / np.sqrt(d_model)
    names_shapes = [
        ("weight_ih_l0", (4 * d_model, d_model)),
        ("weight_hh_l0", (4 * d_model, d_model)),
        ("bias_ih_l0", (4 * d_model,)),
        ("bias_hh_l0", (4 * d_model,)),
        ("weight_ih_l1", (4 * d_model, d_model)),
        ("weight_hh_l1", (4 * d_model, d_model)),
        ("bias_ih_l1", (4 * d_model,)),
        ("bias_hh_l1", (4 * d_model,)),
    ]
    params = {}
    keys = jax.random.split(key, len(names_shapes))
    for sub, (name, shape) in zip(keys, names_shapes):
        params[name] = jax.random.uniform(
            sub, shape, minval=-k, maxval=k, dtype=jnp.float32)
    return params


def lstm_decoder_ref(latent, params):
    """Pure-JAX f32 reference (lax.scan) for correctness checking."""
    B, T, D = latent.shape

    def layer(x_tm, wih, whh, bih, bhh):
        wih_t, whh_t = wih.T, whh.T
        b = bih + bhh

        def step(carry, x_t):
            h, c = carry
            gates = x_t @ wih_t + h @ whh_t + b
            i = jax.nn.sigmoid(gates[:, 0:D])
            f = jax.nn.sigmoid(gates[:, D:2 * D])
            g = jnp.tanh(gates[:, 2 * D:3 * D])
            o = jax.nn.sigmoid(gates[:, 3 * D:4 * D])
            c_new = f * c + i * g
            h_new = o * jnp.tanh(c_new)
            return (h_new, c_new), h_new

        init = (jnp.zeros((B, D), jnp.float32), jnp.zeros((B, D), jnp.float32))
        _, h_seq = jax.lax.scan(step, init, x_tm)
        return h_seq

    x_tm = jnp.transpose(latent, (1, 0, 2))
    h1 = layer(x_tm, params["weight_ih_l0"], params["weight_hh_l0"],
               params["bias_ih_l0"], params["bias_hh_l0"])
    h2 = layer(h1, params["weight_ih_l1"], params["weight_hh_l1"],
               params["bias_ih_l1"], params["bias_hh_l1"])
    return jnp.transpose(h2, (1, 0, 2))


if __name__ == "__main__":
    D_MODEL = 128   # small stand-in for default d_model=256 (multiple of 128)
    B, T = 8, 8

    key = jax.random.PRNGKey(0)
    k_param, k_in = jax.random.split(key)
    params = init_lstm_params(k_param, D_MODEL)
    latent = jax.random.normal(k_in, (B, T, D_MODEL), dtype=jnp.float32)

    ref = jax.block_until_ready(lstm_decoder_ref(latent, params))

    # Exact-precision path (f32 MXU inputs), multi-chunk grid (exercises the
    # cross-chunk (h, c) carry).
    out_f32 = jax.block_until_ready(
        lstm_decoder_forward(latent, params, compute_dtype=jnp.float32,
                             chunk_t=4))
    assert out_f32.shape == (B, T, D_MODEL)
    assert np.allclose(np.asarray(out_f32), np.asarray(ref),
                       atol=1e-4, rtol=1e-4)

    # Fast path (bf16 MXU inputs, f32 accumulation/state), auto chunking.
    out_bf16 = jax.block_until_ready(lstm_decoder_forward(latent, params))
    assert out_bf16.shape == (B, T, D_MODEL)
    assert np.allclose(np.asarray(out_bf16), np.asarray(ref),
                       atol=5e-2, rtol=5e-2)

    print("KERNEL_OK")
</pallas_src>

<mosaic_0001>
module attributes {stable_mosaic.version = 11 : i64} {
  func.func @_lstm2_kernel(%arg0: i32, %arg1: memref<32x128xf32, #tpu.memory_space<vmem>>, %arg2: memref<128x512xf32, #tpu.memory_space<vmem>>, %arg3: memref<128x512xf32, #tpu.memory_space<vmem>>, %arg4: memref<1x512xf32, #tpu.memory_space<vmem>>, %arg5: memref<256x512xf32, #tpu.memory_space<vmem>>, %arg6: memref<1x512xf32, #tpu.memory_space<vmem>>, %arg7: memref<32x128xf32, #tpu.memory_space<vmem>>, %arg8: memref<32x512xf32, #tpu.memory_space<vmem>>, %arg9: memref<8x128xf32, #tpu.memory_space<vmem>>, %arg10: memref<8x128xf32, #tpu.memory_space<vmem>>, %arg11: memref<8x128xf32, #tpu.memory_space<vmem>>, %arg12: memref<8x128xf32, #tpu.memory_space<vmem>>) attributes {dimension_semantics = [#tpu.dimension_semantics<arbitrary>], iteration_bounds = array<i64: 2>, scalar_prefetch = 0 : i64, scratch_operands = 5 : i64, tpu.core_type = #tpu.core_type<tc>, window_params = [{transform_indices = @transform_0, window_bounds = array<i64: 32, 128>}, {pipeline_mode = #tpu.pipeline_mode<synchronous>, transform_indices = @transform_1, window_bounds = array<i64: 128, 512>}, {pipeline_mode = #tpu.pipeline_mode<synchronous>, transform_indices = @transform_2, window_bounds = array<i64: 128, 512>}, {pipeline_mode = #tpu.pipeline_mode<synchronous>, transform_indices = @transform_3, window_bounds = array<i64: 1, 512>}, {pipeline_mode = #tpu.pipeline_mode<synchronous>, transform_indices = @transform_4, window_bounds = array<i64: 256, 512>}, {pipeline_mode = #tpu.pipeline_mode<synchronous>, transform_indices = @transform_5, window_bounds = array<i64: 1, 512>}, {transform_indices = @transform_6, window_bounds = array<i64: 32, 128>}]} {
    %c0_i32 = arith.constant 0 : i32
    %0 = arith.cmpi eq, %arg0, %c0_i32 : i32
    %1 = arith.extui %0 : i1 to i32
    %c0_i32_0 = arith.constant 0 : i32
    %2 = arith.cmpi ne, %1, %c0_i32_0 : i32
    scf.if %2 {
      %cst_128 = arith.constant 0.000000e+00 : f32
      %324 = vector.broadcast %cst_128 : f32 to vector<8x128xf32>
      %c0_129 = arith.constant 0 : index
      %c0_130 = arith.constant 0 : index
      %325 = vector.load %arg9[%c0_129, %c0_130] : memref<8x128xf32, #tpu.memory_space<vmem>>, vector<8x128xf32>
      tpu.vector_store %arg9[%c0_129, %c0_130], %324 {strides = array<i32>} : memref<8x128xf32, #tpu.memory_space<vmem>>, vector<8x128xf32>,
      %c0_131 = arith.constant 0 : index
      %c0_132 = arith.constant 0 : index
      %326 = vector.load %arg10[%c0_131, %c0_132] : memref<8x128xf32, #tpu.memory_space<vmem>>, vector<8x128xf32>
      tpu.vector_store %arg10[%c0_131, %c0_132], %324 {strides = array<i32>} : memref<8x128xf32, #tpu.memory_space<vmem>>, vector<8x128xf32>,
      %c0_133 = arith.constant 0 : index
      %c0_134 = arith.constant 0 : index
      %327 = vector.load %arg11[%c0_133, %c0_134] : memref<8x128xf32, #tpu.memory_space<vmem>>, vector<8x128xf32>
      tpu.vector_store %arg11[%c0_133, %c0_134], %324 {strides = array<i32>} : memref<8x128xf32, #tpu.memory_space<vmem>>, vector<8x128xf32>,
      %c0_135 = arith.constant 0 : index
      %c0_136 = arith.constant 0 : index
      %328 = vector.load %arg12[%c0_135, %c0_136] : memref<8x128xf32, #tpu.memory_space<vmem>>, vector<8x128xf32>
      tpu.vector_store %arg12[%c0_135, %c0_136], %324 {strides = array<i32>} : memref<8x128xf32, #tpu.memory_space<vmem>>, vector<8x128xf32>,
    } else {
    }
    %c0 = arith.constant 0 : index
    %c0_1 = arith.constant 0 : index
    %3 = vector.load %arg1[%c0, %c0_1] : memref<32x128xf32, #tpu.memory_space<vmem>>, vector<32x128xf32>
    %c0_2 = arith.constant 0 : index
    %c0_3 = arith.constant 0 : index
    %4 = vector.load %arg2[%c0_2, %c0_3] : memref<128x512xf32, #tpu.memory_space<vmem>>, vector<128x512xf32>
    %cst = arith.constant dense<0.000000e+00> : vector<32x512xf32>
    %5 = tpu.matmul %3, %4, %cst {dimension_numbers = #tpu.dot_dimension_numbers<[1], [0], [0], [1], [0, 0, 1, 1], [], []>} : vector<32x128xf32>, vector<128x512xf32>, vector<32x512xf32> -> vector<32x512xf32>
    %c0_4 = arith.constant 0 : index
    %c0_5 = arith.constant 0 : index
    %6 = vector.load %arg4[%c0_4, %c0_5] : memref<1x512xf32, #tpu.memory_space<vmem>>, vector<1x512xf32>
    %7 = vector.broadcast %6 : vector<1x512xf32> to vector<32x512xf32>
    %8 = arith.addf %5, %7 : vector<32x512xf32>
    %c0_6 = arith.constant 0 : index
    %c0_7 = arith.constant 0 : index
    %9 = vector.load %arg8[%c0_6, %c0_7] : memref<32x512xf32, #tpu.memory_space<vmem>>, vector<32x512xf32>
    tpu.vector_store %arg8[%c0_6, %c0_7], %8 {strides = array<i32>} : memref<32x512xf32, #tpu.memory_space<vmem>>, vector<32x512xf32>,
    %c0_8 = arith.constant 0 : index
    %c0_9 = arith.constant 0 : index
    %10 = vector.load %arg3[%c0_8, %c0_9] : memref<128x512xf32, #tpu.memory_space<vmem>>, vector<128x512xf32>
    %c0_10 = arith.constant 0 : index
    %c0_11 = arith.constant 0 : index
    %11 = vector.load %arg5[%c0_10, %c0_11] : memref<256x512xf32, #tpu.memory_space<vmem>>, vector<256x512xf32>
    %c0_12 = arith.constant 0 : index
    %c0_13 = arith.constant 0 : index
    %12 = vector.load %arg6[%c0_12, %c0_13] : memref<1x512xf32, #tpu.memory_space<vmem>>, vector<1x512xf32>
    %c0_14 = arith.constant 0 : index
    %c0_15 = arith.constant 0 : index
    %13 = vector.load %arg9[%c0_14, %c0_15] : memref<8x128xf32, #tpu.memory_space<vmem>>, vector<8x128xf32>
    %c0_16 = arith.constant 0 : index
    %c0_17 = arith.constant 0 : index
    %14 = vector.load %arg10[%c0_16, %c0_17] : memref<8x128xf32, #tpu.memory_space<vmem>>, vector<8x128xf32>
    %c0_18 = arith.constant 0 : index
    %c0_19 = arith.constant 0 : index
    %15 = vector.load %arg11[%c0_18, %c0_19] : memref<8x128xf32, #tpu.memory_space<vmem>>, vector<8x128xf32>
    %c0_20 = arith.constant 0 : index
    %c0_21 = arith.constant 0 : index
    %16 = vector.load %arg12[%c0_20, %c0_21] : memref<8x128xf32, #tpu.memory_space<vmem>>, vector<8x128xf32>
    %c0_22 = arith.constant 0 : index
    %c0_23 = arith.constant 0 : index
    %17 = vector.load %arg8[%c0_22, %c0_23] : memref<32x512xf32, #tpu.memory_space<vmem>>, vector<8x512xf32>
    %cst_24 = arith.constant dense<0.000000e+00> : vector<8x512xf32>
    %18 = tpu.matmul %13, %10, %cst_24 {dimension_numbers = #tpu.dot_dimension_numbers<[1], [0], [0], [1], [0, 0, 1, 1], [], []>} : vector<8x128xf32>, vector<128x512xf32>, vector<8x512xf32> -> vector<8x512xf32>
    %19 = arith.addf %17, %18 : vector<8x512xf32>
    %20 = vector.extract_strided_slice %19 {offsets = [0, 0], sizes = [8, 128], strides = [1, 1]} : vector<8x512xf32> to vector<8x128xf32>
    %cst_25 = arith.constant 5.000000e-01 : f32
    %21 = vector.broadcast %cst_25 : f32 to vector<8x128xf32>
    %22 = arith.mulf %21, %20 : vector<8x128xf32>
    %23 = math.tanh %22 : vector<8x128xf32>
    %cst_26 = arith.constant 5.000000e-01 : f32
    %24 = vector.broadcast %cst_26 : f32 to vector<8x128xf32>
    %25 = arith.mulf %24, %23 : vector<8x128xf32>
    %cst_27 = arith.constant 5.000000e-01 : f32
    %26 = vector.broadcast %cst_27 : f32 to vector<8x128xf32>
    %27 = arith.addf %25, %26 : vector<8x128xf32>
    %28 = vector.extract_strided_slice %19 {offsets = [0, 128], sizes = [8, 128], strides = [1, 1]} : vector<8x512xf32> to vector<8x128xf32>
    %cst_28 = arith.constant 5.000000e-01 : f32
    %29 = vector.broadcast %cst_28 : f32 to vector<8x128xf32>
    %30 = arith.mulf %29, %28 : vector<8x128xf32>
    %31 = math.tanh %30 : vector<8x128xf32>
    %cst_29 = arith.constant 5.000000e-01 : f32
    %32 = vector.broadcast %cst_29 : f32 to vector<8x128xf32>
    %33 = arith.mulf %32, %31 : vector<8x128xf32>
    %cst_30 = arith.constant 5.000000e-01 : f32
    %34 = vector.broadcast %cst_30 : f32 to vector<8x128xf32>
    %35 = arith.addf %33, %34 : vector<8x128xf32>
    %36 = vector.extract_strided_slice %19 {offsets = [0, 256], sizes = [8, 128], strides = [1, 1]} : vector<8x512xf32> to vector<8x128xf32>
    %37 = math.tanh %36 : vector<8x128xf32>
    %38 = vector.extract_strided_slice %19 {offsets = [0, 384], sizes = [8, 128], strides = [1, 1]} : vector<8x512xf32> to vector<8x128xf32>
    %cst_31 = arith.constant 5.000000e-01 : f32
    %39 = vector.broadcast %cst_31 : f32 to vector<8x128xf32>
    %40 = arith.mulf %39, %38 : vector<8x128xf32>
    %41 = math.tanh %40 : vector<8x128xf32>
    %cst_32 = arith.constant 5.000000e-01 : f32
    %42 = vector.broadcast %cst_32 : f32 to vector<8x128xf32>
    %43 = arith.mulf %42, %41 : vector<8x128xf32>
    %cst_33 = arith.constant 5.000000e-01 : f32
    %44 = vector.broadcast %cst_33 : f32 to vector<8x128xf32>
    %45 = arith.addf %43, %44 : vector<8x128xf32>
    %46 = arith.mulf %35, %14 : vector<8x128xf32>
    %47 = arith.mulf %27, %37 : vector<8x128xf32>
    %48 = arith.addf %46, %47 : vector<8x128xf32>
    %49 = math.tanh %48 : vector<8x128xf32>
    %50 = arith.mulf %45, %49 : vector<8x128xf32>
    %c1_i32 = arith.constant 1 : i32
    %c8_i32 = arith.constant 8 : i32
    %51 = arith.muli %c1_i32, %c8_i32 : i32
    %52 = tpu.assume_multiple %51, 8 : i32
    %53 = arith.index_cast %52 : i32 to index
    %c0_34 = arith.constant 0 : index
    %54 = vector.load %arg8[%53, %c0_34] : memref<32x512xf32, #tpu.memory_space<vmem>>, vector<8x512xf32>
    %cst_35 = arith.constant dense<0.000000e+00> : vector<8x512xf32>
    %55 = tpu.matmul %50, %10, %cst_35 {dimension_numbers = #tpu.dot_dimension_numbers<[1], [0], [0], [1], [0, 0, 1, 1], [], []>} : vector<8x128xf32>, vector<128x512xf32>, vector<8x512xf32> -> vector<8x512xf32>
    %56 = arith.addf %54, %55 : vector<8x512xf32>
    %57 = tpu.concatenate %50, %15 in 1 : vector<8x128xf32>, vector<8x128xf32> -> vector<8x256xf32>
    %cst_36 = arith.constant dense<0.000000e+00> : vector<8x512xf32>
    %58 = tpu.matmul %57, %11, %cst_36 {dimension_numbers = #tpu.dot_dimension_numbers<[1], [0], [0], [1], [0, 0, 1, 1], [], []>} : vector<8x256xf32>, vector<256x512xf32>, vector<8x512xf32> -> vector<8x512xf32>
    %59 = vector.broadcast %12 : vector<1x512xf32> to vector<8x512xf32>
    %60 = arith.addf %58, %59 : vector<8x512xf32>
    %61 = vector.extract_strided_slice %56 {offsets = [0, 0], sizes = [8, 128], strides = [1, 1]} : vector<8x512xf32> to vector<8x128xf32>
    %cst_37 = arith.constant 5.000000e-01 : f32
    %62 = vector.broadcast %cst_37 : f32 to vector<8x128xf32>
    %63 = arith.mulf %62, %61 : vector<8x128xf32>
    %64 = math.tanh %63 : vector<8x128xf32>
    %cst_38 = arith.constant 5.000000e-01 : f32
    %65 = vector.broadcast %cst_38 : f32 to vector<8x128xf32>
    %66 = arith.mulf %65, %64 : vector<8x128xf32>
    %cst_39 = arith.constant 5.000000e-01 : f32
    %67 = vector.broadcast %cst_39 : f32 to vector<8x128xf32>
    %68 = arith.addf %66, %67 : vector<8x128xf32>
    %69 = vector.extract_strided_slice %56 {offsets = [0, 128], sizes = [8, 128], strides = [1, 1]} : vector<8x512xf32> to vector<8x128xf32>
    %cst_40 = arith.constant 5.000000e-01 : f32
    %70 = vector.broadcast %cst_40 : f32 to vector<8x128xf32>
    %71 = arith.mulf %70, %69 : vector<8x128xf32>
    %72 = math.tanh %71 : vector<8x128xf32>
    %cst_41 = arith.constant 5.000000e-01 : f32
    %73 = vector.broadcast %cst_41 : f32 to vector<8x128xf32>
    %74 = arith.mulf %73, %72 : vector<8x128xf32>
    %cst_42 = arith.constant 5.000000e-01 : f32
    %75 = vector.broadcast %cst_42 : f32 to vector<8x128xf32>
    %76 = arith.addf %74, %75 : vector<8x128xf32>
    %77 = vector.extract_strided_slice %56 {offsets = [0, 256], sizes = [8, 128], strides = [1, 1]} : vector<8x512xf32> to vector<8x128xf32>
    %78 = math.tanh %77 : vector<8x128xf32>
    %79 = vector.extract_strided_slice %56 {offsets = [0, 384], sizes = [8, 128], strides = [1, 1]} : vector<8x512xf32> to vector<8x128xf32>
    %cst_43 = arith.constant 5.000000e-01 : f32
    %80 = vector.broadcast %cst_43 : f32 to vector<8x128xf32>
    %81 = arith.mulf %80, %79 : vector<8x128xf32>
    %82 = math.tanh %81 : vector<8x128xf32>
    %cst_44 = arith.constant 5.000000e-01 : f32
    %83 = vector.broadcast %cst_44 : f32 to vector<8x128xf32>
    %84 = arith.mulf %83, %82 : vector<8x128xf32>
    %cst_45 = arith.constant 5.000000e-01 : f32
    %85 = vector.broadcast %cst_45 : f32 to vector<8x128xf32>
    %86 = arith.addf %84, %85 : vector<8x128xf32>
    %87 = arith.mulf %76, %48 : vector<8x128xf32>
    %88 = arith.mulf %68, %78 : vector<8x128xf32>
    %89 = arith.addf %87, %88 : vector<8x128xf32>
    %90 = math.tanh %89 : vector<8x128xf32>
    %91 = arith.mulf %86, %90 : vector<8x128xf32>
    %92 = vector.extract_strided_slice %60 {offsets = [0, 0], sizes = [8, 128], strides = [1, 1]} : vector<8x512xf32> to vector<8x128xf32>
    %cst_46 = arith.constant 5.000000e-01 : f32
    %93 = vector.broadcast %cst_46 : f32 to vector<8x128xf32>
    %94 = arith.mulf %93, %92 : vector<8x128xf32>
    %95 = math.tanh %94 : vector<8x128xf32>
    %cst_47 = arith.constant 5.000000e-01 : f32
    %96 = vector.broadcast %cst_47 : f32 to vector<8x128xf32>
    %97 = arith.mulf %96, %95 : vector<8x128xf32>
    %cst_48 = arith.constant 5.000000e-01 : f32
    %98 = vector.broadcast %cst_48 : f32 to vector<8x128xf32>
    %99 = arith.addf %97, %98 : vector<8x128xf32>
    %100 = vector.extract_strided_slice %60 {offsets = [0, 128], sizes = [8, 128], strides = [1, 1]} : vector<8x512xf32> to vector<8x128xf32>
    %cst_49 = arith.constant 5.000000e-01 : f32
    %101 = vector.broadcast %cst_49 : f32 to vector<8x128xf32>
    %102 = arith.mulf %101, %100 : vector<8x128xf32>
    %103 = math.tanh %102 : vector<8x128xf32>
    %cst_50 = arith.constant 5.000000e-01 : f32
    %104 = vector.broadcast %cst_50 : f32 to vector<8x128xf32>
    %105 = arith.mulf %104, %103 : vector<8x128xf32>
    %cst_51 = arith.constant 5.000000e-01 : f32
    %106 = vector.broadcast %cst_51 : f32 to vector<8x128xf32>
    %107 = arith.addf %105, %106 : vector<8x128xf32>
    %108 = vector.extract_strided_slice %60 {offsets = [0, 256], sizes = [8, 128], strides = [1, 1]} : vector<8x512xf32> to vector<8x128xf32>
    %109 = math.tanh %108 : vector<8x128xf32>
    %110 = vector.extract_strided_slice %60 {offsets = [0, 384], sizes = [8, 128], strides = [1, 1]} : vector<8x512xf32> to vector<8x128xf32>
    %cst_52 = arith.constant 5.000000e-01 : f32
    %111 = vector.broadcast %cst_52 : f32 to vector<8x128xf32>
    %112 = arith.mulf %111, %110 : vector<8x128xf32>
    %113 = math.tanh %112 : vector<8x128xf32>
    %cst_53 = arith.constant 5.000000e-01 : f32
    %114 = vector.broadcast %cst_53 : f32 to vector<8x128xf32>
    %115 = arith.mulf %114, %113 : vector<8x128xf32>
    %cst_54 = arith.constant 5.000000e-01 : f32
    %116 = vector.broadcast %cst_54 : f32 to vector<8x128xf32>
    %117 = arith.addf %115, %116 : vector<8x128xf32>
    %118 = arith.mulf %107, %16 : vector<8x128xf32>
    %119 = arith.mulf %99, %109 : vector<8x128xf32>
    %120 = arith.addf %118, %119 : vector<8x128xf32>
    %121 = math.tanh %120 : vector<8x128xf32>
    %122 = arith.mulf %117, %121 : vector<8x128xf32>
    %c1_i32_55 = arith.constant 1 : i32
    %123 = arith.subi %c1_i32, %c1_i32_55 : i32
    %c8_i32_56 = arith.constant 8 : i32
    %124 = arith.muli %123, %c8_i32_56 : i32
    %125 = tpu.assume_multiple %124, 8 : i32
    %126 = arith.index_cast %125 : i32 to index
    %c0_57 = arith.constant 0 : index
    %127 = vector.load %arg7[%126, %c0_57] : memref<32x128xf32, #tpu.memory_space<vmem>>, vector<8x128xf32>
    tpu.vector_store %arg7[%126, %c0_57], %122 {strides = array<i32>} : memref<32x128xf32, #tpu.memory_space<vmem>>, vector<8x128xf32>,
    %c2_i32 = arith.constant 2 : i32
    %c8_i32_58 = arith.constant 8 : i32
    %128 = arith.muli %c2_i32, %c8_i32_58 : i32
    %129 = tpu.assume_multiple %128, 8 : i32
    %130 = arith.index_cast %129 : i32 to index
    %c0_59 = arith.constant 0 : index
    %131 = vector.load %arg8[%130, %c0_59] : memref<32x512xf32, #tpu.memory_space<vmem>>, vector<8x512xf32>
    %cst_60 = arith.constant dense<0.000000e+00> : vector<8x512xf32>
    %132 = tpu.matmul %91, %10, %cst_60 {dimension_numbers = #tpu.dot_dimension_numbers<[1], [0], [0], [1], [0, 0, 1, 1], [], []>} : vector<8x128xf32>, vector<128x512xf32>, vector<8x512xf32> -> vector<8x512xf32>
    %133 = arith.addf %131, %132 : vector<8x512xf32>
    %134 = tpu.concatenate %91, %122 in 1 : vector<8x128xf32>, vector<8x128xf32> -> vector<8x256xf32>
    %cst_61 = arith.constant dense<0.000000e+00> : vector<8x512xf32>
    %135 = tpu.matmul %134, %11, %cst_61 {dimension_numbers = #tpu.dot_dimension_numbers<[1], [0], [0], [1], [0, 0, 1, 1], [], []>} : vector<8x256xf32>, vector<256x512xf32>, vector<8x512xf32> -> vector<8x512xf32>
    %136 = vector.broadcast %12 : vector<1x512xf32> to vector<8x512xf32>
    %137 = arith.addf %135, %136 : vector<8x512xf32>
    %138 = vector.extract_strided_slice %133 {offsets = [0, 0], sizes = [8, 128], strides = [1, 1]} : vector<8x512xf32> to vector<8x128xf32>
    %cst_62 = arith.constant 5.000000e-01 : f32
    %139 = vector.broadcast %cst_62 : f32 to vector<8x128xf32>
    %140 = arith.mulf %139, %138 : vector<8x128xf32>
    %141 = math.tanh %140 : vector<8x128xf32>
    %cst_63 = arith.constant 5.000000e-01 : f32
    %142 = vector.broadcast %cst_63 : f32 to vector<8x128xf32>
    %143 = arith.mulf %142, %141 : vector<8x128xf32>
    %cst_64 = arith.constant 5.000000e-01 : f32
    %144 = vector.broadcast %cst_64 : f32 to vector<8x128xf32>
    %145 = arith.addf %143, %144 : vector<8x128xf32>
    %146 = vector.extract_strided_slice %133 {offsets = [0, 128], sizes = [8, 128], strides = [1, 1]} : vector<8x512xf32> to vector<8x128xf32>
    %cst_65 = arith.constant 5.000000e-01 : f32
    %147 = vector.broadcast %cst_65 : f32 to vector<8x128xf32>
    %148 = arith.mulf %147, %146 : vector<8x128xf32>
    %149 = math.tanh %148 : vector<8x128xf32>
    %cst_66 = arith.constant 5.000000e-01 : f32
    %150 = vector.broadcast %cst_66 : f32 to vector<8x128xf32>
    %151 = arith.mulf %150, %149 : vector<8x128xf32>
    %cst_67 = arith.constant 5.000000e-01 : f32
    %152 = vector.broadcast %cst_67 : f32 to vector<8x128xf32>
    %153 = arith.addf %151, %152 : vector<8x128xf32>
    %154 = vector.extract_strided_slice %133 {offsets = [0, 256], sizes = [8, 128], strides = [1, 1]} : vector<8x512xf32> to vector<8x128xf32>
    %155 = math.tanh %154 : vector<8x128xf32>
    %156 = vector.extract_strided_slice %133 {offsets = [0, 384], sizes = [8, 128], strides = [1, 1]} : vector<8x512xf32> to vector<8x128xf32>
    %cst_68 = arith.constant 5.000000e-01 : f32
    %157 = vector.broadcast %cst_68 : f32 to vector<8x128xf32>
    %158 = arith.mulf %157, %156 : vector<8x128xf32>
    %159 = math.tanh %158 : vector<8x128xf32>
    %cst_69 = arith.constant 5.000000e-01 : f32
    %160 = vector.broadcast %cst_69 : f32 to vector<8x128xf32>
    %161 = arith.mulf %160, %159 : vector<8x128xf32>
    %cst_70 = arith.constant 5.000000e-01 : f32
    %162 = vector.broadcast %cst_70 : f32 to vector<8x128xf32>
    %163 = arith.addf %161, %162 : vector<8x128xf32>
    %164 = arith.mulf %153, %89 : vector<8x128xf32>
    %165 = arith.mulf %145, %155 : vector<8x128xf32>
    %166 = arith.addf %164, %165 : vector<8x128xf32>
    %167 = math.tanh %166 : vector<8x128xf32>
    %168 = arith.mulf %163, %167 : vector<8x128xf32>
    %169 = vector.extract_strided_slice %137 {offsets = [0, 0], sizes = [8, 128], strides = [1, 1]} : vector<8x512xf32> to vector<8x128xf32>
    %cst_71 = arith.constant 5.000000e-01 : f32
    %170 = vector.broadcast %cst_71 : f32 to vector<8x128xf32>
    %171 = arith.mulf %170, %169 : vector<8x128xf32>
    %172 = math.tanh %171 : vector<8x128xf32>
    %cst_72 = arith.constant 5.000000e-01 : f32
    %173 = vector.broadcast %cst_72 : f32 to vector<8x128xf32>
    %174 = arith.mulf %173, %172 : vector<8x128xf32>
    %cst_73 = arith.constant 5.000000e-01 : f32
    %175 = vector.broadcast %cst_73 : f32 to vector<8x128xf32>
    %176 = arith.addf %174, %175 : vector<8x128xf32>
    %177 = vector.extract_strided_slice %137 {offsets = [0, 128], sizes = [8, 128], strides = [1, 1]} : vector<8x512xf32> to vector<8x128xf32>
    %cst_74 = arith.constant 5.000000e-01 : f32
    %178 = vector.broadcast %cst_74 : f32 to vector<8x128xf32>
    %179 = arith.mulf %178, %177 : vector<8x128xf32>
    %180 = math.tanh %179 : vector<8x128xf32>
    %cst_75 = arith.constant 5.000000e-01 : f32
    %181 = vector.broadcast %cst_75 : f32 to vector<8x128xf32>
    %182 = arith.mulf %181, %180 : vector<8x128xf32>
    %cst_76 = arith.constant 5.000000e-01 : f32
    %183 = vector.broadcast %cst_76 : f32 to vector<8x128xf32>
    %184 = arith.addf %182, %183 : vector<8x128xf32>
    %185 = vector.extract_strided_slice %137 {offsets = [0, 256], sizes = [8, 128], strides = [1, 1]} : vector<8x512xf32> to vector<8x128xf32>
    %186 = math.tanh %185 : vector<8x128xf32>
    %187 = vector.extract_strided_slice %137 {offsets = [0, 384], sizes = [8, 128], strides = [1, 1]} : vector<8x512xf32> to vector<8x128xf32>
    %cst_77 = arith.constant 5.000000e-01 : f32
    %188 = vector.broadcast %cst_77 : f32 to vector<8x128xf32>
    %189 = arith.mulf %188, %187 : vector<8x128xf32>
    %190 = math.tanh %189 : vector<8x128xf32>
    %cst_78 = arith.constant 5.000000e-01 : f32
    %191 = vector.broadcast %cst_78 : f32 to vector<8x128xf32>
    %192 = arith.mulf %191, %190 : vector<8x128xf32>
    %cst_79 = arith.constant 5.000000e-01 : f32
    %193 = vector.broadcast %cst_79 : f32 to vector<8x128xf32>
    %194 = arith.addf %192, %193 : vector<8x128xf32>
    %195 = arith.mulf %184, %120 : vector<8x128xf32>
    %196 = arith.mulf %176, %186 : vector<8x128xf32>
    %197 = arith.addf %195, %196 : vector<8x128xf32>
    %198 = math.tanh %197 : vector<8x128xf32>
    %199 = arith.mulf %194, %198 : vector<8x128xf32>
    %c1_i32_80 = arith.constant 1 : i32
    %200 = arith.subi %c2_i32, %c1_i32_80 : i32
    %c8_i32_81 = arith.constant 8 : i32
    %201 = arith.muli %200, %c8_i32_81 : i32
    %202 = tpu.assume_multiple %201, 8 : i32
    %203 = arith.index_cast %202 : i32 to index
    %c0_82 = arith.constant 0 : index
    %204 = vector.load %arg7[%203, %c0_82] : memref<32x128xf32, #tpu.memory_space<vmem>>, vector<8x128xf32>
    tpu.vector_store %arg7[%203, %c0_82], %199 {strides = array<i32>} : memref<32x128xf32, #tpu.memory_space<vmem>>, vector<8x128xf32>,
    %c3_i32 = arith.constant 3 : i32
    %c8_i32_83 = arith.constant 8 : i32
    %205 = arith.muli %c3_i32, %c8_i32_83 : i32
    %206 = tpu.assume_multiple %205, 8 : i32
    %207 = arith.index_cast %206 : i32 to index
    %c0_84 = arith.constant 0 : index
    %208 = vector.load %arg8[%207, %c0_84] : memref<32x512xf32, #tpu.memory_space<vmem>>, vector<8x512xf32>
    %cst_85 = arith.constant dense<0.000000e+00> : vector<8x512xf32>
    %209 = tpu.matmul %168, %10, %cst_85 {dimension_numbers = #tpu.dot_dimension_numbers<[1], [0], [0], [1], [0, 0, 1, 1], [], []>} : vector<8x128xf32>, vector<128x512xf32>, vector<8x512xf32> -> vector<8x512xf32>
    %210 = arith.addf %208, %209 : vector<8x512xf32>
    %211 = tpu.concatenate %168, %199 in 1 : vector<8x128xf32>, vector<8x128xf32> -> vector<8x256xf32>
    %cst_86 = arith.constant dense<0.000000e+00> : vector<8x512xf32>
    %212 = tpu.matmul %211, %11, %cst_86 {dimension_numbers = #tpu.dot_dimension_numbers<[1], [0], [0], [1], [0, 0, 1, 1], [], []>} : vector<8x256xf32>, vector<256x512xf32>, vector<8x512xf32> -> vector<8x512xf32>
    %213 = vector.broadcast %12 : vector<1x512xf32> to vector<8x512xf32>
    %214 = arith.addf %212, %213 : vector<8x512xf32>
    %215 = vector.extract_strided_slice %210 {offsets = [0, 0], sizes = [8, 128], strides = [1, 1]} : vector<8x512xf32> to vector<8x128xf32>
    %cst_87 = arith.constant 5.000000e-01 : f32
    %216 = vector.broadcast %cst_87 : f32 to vector<8x128xf32>
    %217 = arith.mulf %216, %215 : vector<8x128xf32>
    %218 = math.tanh %217 : vector<8x128xf32>
    %cst_88 = arith.constant 5.000000e-01 : f32
    %219 = vector.broadcast %cst_88 : f32 to vector<8x128xf32>
    %220 = arith.mulf %219, %218 : vector<8x128xf32>
    %cst_89 = arith.constant 5.000000e-01 : f32
    %221 = vector.broadcast %cst_89 : f32 to vector<8x128xf32>
    %222 = arith.addf %220, %221 : vector<8x128xf32>
    %223 = vector.extract_strided_slice %210 {offsets = [0, 128], sizes = [8, 128], strides = [1, 1]} : vector<8x512xf32> to vector<8x128xf32>
    %cst_90 = arith.constant 5.000000e-01 : f32
    %224 = vector.broadcast %cst_90 : f32 to vector<8x128xf32>
    %225 = arith.mulf %224, %223 : vector<8x128xf32>
    %226 = math.tanh %225 : vector<8x128xf32>
    %cst_91 = arith.constant 5.000000e-01 : f32
    %227 = vector.broadcast %cst_91 : f32 to vector<8x128xf32>
    %228 = arith.mulf %227, %226 : vector<8x128xf32>
    %cst_92 = arith.constant 5.000000e-01 : f32
    %229 = vector.broadcast %cst_92 : f32 to vector<8x128xf32>
    %230 = arith.addf %228, %229 : vector<8x128xf32>
    %231 = vector.extract_strided_slice %210 {offsets = [0, 256], sizes = [8, 128], strides = [1, 1]} : vector<8x512xf32> to vector<8x128xf32>
    %232 = math.tanh %231 : vector<8x128xf32>
    %233 = vector.extract_strided_slice %210 {offsets = [0, 384], sizes = [8, 128], strides = [1, 1]} : vector<8x512xf32> to vector<8x128xf32>
    %cst_93 = arith.constant 5.000000e-01 : f32
    %234 = vector.broadcast %cst_93 : f32 to vector<8x128xf32>
    %235 = arith.mulf %234, %233 : vector<8x128xf32>
    %236 = math.tanh %235 : vector<8x128xf32>
    %cst_94 = arith.constant 5.000000e-01 : f32
    %237 = vector.broadcast %cst_94 : f32 to vector<8x128xf32>
    %238 = arith.mulf %237, %236 : vector<8x128xf32>
    %cst_95 = arith.constant 5.000000e-01 : f32
    %239 = vector.broadcast %cst_95 : f32 to vector<8x128xf32>
    %240 = arith.addf %238, %239 : vector<8x128xf32>
    %241 = arith.mulf %230, %166 : vector<8x128xf32>
    %242 = arith.mulf %222, %232 : vector<8x128xf32>
    %243 = arith.addf %241, %242 : vector<8x128xf32>
    %244 = math.tanh %243 : vector<8x128xf32>
    %245 = arith.mulf %240, %244 : vector<8x128xf32>
    %246 = vector.extract_strided_slice %214 {offsets = [0, 0], sizes = [8, 128], strides = [1, 1]} : vector<8x512xf32> to vector<8x128xf32>
    %cst_96 = arith.constant 5.000000e-01 : f32
    %247 = vector.broadcast %cst_96 : f32 to vector<8x128xf32>
    %248 = arith.mulf %247, %246 : vector<8x128xf32>
    %249 = math.tanh %248 : vector<8x128xf32>
    %cst_97 = arith.constant 5.000000e-01 : f32
    %250 = vector.broadcast %cst_97 : f32 to vector<8x128xf32>
    %251 = arith.mulf %250, %249 : vector<8x128xf32>
    %cst_98 = arith.constant 5.000000e-01 : f32
    %252 = vector.broadcast %cst_98 : f32 to vector<8x128xf32>
    %253 = arith.addf %251, %252 : vector<8x128xf32>
    %254 = vector.extract_strided_slice %214 {offsets = [0, 128], sizes = [8, 128], strides = [1, 1]} : vector<8x512xf32> to vector<8x128xf32>
    %cst_99 = arith.constant 5.000000e-01 : f32
    %255 = vector.broadcast %cst_99 : f32 to vector<8x128xf32>
    %256 = arith.mulf %255, %254 : vector<8x128xf32>
    %257 = math.tanh %256 : vector<8x128xf32>
    %cst_100 = arith.constant 5.000000e-01 : f32
    %258 = vector.broadcast %cst_100 : f32 to vector<8x128xf32>
    %259 = arith.mulf %258, %257 : vector<8x128xf32>
    %cst_101 = arith.constant 5.000000e-01 : f32
    %260 = vector.broadcast %cst_101 : f32 to vector<8x128xf32>
    %261 = arith.addf %259, %260 : vector<8x128xf32>
    %262 = vector.extract_strided_slice %214 {offsets = [0, 256], sizes = [8, 128], strides = [1, 1]} : vector<8x512xf32> to vector<8x128xf32>
    %263 = math.tanh %262 : vector<8x128xf32>
    %264 = vector.extract_strided_slice %214 {offsets = [0, 384], sizes = [8, 128], strides = [1, 1]} : vector<8x512xf32> to vector<8x128xf32>
    %cst_102 = arith.constant 5.000000e-01 : f32
    %265 = vector.broadcast %cst_102 : f32 to vector<8x128xf32>
    %266 = arith.mulf %265, %264 : vector<8x128xf32>
    %267 = math.tanh %266 : vector<8x128xf32>
    %cst_103 = arith.constant 5.000000e-01 : f32
    %268 = vector.broadcast %cst_103 : f32 to vector<8x128xf32>
    %269 = arith.mulf %268, %267 : vector<8x128xf32>
    %cst_104 = arith.constant 5.000000e-01 : f32
    %270 = vector.broadcast %cst_104 : f32 to vector<8x128xf32>
    %271 = arith.addf %269, %270 : vector<8x128xf32>
    %272 = arith.mulf %261, %197 : vector<8x128xf32>
    %273 = arith.mulf %253, %263 : vector<8x128xf32>
    %274 = arith.addf %272, %273 : vector<8x128xf32>
    %275 = math.tanh %274 : vector<8x128xf32>
    %276 = arith.mulf %271, %275 : vector<8x128xf32>
    %c1_i32_105 = arith.constant 1 : i32
    %277 = arith.subi %c3_i32, %c1_i32_105 : i32
    %c8_i32_106 = arith.constant 8 : i32
    %278 = arith.muli %277, %c8_i32_106 : i32
    %279 = tpu.assume_multiple %278, 8 : i32
    %280 = arith.index_cast %279 : i32 to index
    %c0_107 = arith.constant 0 : index
    %281 = vector.load %arg7[%280, %c0_107] : memref<32x128xf32, #tpu.memory_space<vmem>>, vector<8x128xf32>
    tpu.vector_store %arg7[%280, %c0_107], %276 {strides = array<i32>} : memref<32x128xf32, #tpu.memory_space<vmem>>, vector<8x128xf32>,
    %c3_i32_108 = arith.constant 3 : i32
    %282 = tpu.concatenate %245, %276 in 1 : vector<8x128xf32>, vector<8x128xf32> -> vector<8x256xf32>
    %cst_109 = arith.constant dense<0.000000e+00> : vector<8x512xf32>
    %283 = tpu.matmul %282, %11, %cst_109 {dimension_numbers = #tpu.dot_dimension_numbers<[1], [0], [0], [1], [0, 0, 1, 1], [], []>} : vector<8x256xf32>, vector<256x512xf32>, vector<8x512xf32> -> vector<8x512xf32>
    %284 = vector.broadcast %12 : vector<1x512xf32> to vector<8x512xf32>
    %285 = arith.addf %283, %284 : vector<8x512xf32>
    %286 = vector.extract_strided_slice %285 {offsets = [0, 0], sizes = [8, 128], strides = [1, 1]} : vector<8x512xf32> to vector<8x128xf32>
    %cst_110 = arith.constant 5.000000e-01 : f32
    %287 = vector.broadcast %cst_110 : f32 to vector<8x128xf32>
    %288 = arith.mulf %287, %286 : vector<8x128xf32>
    %289 = math.tanh %288 : vector<8x128xf32>
    %cst_111 = arith.constant 5.000000e-01 : f32
    %290 = vector.broadcast %cst_111 : f32 to vector<8x128xf32>
    %291 = arith.mulf %290, %289 : vector<8x128xf32>
    %cst_112 = arith.constant 5.000000e-01 : f32
    %292 = vector.broadcast %cst_112 : f32 to vector<8x128xf32>
    %293 = arith.addf %291, %292 : vector<8x128xf32>
    %294 = vector.extract_strided_slice %285 {offsets = [0, 128], sizes = [8, 128], strides = [1, 1]} : vector<8x512xf32> to vector<8x128xf32>
    %cst_113 = arith.constant 5.000000e-01 : f32
    %295 = vector.broadcast %cst_113 : f32 to vector<8x128xf32>
    %296 = arith.mulf %295, %294 : vector<8x128xf32>
    %297 = math.tanh %296 : vector<8x128xf32>
    %cst_114 = arith.constant 5.000000e-01 : f32
    %298 = vector.broadcast %cst_114 : f32 to vector<8x128xf32>
    %299 = arith.mulf %298, %297 : vector<8x128xf32>
    %cst_115 = arith.constant 5.000000e-01 : f32
    %300 = vector.broadcast %cst_115 : f32 to vector<8x128xf32>
    %301 = arith.addf %299, %300 : vector<8x128xf32>
    %302 = vector.extract_strided_slice %285 {offsets = [0, 256], sizes = [8, 128], strides = [1, 1]} : vector<8x512xf32> to vector<8x128xf32>
    %303 = math.tanh %302 : vector<8x128xf32>
    %304 = vector.extract_strided_slice %285 {offsets = [0, 384], sizes = [8, 128], strides = [1, 1]} : vector<8x512xf32> to vector<8x128xf32>
    %cst_116 = arith.constant 5.000000e-01 : f32
    %305 = vector.broadcast %cst_116 : f32 to vector<8x128xf32>
    %306 = arith.mulf %305, %304 : vector<8x128xf32>
    %307 = math.tanh %306 : vector<8x128xf32>
    %cst_117 = arith.constant 5.000000e-01 : f32
    %308 = vector.broadcast %cst_117 : f32 to vector<8x128xf32>
    %309 = arith.mulf %308, %307 : vector<8x128xf32>
    %cst_118 = arith.constant 5.000000e-01 : f32
    %310 = vector.broadcast %cst_118 : f32 to vector<8x128xf32>
    %311 = arith.addf %309, %310 : vector<8x128xf32>
    %312 = arith.mulf %301, %274 : vector<8x128xf32>
    %313 = arith.mulf %293, %303 : vector<8x128xf32>
    %314 = arith.addf %312, %313 : vector<8x128xf32>
    %315 = math.tanh %314 : vector<8x128xf32>
    %316 = arith.mulf %311, %315 : vector<8x128xf32>
    %c24_i32 = arith.constant 24 : i32
    %317 = tpu.assume_multiple %c24_i32, 8 : i32
    %318 = arith.index_cast %317 : i32 to index
    %c0_119 = arith.constant 0 : index
    %319 = vector.load %arg7[%318, %c0_119] : memref<32x128xf32, #tpu.memory_space<vmem>>, vector<8x128xf32>
    tpu.vector_store %arg7[%318, %c0_119], %316 {strides = array<i32>} : memref<32x128xf32, #tpu.memory_space<vmem>>, vector<8x128xf32>,
    %c0_120 = arith.constant 0 : index
    %c0_121 = arith.constant 0 : index
    %320 = vector.load %arg9[%c0_120, %c0_121] : memref<8x128xf32, #tpu.memory_space<vmem>>, vector<8x128xf32>
    tpu.vector_store %arg9[%c0_120, %c0_121], %245 {strides = array<i32>} : memref<8x128xf32, #tpu.memory_space<vmem>>, vector<8x128xf32>,
    %c0_122 = arith.constant 0 : index
    %c0_123 = arith.constant 0 : index
    %321 = vector.load %arg10[%c0_122, %c0_123] : memref<8x128xf32, #tpu.memory_space<vmem>>, vector<8x128xf32>
    tpu.vector_store %arg10[%c0_122, %c0_123], %243 {strides = array<i32>} : memref<8x128xf32, #tpu.memory_space<vmem>>, vector<8x128xf32>,
    %c0_124 = arith.constant 0 : index
    %c0_125 = arith.constant 0 : index
    %322 = vector.load %arg11[%c0_124, %c0_125] : memref<8x128xf32, #tpu.memory_space<vmem>>, vector<8x128xf32>
    tpu.vector_store %arg11[%c0_124, %c0_125], %316 {strides = array<i32>} : memref<8x128xf32, #tpu.memory_space<vmem>>, vector<8x128xf32>,
    %c0_126 = arith.constant 0 : index
    %c0_127 = arith.constant 0 : index
    %323 = vector.load %arg12[%c0_126, %c0_127] : memref<8x128xf32, #tpu.memory_space<vmem>>, vector<8x128xf32>
    tpu.vector_store %arg12[%c0_126, %c0_127], %314 {strides = array<i32>} : memref<8x128xf32, #tpu.memory_space<vmem>>, vector<8x128xf32>,
    return
  }
  func.func @transform_0(%arg0: i32) -> (i32, i32) {
    %c0_i32 = arith.constant 0 : i32
    %c0_i32_0 = arith.constant 0 : i32
    return %arg0, %c0_i32 : i32, i32
  }
  func.func @transform_1(%arg0: i32) -> (i32, i32) {
    %c0_i32 = arith.constant 0 : i32
    %c0_i32_0 = arith.constant 0 : i32
    %c0_i32_1 = arith.constant 0 : i32
    return %c0_i32, %c0_i32_0 : i32, i32
  }
  func.func @transform_2(%arg0: i32) -> (i32, i32) {
    %c0_i32 = arith.constant 0 : i32
    %c0_i32_0 = arith.constant 0 : i32
    %c0_i32_1 = arith.constant 0 : i32
    return %c0_i32, %c0_i32_0 : i32, i32
  }
  func.func @transform_3(%arg0: i32) -> (i32, i32) {
    %c0_i32 = arith.constant 0 : i32
    %c0_i32_0 = arith.constant 0 : i32
    %c0_i32_1 = arith.constant 0 : i32
    return %c0_i32, %c0_i32_0 : i32, i32
  }
  func.func @transform_4(%arg0: i32) -> (i32, i32) {
    %c0_i32 = arith.constant 0 : i32
    %c0_i32_0 = arith.constant 0 : i32
    %c0_i32_1 = arith.constant 0 : i32
    return %c0_i32, %c0_i32_0 : i32, i32
  }
  func.func @transform_5(%arg0: i32) -> (i32, i32) {
    %c0_i32 = arith.constant 0 : i32
    %c0_i32_0 = arith.constant 0 : i32
    %c0_i32_1 = arith.constant 0 : i32
    return %c0_i32, %c0_i32_0 : i32, i32
  }
  func.func @transform_6(%arg0: i32) -> (i32, i32) {
    %c0_i32 = arith.constant 0 : i32
    %c0_i32_0 = arith.constant 0 : i32
    return %arg0, %c0_i32 : i32, i32
  }
}

</mosaic_0001>

<bundles_post_ra>
// kernel: tpu_custom_call.1
= control target key start
LH: loop header
LB: loop body
LE: loop exit
PB: predicated region body
PF: predicated region fallthrough
CT: control target
= control target key end

     0   :  { %11 = vsyncpa [#allocation8], 0  ;;  %s4560_s0 = inlined_call_operand.hbm [shape: f32[64,128], index: 0, kind: input, shape index: {}]   ;;  %s4561_s1 = inlined_call_operand.hbm [shape: f32[128,512], index: 1, kind: input, shape index: {}]   ;;  %s4562_s2 = inlined_call_operand.hbm [shape: f32[128,512], index: 2, kind: input, shape index: {}]   ;;  %s4563_s3 = inlined_call_operand.vmem [shape: f32[1,512], index: 3, kind: input, shape index: {}]   ;;  %s4564_s4 = inlined_call_operand.hbm [shape: f32[256,512], index: 4, kind: input, shape index: {}]   ;;  %s4565_s5 = inlined_call_operand.vmem [shape: f32[1,512], index: 5, kind: input, shape index: {}]   ;;  %s4566_s6 = inlined_call_operand.hbm [shape: f32[64,128], index: 6, kind: output, shape index: {}]  }
   0x1   :  { %13 = vsyncpa [#allocation8 + $0x1], 0 }
   0x2   :  { %14 = vsyncpa [#allocation11], 0 }
   0x3   :  { %15 = vsyncpa [#allocation14], 0 }
   0x4   :  { %16 = vsyncpa [#allocation9], 0 }
   0x5   :  { %18 = vsyncpa [#allocation9 + $0x1], 0  ;;  %s3570_s21 = smov 0   ;;  %s3572_s22 = smov 0  }
   0x6   :  { %s3574_s23 = smov 0   ;;  %s3576_s24 = smov 0  }
   0x7 LB: > { %s3591_s25 = sadd.s32 4294967295, %s3520_s24   ;;  %s2277_s26 = sadd.s32 4294967294, %s3520_s24   ;;  %s3520_s24 = sphi %s3576_s24, %s4916_s24   ;;  %s3516_s23 = sphi %s3574_s23, %s4915_s23   ;;  %s3512_s22 = sphi %s3572_s22, %s4914_s22   ;;  %s3508_s21 = sphi %s3570_s21, %s4913_s21  }
   0x8   : > { %p44_p0 = scmp.ne.s32.totalorder %s3512_s22, %s3508_s21  ;;  %p4567_p1 = scmp.eq.s32.totalorder %s3591_s25, 0 }
   0x9   : > { %p179_p3 = scmp.eq.s32.totalorder %s2277_s26, 1  ;;  %p2278_p5 = scmp.ge.s32.totalorder %s3520_s24, 1 }
   0xa   : > { %p3600_p4 = por %p4567_p1, %p44_p0  ;;  %p186_p7 = scmp.lt.s32.totalorder %s3520_s24, 3 }
   0xb   : > { %p3605_p6 = por %p179_p3, %p44_p0  ;;  %s3522_s30 = smov [#allocation10]  }
   0xc   : > { %s4701_s27 = scalar_select %p3600_p4, 1, 0 }
   0xd   : > { %s4702_s28 = scalar_select %p3605_p6, 1, 0 }
   0xe   : > { %p3611_p9 = pnand %p2278_p5, %p186_p7  ;;  %s198_s7 = sshll.u32 %s3522_s30, 4  ;;  %s3615_s7 = int_to_ptr.vmem [resolvable:$true] %s198_s7 }
   0xf   : > { %s3523_s9 = smov [#allocation12]   ;;  %s3524_s11 = smov [#allocation13]  }
  0x10   : > { %s4703_s29 = scalar_select %p3611_p9, 1, 0 }
  0x11   : > { %p3183_p10 = pneg %p3611_p9  ;;  %s211_s10 = sshll.u32 %s3523_s9, 4  ;;  %s3626_s10 = int_to_ptr.vmem [resolvable:$true] %s211_s10 }
  0x12   : > { %s3628_s12 = sshll.u32 %s3524_s11, 4  ;;  %s3332_s15 = scalar_lea.hbm %s4561_s1, 8192  ;;  %s228_s12 = int_to_ptr.vmem [resolvable:$true] %s3628_s12 }
  0x13   : > { %p3622_p12 = pnand %p3183_p10, %p4567_p1  ;;  %p3333_p13 = scmp.ne.s32.totalorder %s4561_s1, %s3332_s15 }
  0x14   : > { %p3339_p7 = scmp.lt.u32.totalorder %s3332_s15, %s4561_s1 }
  0x15   : > { %p3638_p0 = pneg %p3622_p12 }
  0x17   : > { %p3335_p3 = pnand %p3638_p0, %p3333_p13 }
  0x19   : > { %p3336_p5 = pneg %p3335_p3 }
  0x1b   : > { %p3341_p10 = pnand %p3339_p7, %p3336_p5 }
  0x1d   : > { %3344 = shalt.err (!%p3341_p10)
}
  0x1e   : > { %s3345_s26 = scalar_lea.vmem %s3615_s7, 8192  ;;  %p3353_p2 = scmp.lt.s32.totalorder %s3615_s7, %s3615_s7 }
  0x1f   : > { %p3346_p11 = scmp.ne.s32.totalorder %s3615_s7, %s3345_s26  ;;  %p3354_p6 = scmp.lt.s32.totalorder %s3345_s26, %s3345_s26 }
  0x21   : > { %p3348_p8 = pnand %p3346_p11, %p3638_p0  ;;  %p3355_p13 = por %p3354_p6, %p3353_p2 }
  0x23   : > { %p3349_p1 = pneg %p3348_p8 }
  0x25   : > { %p3356_p3 = pnand %p3355_p13, %p3349_p1 }
  0x27   : > { %3359 = shalt.err (!%p3356_p3)
}
  0x28   : > { %s3525_s30 = smov 512   ;;  %s3526_s9 = smov 32  }
  0x29   : > { %3186 = dma.hbm_to_vmem [thread:$0]  (!%p3622_p12), %s4561_s1, 8192, %s3615_s7, [#allocation11], %s3525_s30, %s3525_s30, %s3526_s9  }
  0x2a   : > { %s3360_s16 = scalar_lea.hbm %s4562_s2, 8192 }
  0x2b   : > { %p3361_p1 = scmp.ne.s32.totalorder %s4562_s2, %s3360_s16  ;;  %p3367_p8 = scmp.lt.u32.totalorder %s3360_s16, %s4562_s2 }
  0x2d   : > { %p3363_p2 = pnand %p3361_p1, %p3638_p0 }
  0x2f   : > { %p3364_p6 = pneg %p3363_p2 }
  0x31   : > { %p3369_p11 = pnand %p3367_p8, %p3364_p6 }
  0x33   : > { %3372 = shalt.err (!%p3369_p11)
}
  0x34   : > { %s3373_s7 = scalar_lea.vmem %s3626_s10, 8192  ;;  %p3381_p13 = scmp.lt.s32.totalorder %s3626_s10, %s3626_s10 }
  0x35   : > { %p3374_p5 = scmp.ne.s32.totalorder %s3626_s10, %s3373_s7  ;;  %p3382_p3 = scmp.lt.s32.totalorder %s3373_s7, %s3373_s7 }
  0x37   : > { %p3376_p7 = pnand %p3374_p5, %p3638_p0  ;;  %p3383_p1 = por %p3382_p3, %p3381_p13 }
  0x39   : > { %p3377_p10 = pneg %p3376_p7 }
  0x3b   : > { %p3384_p2 = pnand %p3383_p1, %p3377_p10 }
  0x3d   : > { %3387 = shalt.err (!%p3384_p2)
}
  0x3e   : > { %3189 = dma.hbm_to_vmem [thread:$0]  (!%p3622_p12), %s4562_s2, 8192, %s3626_s10, [#allocation11], %s3525_s30, %s3525_s30, %s3526_s9  }
  0x3f   : > { %s3388_s16 = scalar_lea.hbm %s4564_s4, 16384 }
  0x40   : > { %p3389_p6 = scmp.ne.s32.totalorder %s4564_s4, %s3388_s16  ;;  %p3395_p5 = scmp.lt.u32.totalorder %s3388_s16, %s4564_s4 }
  0x42   : > { %p3391_p8 = pnand %p3389_p6, %p3638_p0 }
  0x44   : > { %p3392_p11 = pneg %p3391_p8 }
  0x46   : > { %p3397_p7 = pnand %p3395_p5, %p3392_p11 }
  0x48   : > { %3400 = shalt.err (!%p3397_p7)
}
  0x49   : > { %s3401_s7 = scalar_lea.vmem %s228_s12, 16384  ;;  %p3409_p1 = scmp.lt.s32.totalorder %s228_s12, %s228_s12 }
  0x4a   : > { %p3402_p10 = scmp.ne.s32.totalorder %s228_s12, %s3401_s7  ;;  %p3410_p2 = scmp.lt.s32.totalorder %s3401_s7, %s3401_s7 }
  0x4c   : > { %p3404_p13 = pnand %p3402_p10, %p3638_p0  ;;  %p3411_p4 = por %p3410_p2, %p3409_p1 }
  0x4e   : > { %p3405_p3 = pneg %p3404_p13 }
  0x50   : > { %p3412_p9 = pnand %p3411_p4, %p3405_p3 }
  0x52   : > { %3415 = shalt.err (!%p3412_p9)
}
  0x53   : > { %3192 = dma.hbm_to_vmem [thread:$0]  (!%p3622_p12), %s4564_s4, 16384, %s228_s12, [#allocation14], %s3525_s30, %s3525_s30, %s3526_s9  }
  0x54   : > { %s3711_s18 = sadd.s32 1, %s3520_s24   ;;  %s31_s13 = sadd.s32 1, %s3516_s23 }
  0x55   : > { %s28_s8 = ssub.s32 %s3520_s24, %s3711_s18  ;;  %p38_p9 = scmp.ne.s32.totalorder %s3516_s23, %s3512_s22 }
  0x56   : > { %p29_p4 = scmp.eq.s32.totalorder %s28_s8, 0  ;;  %p39_p0 = scmp.eq.s32.totalorder %s3520_s24, 0 }
  0x57   : > { %p3204_p6 = scmp.lt.s32.totalorder %s3520_s24, 2  ;;  %p4706_p11 = scmp.eq.s32.totalorder %s3591_s25, 1 }
  0x58   : > { %s3721_s14 = scalar_select %p29_p4, %s3516_s23, %s31_s13  }
  0x59   : > { %p40_p8 = por %p39_p0, %p38_p9  ;;  %p3725_p5 = por %p4706_p11, %p38_p9 }
  0x5a   : > { %s244_s16 = sand.u32 1, %s3516_s23   ;;  %s2301_s17 = sshll.u32 %s3520_s24, 9 }
  0x5b   : > { %s2283_s12 = sshll.u32 %s244_s16, 5  ;;  %s3734_s19 = scalar_lea.hbm %s4560_s0, %s2301_s17 }
  0x5c   : > { %s248_s20 = scalar_lea.vmem [#allocation7], %s2283_s12  ;;  %p3736_p12 = pnand %p3204_p6, %p40_p8 }
  0x5d   : > { %s255_s26 = sshll.u32 %s248_s20, 4  ;;  %s3742_s10 = scalar_lea.sflag [#allocation8], %s244_s16  ;;  %s3740_s26 = int_to_ptr.vmem [resolvable:$true] %s255_s26 }
  0x5e   : > { %s3416_s11 = scalar_lea.hbm %s3734_s19, 512  ;;  %p3418_p10 = pneg %p3736_p12 }
  0x5f   : > { %p3417_p7 = scmp.ne.s32.totalorder %s3734_s19, %s3416_s11  ;;  %s3421_s17 = scalar_lea.hbm %s4560_s0, 1024 }
  0x60   : > { %p3422_p1 = scmp.lt.u32.totalorder %s3734_s19, %s4560_s0  ;;  %p3423_p2 = scmp.lt.u32.totalorder %s3421_s17, %s3416_s11 }
  0x61   : > { %p3419_p13 = pnand %p3418_p10, %p3417_p7  ;;  %p3425_p9 = scmp.lt.u32.totalorder %s3416_s11, %s3734_s19 }
  0x62   : > { %p3424_p4 = por %p3423_p2, %p3422_p1 }
  0x63   : > { %p3420_p3 = pneg %p3419_p13 }
  0x64   : > { %p3426_p0 = por %p3425_p9, %p3424_p4 }
  0x66   : > { %p3427_p6 = pnand %p3426_p0, %p3420_p3 }
  0x68   : > { %3430 = shalt.err (!%p3427_p6)
}
  0x69   : > { %s3431_s16 = scalar_lea.vmem %s3740_s26, 512  ;;  %s3527_s9 = smov [#allocation7]  }
  0x6a   : > { %p3432_p8 = scmp.ne.s32.totalorder %s3740_s26, %s3431_s16  ;;  %s3436_s20 = sshll.u32 %s3527_s9, 4  ;;  %s3437_s20 = int_to_ptr.vmem [resolvable:$false] %s3436_s20 }
  0x6b   : > { %s3438_s8 = scalar_lea.vmem %s3437_s20, 1024  ;;  %p3439_p13 = scmp.lt.s32.totalorder %s3740_s26, %s3437_s20 }
  0x6c   : > { %p3434_p11 = pnand %p3432_p8, %p3418_p10  ;;  %p3440_p1 = scmp.lt.s32.totalorder %s3438_s8, %s3431_s16 }
  0x6e   : > { %p3435_p7 = pneg %p3434_p11  ;;  %p3441_p2 = por %p3440_p1, %p3439_p13 }
  0x70   : > { %p3442_p4 = pnand %p3441_p2, %p3435_p7 }
  0x72   : > { %3445 = shalt.err (!%p3442_p4)
}
  0x73   : > { %s3528_s11 = smov 128   ;;  %s3529_s13 = smov 8  }
  0x74   : > { %3196 = dma.hbm_to_vmem [thread:$0]  (!%p3736_p12), %s3734_s19, 512, %s3740_s26, %s3742_s10, %s3528_s11, %s3528_s11, %s3529_s13  }
  0x75   : > { %p4709_p10 = scmp.ne.s32.totalorder %s4703_s29, 0 }
  0x77   : > { %267 = sbr.rel (%p4709_p10) target bundleno = 1541 (0x605), region = 44 }
  0x7e   : > { %s3773_s17 = sand.u32 1, %s3512_s22   ;;  %p4710_p3 = scmp.ne.s32.totalorder %s4701_s27, 0 }
  0x7f   : > { %s2287_s12 = sshll.u32 %s3773_s17, 5  ;;  %s270_s30 = scalar_lea.sflag [#allocation8], %s3773_s17 }
  0x80   : > { %s3777_s16 = scalar_lea.vmem [#allocation7], %s2287_s12 }
  0x81   : > { %3491 = dma.done.wait (%p4710_p3), %s270_s30, 512  }
  0x82   : > { %3493 = vsyncadd (%p4710_p3), %s270_s30, 4294966784  ;;  %p4711_p12 = scmp.eq.s32.totalorder %s3591_s25, 0 }
  0x84   : > { %3495 = dma.done.wait (%p4711_p12), [#allocation11], 16384   ;;  %p4712_p9 = pmov %p4711_p12 }
  0x86   : > { %3497 = vsyncadd (%p4712_p9), [#allocation11], 4294950912  ;;  %p4713_p0 = pmov %p4712_p9 }
  0x88   : > { %3499 = dma.done.wait (%p4713_p0), [#allocation14], 16384   ;;  %p4714_p6 = pmov %p4713_p0 }
  0x89   : > { %s3791_s29 = scalar_lea.vmem [#allocation15], %s2287_s12  ;;  %p4715_p8 = scmp.ne.s32.totalorder %s3591_s25, 0 }
  0x8a   : > { %3501 = vsyncadd (%p4714_p6), [#allocation14], 4294950912  ;;  %v3530_v0 = vmov (!%p4715_p8), 0.0  }
  0x8b   : > { %319 = sbr.rel (%p4715_p8) target bundleno = 146 (0x92), region = 64  ;;  %320 = vst [vmem:[#allocation3] sm:$0xff] (!%p4715_p8), %v3530_v0  ;;  %321 = vst [vmem:[#allocation4] sm:$0xff] (!%p4715_p8), %v3530_v0 }
  0x8c   : > { %322 = vst [vmem:[#allocation5] sm:$0xff] (!%p4715_p8), %v3530_v0  ;;  %323 = vst [vmem:[#allocation6] sm:$0xff] (!%p4715_p8), %v3530_v0 }
  0x92 PF: > { %v329_v1 = vld [vmem:[#allocation10 + $0x8] sm:$0xff]  ;;  %v331_v3 = vld [vmem:[#allocation10 + $0x18] sm:$0xff]  ;;  %v328_v6 = vld [vmem:[#allocation10] sm:$0xff]  ;;  %v4574_v8 = vmov 0.0   ;;  %s2302_s10 = sshll.u32 %s3591_s25, 9  ;;  %s2172_s9 = sshll.u32 %s3791_s29, 4  ;;  %s4515_s9 = int_to_ptr.vmem [resolvable:$true] %s2172_s9 }
  0x93   : > { %v333_v2 = vld [vmem:[#allocation10 + $0x28] sm:$0xff]  ;;  %v335_v5 = vld [vmem:[#allocation10 + $0x38] sm:$0xff]  ;;  %v332_v7 = vld [vmem:[#allocation10 + $0x20] sm:$0xff]  ;;  %478 = vmatprep.mubr.f32.mxu0 %v4574_v8  ;;  %567 = vmatprep.mubr.f32.mxu1 %v4574_v8  ;;  %s4513_s11 = scalar_lea.hbm %s4566_s6, %s2302_s10  ;;  %s2159_s13 = scalar_lea.sflag [#allocation9], %s3773_s17 }
  0x94   : > { %v2303_v4 = vpack.c.bf16 %v333_v2, %v329_v1  ;;  %v2335_v9 = vpack.c.bf16 %v335_v5, %v331_v3  ;;  %v2305_v10 = vpack.c.bf16 %v332_v7, %v328_v6  ;;  %v330_v11 = vld [vmem:[#allocation10 + $0x10] sm:$0xff]  ;;  %v337_v13 = vld [vmem:[#allocation10 + $0x48] sm:$0xff]  ;;  %v339_v16 = vld [vmem:[#allocation10 + $0x58] sm:$0xff]  ;;  %s3446_s12 = scalar_lea.vmem %s4515_s9, 512  ;;  %s3532_s25 = smov [#allocation15]  }
  0x95   : > { %v334_v12 = vld [vmem:[#allocation10 + $0x30] sm:$0xff]  ;;  %v341_v15 = vld [vmem:[#allocation10 + $0x68] sm:$0xff]  ;;  %v343_v17 = vld [vmem:[#allocation10 + $0x78] sm:$0xff]  ;;  %p3447_p11 = scmp.ne.s32.totalorder %s4515_s9, %s3446_s12  ;;  %s3450_s30 = sshll.u32 %s3532_s25, 4  ;;  %s3451_s30 = int_to_ptr.vmem [resolvable:$false] %s3450_s30 }
  0x96   : > { %2304 = vmatprep.subr.bf16.mxu0 %v2303_v4  ;;  %v2337_v14 = vpack.c.bf16 %v334_v12, %v330_v11  ;;  %2336 = vmatprep.subr.bf16.mxu1 %v2335_v9  ;;  %v2307_v18 = vpack.c.bf16 %v341_v15, %v337_v13  ;;  %v2339_v19 = vpack.c.bf16 %v343_v17, %v339_v16  ;;  %v336_v20 = vld [vmem:[#allocation10 + $0x40] sm:$0xff]  ;;  %v338_v22 = vld [vmem:[#allocation10 + $0x50] sm:$0xff]  ;;  %v345_v25 = vld [vmem:[#allocation10 + $0x88] sm:$0xff]  ;;  %p3453_p1 = scmp.lt.s32.totalorder %s4515_s9, %s3451_s30 }
  0x97   : > { %2306 = vmatpush1.bf16.msra.mxu0 %v2305_v10  ;;  %v340_v21 = vld [vmem:[#allocation10 + $0x60] sm:$0xff]  ;;  %v342_v24 = vld [vmem:[#allocation10 + $0x70] sm:$0xff]  ;;  %v349_v26 = vld [vmem:[#allocation10 + $0xa8] sm:$0xff]  ;;  %p3448_p7 = pnand %p3447_p11, %p3725_p5 }
  0x98   : > { %2338 = vmatpush1.bf16.msra.mxu1 %v2337_v14  ;;  %v2309_v23 = vpack.c.bf16 %v340_v21, %v336_v20  ;;  %2308 = vmatprep.subr.bf16.mxu0 %v2307_v18  ;;  %v2341_v27 = vpack.c.bf16 %v342_v24, %v338_v22  ;;  %v2311_v28 = vpack.c.bf16 %v349_v26, %v345_v25  ;;  %v347_v29 = vld [vmem:[#allocation10 + $0x98] sm:$0xff]  ;;  %v344_v31 = vld [vmem:[#allocation10 + $0x80] sm:$0xff]  ;;  %v346_v34 = vld [vmem:[#allocation10 + $0x90] sm:$0xff] }
  0x99   : > { %2340 = vmatprep.subr.bf16.mxu1 %v2339_v19  ;;  %v351_v30 = vld [vmem:[#allocation10 + $0xb8] sm:$0xff]  ;;  %v348_v33 = vld [vmem:[#allocation10 + $0xa0] sm:$0xff]  ;;  %v350_v35 = vld [vmem:[#allocation10 + $0xb0] sm:$0xff]  ;;  %p3449_p13 = pneg %p3448_p7 }
  0x9a   : > { %v2343_v32 = vpack.c.bf16 %v351_v30, %v347_v29  ;;  %v2313_v36 = vpack.c.bf16 %v348_v33, %v344_v31  ;;  %v353_v37 = vld [vmem:[#allocation10 + $0xc8] sm:$0xff]  ;;  %v355_v39 = vld [vmem:[#allocation10 + $0xd8] sm:$0xff]  ;;  %v2345_v40 = vpack.c.bf16 %v350_v35, %v346_v34  ;;  %v352_v43 = vld [vmem:[#allocation10 + $0xc0] sm:$0xff] }
  0x9b   : > { %2310 = vmatpush1.bf16.msra.mxu0 %v2309_v23  ;;  %v357_v38 = vld [vmem:[#allocation10 + $0xe8] sm:$0xff]  ;;  %v359_v42 = vld [vmem:[#allocation10 + $0xf8] sm:$0xff]  ;;  %v356_v44 = vld [vmem:[#allocation10 + $0xe0] sm:$0xff] }
  0x9c   : > { %2342 = vmatpush1.bf16.msra.mxu1 %v2341_v27  ;;  %2312 = vmatprep.subr.bf16.mxu0 %v2311_v28  ;;  %v2315_v41 = vpack.c.bf16 %v357_v38, %v353_v37  ;;  %v2347_v45 = vpack.c.bf16 %v359_v42, %v355_v39  ;;  %v354_v46 = vld [vmem:[#allocation10 + $0xd0] sm:$0xff]  ;;  %v361_v48 = vld [vmem:[#allocation10 + $0x108] sm:$0xff]  ;;  %v363_v50 = vld [vmem:[#allocation10 + $0x118] sm:$0xff]  ;;  %v2317_v52 = vpack.c.bf16 %v356_v44, %v352_v43 }
  0x9d   : > { %2344 = vmatprep.subr.bf16.mxu1 %v2343_v32  ;;  %v358_v47 = vld [vmem:[#allocation10 + $0xf0] sm:$0xff]  ;;  %v365_v49 = vld [vmem:[#allocation10 + $0x128] sm:$0xff]  ;;  %v367_v51 = vld [vmem:[#allocation10 + $0x138] sm:$0xff] }
  0x9e   : > { %v2349_v53 = vpack.c.bf16 %v358_v47, %v354_v46  ;;  %v2319_v54 = vpack.c.bf16 %v365_v49, %v361_v48  ;;  %v360_v55 = vld [vmem:[#allocation10 + $0x100] sm:$0xff]  ;;  %v362_v57 = vld [vmem:[#allocation10 + $0x110] sm:$0xff]  ;;  %v2351_v58 = vpack.c.bf16 %v367_v51, %v363_v50  ;;  %v369_v60 = vld [vmem:[#allocation10 + $0x148] sm:$0xff] }
  0x9f   : > { %2314 = vmatpush1.bf16.msra.mxu0 %v2313_v36  ;;  %v364_v56 = vld [vmem:[#allocation10 + $0x120] sm:$0xff]  ;;  %v366_v59 = vld [vmem:[#allocation10 + $0x130] sm:$0xff]  ;;  %v373_v61 = vld [vmem:[#allocation10 + $0x168] sm:$0xff] }
  0xa0   : > { %2346 = vmatpush1.bf16.msra.mxu1 %v2345_v40  ;;  %2316 = vmatprep.subr.bf16.mxu0 %v2315_v41  ;;  %v371_v62 = vld [vmem:[#allocation10 + $0x158] sm:$0xff]  ;;  %v2321_v0 = vpack.c.bf16 %v364_v56, %v360_v55  ;;  %v2353_v1 = vpack.c.bf16 %v366_v59, %v362_v57  ;;  %v2323_v2 = vpack.c.bf16 %v373_v61, %v369_v60  ;;  %v368_v3 = vld [vmem:[#allocation10 + $0x140] sm:$0xff]  ;;  %v370_v5 = vld [vmem:[#allocation10 + $0x150] sm:$0xff] }
  0xa1   : > { %2348 = vmatprep.subr.bf16.mxu1 %v2347_v45  ;;  %v375_v63 = vld [vmem:[#allocation10 + $0x178] sm:$0xff]  ;;  %v372_v4 = vld [vmem:[#allocation10 + $0x160] sm:$0xff]  ;;  %v374_v7 = vld [vmem:[#allocation10 + $0x170] sm:$0xff] }
  0xa2   : > { %v2355_v6 = vpack.c.bf16 %v375_v63, %v371_v62  ;;  %v377_v9 = vld [vmem:[#allocation10 + $0x188] sm:$0xff]  ;;  %v379_v11 = vld [vmem:[#allocation10 + $0x198] sm:$0xff]  ;;  %v2325_v13 = vpack.c.bf16 %v372_v4, %v368_v3  ;;  %v2357_v14 = vpack.c.bf16 %v374_v7, %v370_v5  ;;  %v376_v16 = vld [vmem:[#allocation10 + $0x180] sm:$0xff] }
  0xa3   : > { %2318 = vmatpush1.bf16.msra.mxu0 %v2317_v52  ;;  %v381_v10 = vld [vmem:[#allocation10 + $0x1a8] sm:$0xff]  ;;  %v383_v12 = vld [vmem:[#allocation10 + $0x1b8] sm:$0xff]  ;;  %v380_v17 = vld [vmem:[#allocation10 + $0x1a0] sm:$0xff] }
  0xa4   : > { %2350 = vmatpush1.bf16.msra.mxu1 %v2349_v53  ;;  %2320 = vmatprep.subr.bf16.mxu0 %v2319_v54  ;;  %v2327_v15 = vpack.c.bf16 %v381_v10, %v377_v9  ;;  %v378_v18 = vld [vmem:[#allocation10 + $0x190] sm:$0xff]  ;;  %v2359_v19 = vpack.c.bf16 %v383_v12, %v379_v11  ;;  %v385_v21 = vld [vmem:[#allocation10 + $0x1c8] sm:$0xff]  ;;  %v387_v23 = vld [vmem:[#allocation10 + $0x1d8] sm:$0xff]  ;;  %v2329_v25 = vpack.c.bf16 %v380_v17, %v376_v16 }
  0xa5   : > { %2352 = vmatprep.subr.bf16.mxu1 %v2351_v58  ;;  %v382_v20 = vld [vmem:[#allocation10 + $0x1b0] sm:$0xff]  ;;  %v389_v22 = vld [vmem:[#allocation10 + $0x1e8] sm:$0xff]  ;;  %v391_v24 = vld [vmem:[#allocation10 + $0x1f8] sm:$0xff] }
  0xa6   : > { %v2361_v26 = vpack.c.bf16 %v382_v20, %v378_v18  ;;  %v2331_v27 = vpack.c.bf16 %v389_v22, %v385_v21  ;;  %v384_v28 = vld [vmem:[#allocation10 + $0x1c0] sm:$0xff]  ;;  %v386_v30 = vld [vmem:[#allocation10 + $0x1d0] sm:$0xff]  ;;  %v2363_v31 = vpack.c.bf16 %v391_v24, %v387_v23  ;;  %v609_v33 = vld [vmem:[#allocation12 + $0x8] sm:$0xff] }
  0xa7   : > { %2322 = vmatpush1.bf16.msra.mxu0 %v2321_v0  ;;  %v388_v29 = vld [vmem:[#allocation10 + $0x1e0] sm:$0xff]  ;;  %v390_v32 = vld [vmem:[#allocation10 + $0x1f0] sm:$0xff]  ;;  %v613_v34 = vld [vmem:[#allocation12 + $0x28] sm:$0xff] }
  0xa8   : > { %2354 = vmatpush1.bf16.msra.mxu1 %v2353_v1  ;;  %2324 = vmatprep.subr.bf16.mxu0 %v2323_v2  ;;  %v611_v35 = vld [vmem:[#allocation12 + $0x18] sm:$0xff]  ;;  %v2333_v37 = vpack.c.bf16 %v388_v29, %v384_v28  ;;  %v2365_v38 = vpack.c.bf16 %v390_v32, %v386_v30  ;;  %v3797_v39 = vpack.c.bf16 %v613_v34, %v609_v33  ;;  %v608_v40 = vld [vmem:[#allocation12] sm:$0xff]  ;;  %v610_v42 = vld [vmem:[#allocation12 + $0x10] sm:$0xff] }
  0xa9   : > { %2356 = vmatprep.subr.bf16.mxu1 %v2355_v6  ;;  %v615_v36 = vld [vmem:[#allocation12 + $0x38] sm:$0xff]  ;;  %v612_v41 = vld [vmem:[#allocation12 + $0x20] sm:$0xff]  ;;  %v614_v44 = vld [vmem:[#allocation12 + $0x30] sm:$0xff] }
  0xaa   : > { %v3799_v43 = vpack.c.bf16 %v615_v36, %v611_v35  ;;  %v617_v45 = vld [vmem:[#allocation12 + $0x48] sm:$0xff]  ;;  %v619_v47 = vld [vmem:[#allocation12 + $0x58] sm:$0xff]  ;;  %v324_v49 = vld [vmem:[%s3777_s16] sm:$0xff]  ;;  %v3802_v50 = vpack.c.bf16 %v612_v41, %v608_v40  ;;  %v3805_v51 = vpack.c.bf16 %v614_v44, %v610_v42 }
  0xab   : > { %2326 = vmatpush1.bf16.msra.mxu0 %v2325_v13  ;;  %v621_v46 = vld [vmem:[#allocation12 + $0x68] sm:$0xff]  ;;  %v623_v48 = vld [vmem:[#allocation12 + $0x78] sm:$0xff]  ;;  %v616_v53 = vld [vmem:[#allocation12 + $0x40] sm:$0xff] }
  0xac   : > { %2358 = vmatpush1.bf16.msra.mxu1 %v2357_v14  ;;  %2328 = vmatprep.subr.bf16.mxu0 %v2327_v15  ;;  %v3807_v52 = vpack.c.bf16 %v621_v46, %v617_v45  ;;  %v620_v54 = vld [vmem:[#allocation12 + $0x60] sm:$0xff]  ;;  %v618_v55 = vld [vmem:[#allocation12 + $0x50] sm:$0xff]  ;;  %v3810_v56 = vpack.c.bf16 %v623_v48, %v619_v47  ;;  %v625_v58 = vld [vmem:[#allocation12 + $0x88] sm:$0xff] }
  0xad   : > { %2360 = vmatprep.subr.bf16.mxu1 %v2359_v19  ;;  %v622_v57 = vld [vmem:[#allocation12 + $0x70] sm:$0xff]  ;;  %v629_v59 = vld [vmem:[#allocation12 + $0xa8] sm:$0xff]  ;;  %v627_v60 = vld [vmem:[#allocation12 + $0x98] sm:$0xff]  ;;  %v3813_v62 = vpack.c.bf16 %v620_v54, %v616_v53 }
  0xae   : > { %v631_v61 = vld [vmem:[#allocation12 + $0xb8] sm:$0xff]  ;;  %v325_v63 = vld [vmem:[%s3777_s16 + $0x8] sm:$0xff]  ;;  %v3818_v0 = vpack.c.bf16 %v622_v57, %v618_v55  ;;  %v3820_v1 = vpack.c.bf16 %v629_v59, %v625_v58  ;;  %v624_v2 = vld [vmem:[#allocation12 + $0x80] sm:$0xff] }
  0xaf   : > { %2330 = vmatpush1.bf16.msra.mxu0 %v2329_v25  ;;  %v628_v3 = vld [vmem:[#allocation12 + $0xa0] sm:$0xff]  ;;  %v626_v4 = vld [vmem:[#allocation12 + $0x90] sm:$0xff]  ;;  %v3823_v5 = vpack.c.bf16 %v631_v61, %v627_v60  ;;  %v633_v7 = vld [vmem:[#allocation12 + $0xc8] sm:$0xff] }
  0xb0   : > { %2362 = vmatpush1.bf16.msra.mxu1 %v2361_v26  ;;  %2332 = vmatprep.subr.bf16.mxu0 %v2331_v27  ;;  %v630_v6 = vld [vmem:[#allocation12 + $0xb0] sm:$0xff]  ;;  %v637_v9 = vld [vmem:[#allocation12 + $0xe8] sm:$0xff]  ;;  %v635_v10 = vld [vmem:[#allocation12 + $0xd8] sm:$0xff]  ;;  %v3828_v12 = vpack.c.bf16 %v628_v3, %v624_v2 }
  0xb1   : > { %2364 = vmatprep.subr.bf16.mxu1 %v2363_v31  ;;  %v639_v11 = vld [vmem:[#allocation12 + $0xf8] sm:$0xff]  ;;  %v326_v13 = vld [vmem:[%s3777_s16 + $0x10] sm:$0xff]  ;;  %v3833_v14 = vpack.c.bf16 %v630_v6, %v626_v4  ;;  %v3835_v15 = vpack.c.bf16 %v637_v9, %v633_v7  ;;  %v632_v16 = vld [vmem:[#allocation12 + $0xc0] sm:$0xff] }
  0xb2   : > { %v636_v17 = vld [vmem:[#allocation12 + $0xe0] sm:$0xff]  ;;  %v634_v18 = vld [vmem:[#allocation12 + $0xd0] sm:$0xff]  ;;  %v3838_v19 = vpack.c.bf16 %v639_v11, %v635_v10  ;;  %v641_v21 = vld [vmem:[#allocation12 + $0x108] sm:$0xff] }
  0xb3   : > { %2334 = vmatpush1.bf16.msra.mxu0 %v2333_v37  ;;  %v638_v20 = vld [vmem:[#allocation12 + $0xf0] sm:$0xff]  ;;  %v645_v22 = vld [vmem:[#allocation12 + $0x128] sm:$0xff]  ;;  %v643_v23 = vld [vmem:[#allocation12 + $0x118] sm:$0xff]  ;;  %v3843_v25 = vpack.c.bf16 %v636_v17, %v632_v16 }
  0xb4   : > { %2366 = vmatpush1.bf16.msra.mxu1 %v2365_v38  ;;  %2368 = vmatprep.subr.bf16.mxu0 %v3797_v39  ;;  %v647_v24 = vld [vmem:[#allocation12 + $0x138] sm:$0xff]  ;;  %v3848_v27 = vpack.c.bf16 %v638_v20, %v634_v18  ;;  %v3850_v28 = vpack.c.bf16 %v645_v22, %v641_v21  ;;  %v640_v29 = vld [vmem:[#allocation12 + $0x100] sm:$0xff]  ;;  %v642_v31 = vld [vmem:[#allocation12 + $0x110] sm:$0xff] }
  0xb5   : > { %2400 = vmatprep.subr.bf16.mxu1 %v3799_v43  ;;  %v327_v26 = vld [vmem:[%s3777_s16 + $0x18] sm:$0xff]  ;;  %v644_v30 = vld [vmem:[#allocation12 + $0x120] sm:$0xff]  ;;  %v3853_v32 = vpack.c.bf16 %v647_v24, %v643_v23  ;;  %v646_v33 = vld [vmem:[#allocation12 + $0x130] sm:$0xff]  ;;  %s3452_s16 = scalar_lea.vmem %s3451_s30, 1024 }
  0xb6   : > { %479 = vmatmul.mubr.f32.vlgmr.msra.gmra.mrb[0].mxu0 %v324_v49  ;;  %v649_v34 = vld [vmem:[#allocation12 + $0x148] sm:$0xff]  ;;  %v651_v36 = vld [vmem:[#allocation12 + $0x158] sm:$0xff]  ;;  %v3858_v38 = vpack.c.bf16 %v644_v30, %v640_v29  ;;  %v3862_v40 = vpack.c.bf16 %v646_v33, %v642_v31  ;;  %v648_v42 = vld [vmem:[#allocation12 + $0x140] sm:$0xff]  ;;  %p3454_p2 = scmp.lt.s32.totalorder %s3452_s16, %s3446_s12 }
  0xb7   : > { %568 = vmatmul.mubr.f32.vlgmr.msra.gmra.mrb[0].mxu1 %v324_v49  ;;  %2370 = vmatpush1.bf16.msra.mxu0 %v3802_v50  ;;  %v653_v35 = vld [vmem:[#allocation12 + $0x168] sm:$0xff]  ;;  %v655_v37 = vld [vmem:[#allocation12 + $0x178] sm:$0xff]  ;;  %v652_v44 = vld [vmem:[#allocation12 + $0x160] sm:$0xff] }
  0xb8   : > { %2402 = vmatpush1.bf16.msra.mxu1 %v3805_v51  ;;  %2372 = vmatprep.subr.bf16.mxu0 %v3807_v52  ;;  %v3864_v41 = vpack.c.bf16 %v653_v35, %v649_v34  ;;  %v650_v45 = vld [vmem:[#allocation12 + $0x150] sm:$0xff]  ;;  %v3867_v46 = vpack.c.bf16 %v655_v37, %v651_v36  ;;  %v657_v48 = vld [vmem:[#allocation12 + $0x188] sm:$0xff]  ;;  %v659_v53 = vld [vmem:[#allocation12 + $0x198] sm:$0xff]  ;;  %v3872_v55 = vpack.c.bf16 %v652_v44, %v648_v42  ;;  %v394_v34 = vlaneseq  ;;  %p3455_p4 = por %p3454_p2, %p3453_p1 }
  0xb9   : > { %2404 = vmatprep.subr.bf16.mxu1 %v3810_v56  ;;  %484 = vmatprep.mubr.f32.mxu0 %v4574_v8  ;;  %v654_v47 = vld [vmem:[#allocation12 + $0x170] sm:$0xff]  ;;  %v661_v49 = vld [vmem:[#allocation12 + $0x1a8] sm:$0xff]  ;;  %v663_v54 = vld [vmem:[#allocation12 + $0x1b8] sm:$0xff] }
  0xba   : > { %573 = vmatprep.mubr.f32.mxu1 %v4574_v8  ;;  %485 = vmatmul.mubr.f32.gmra.mrb[2].mxu0 %v325_v63  ;;  %v3876_v57 = vpack.c.bf16 %v654_v47, %v650_v45  ;;  %v3878_v58 = vpack.c.bf16 %v661_v49, %v657_v48  ;;  %v656_v59 = vld [vmem:[#allocation12 + $0x180] sm:$0xff]  ;;  %v658_v61 = vld [vmem:[#allocation12 + $0x190] sm:$0xff]  ;;  %v665_v3 = vld [vmem:[#allocation12 + $0x1c8] sm:$0xff]  ;;  %v3945_v35 = vshrl.u32 %v394_v34, 7  ;;  %p3456_p10 = pnand %p3455_p4, %p3449_p13 }
  0xbb   : > { %2374 = vmatpush1.bf16.msra.mxu0 %v3813_v62  ;;  %574 = vmatmul.mubr.f32.gmra.mrb[2].mxu1 %v325_v63  ;;  %v660_v60 = vld [vmem:[#allocation12 + $0x1a0] sm:$0xff]  ;;  %v3881_v63 = vpack.c.bf16 %v663_v54, %v659_v53  ;;  %v662_v2 = vld [vmem:[#allocation12 + $0x1b0] sm:$0xff]  ;;  %v669_v4 = vld [vmem:[#allocation12 + $0x1e8] sm:$0xff] }
  0xbc   : > { %2406 = vmatpush1.bf16.msra.mxu1 %v3818_v0  ;;  %2376 = vmatprep.subr.bf16.mxu0 %v3820_v1  ;;  %v667_v6 = vld [vmem:[#allocation12 + $0x1d8] sm:$0xff]  ;;  %v3884_v9 = vpack.c.bf16 %v660_v60, %v656_v59  ;;  %v3888_v10 = vpack.c.bf16 %v662_v2, %v658_v61  ;;  %v3890_v11 = vpack.c.bf16 %v669_v4, %v665_v3  ;;  %v668_v16 = vld [vmem:[#allocation12 + $0x1e0] sm:$0xff]  ;;  %v666_v18 = vld [vmem:[#allocation12 + $0x1d0] sm:$0xff]  ;;  %v4573_v36 = vsub.s32 0, %v3945_v35 }
  0xbd   : > { %2408 = vmatprep.subr.bf16.mxu1 %v3823_v5  ;;  %490 = vmatprep.mubr.f32.mxu0 %v4574_v8  ;;  %v671_v7 = vld [vmem:[#allocation12 + $0x1f8] sm:$0xff]  ;;  %v670_v20 = vld [vmem:[#allocation12 + $0x1f0] sm:$0xff]  ;;  %v801_v23 = vld [vmem:[#allocation3] sm:$0xff]  ;;  %4723 = vst [vmem:[#allocation27_spill] sm:$0xff] %v3945_v35  ;;  %v4572_v42 = vsub.s32 1, %v3945_v35  ;;  %v4571_v45 = vsub.s32 2, %v3945_v35 }
  0xbe   : > { %579 = vmatprep.mubr.f32.mxu1 %v4574_v8  ;;  %491 = vmatmul.mubr.f32.gmra.mrb[4].mxu0 %v326_v13  ;;  %4716 = vst [vmem:[#allocation20_spill] sm:$0xff] %v3888_v10  ;;  %4717 = vst [vmem:[#allocation21_spill] sm:$0xff] %v3890_v11  ;;  %v3893_v17 = vpack.c.bf16 %v671_v7, %v667_v6  ;;  %v3900_v22 = vpack.c.bf16 %v670_v20, %v666_v18  ;;  %v673_v24 = vld [vmem:[#allocation13 + $0x8] sm:$0xff]  ;;  %v675_v29 = vld [vmem:[#allocation13 + $0x18] sm:$0xff]  ;;  %v4570_v60 = vsub.s32 3, %v3945_v35 }
  0xbf   : > { %2378 = vmatpush1.bf16.msra.mxu0 %v3828_v12  ;;  %580 = vmatmul.mubr.f32.gmra.mrb[4].mxu1 %v326_v13  ;;  %v664_v13 = vld [vmem:[#allocation12 + $0x1c0] sm:$0xff]  ;;  %v679_v31 = vld [vmem:[#allocation13 + $0x38] sm:$0xff] }
  0xc0   : > { %2410 = vmatpush1.bf16.msra.mxu1 %v3833_v14  ;;  %2380 = vmatprep.subr.bf16.mxu0 %v3835_v15  ;;  %4718 = vst [vmem:[#allocation22_spill] sm:$0xff] %v3893_v17  ;;  %v3896_v21 = vpack.c.bf16 %v668_v16, %v664_v13  ;;  %4720 = vst [vmem:[#allocation24_spill] sm:$0xff] %v3900_v22  ;;  %v3941_v33 = vpack.c.bf16 %v679_v31, %v675_v29  ;;  %v392_v37 = vld [vmem:[%s4563_s3] sm:$0xf]  ;;  %v802_v29 = vld [vmem:[#allocation4] sm:$0xff] }
  0xc1   : > { %2412 = vmatprep.subr.bf16.mxu1 %v3838_v19  ;;  %496 = vmatprep.mubr.f32.mxu0 %v4574_v8  ;;  %v3954_v44 = vrot.slane %v392_v37, %v4573_v36  ;;  %v3959_v47 = vrot.slane %v392_v37, %v4572_v42  ;;  %v3964_v53 = vrot.slane %v392_v37, %v4571_v45  ;;  %v689_v45 = vld [vmem:[#allocation13 + $0x88] sm:$0xff]  ;;  %v691_v36 = vld [vmem:[#allocation13 + $0x98] sm:$0xff] }
  0xc2   : > { %585 = vmatprep.mubr.f32.mxu1 %v4574_v8  ;;  %497 = vmatmul.mubr.f32.gmra.mrb[6].mxu0 %v327_v26  ;;  %4719 = vst [vmem:[#allocation23_spill] sm:$0xff] %v3896_v21  ;;  %4722 = vst [vmem:[#allocation26_spill] sm:$0xff] %v3941_v33  ;;  %v3971_v7 = vrot.slane %v392_v37, %v4570_v60  ;;  %v693_v42 = vld [vmem:[#allocation13 + $0xa8] sm:$0xff]  ;;  %v699_v35 = vld [vmem:[#allocation13 + $0xd8] sm:$0xff] }
  0xc3   : > { %2382 = vmatpush1.bf16.msra.mxu0 %v3843_v25  ;;  %586 = vmatmul.mubr.f32.gmra.mrb[6].mxu1 %v327_v26  ;;  %v677_v26 = vld [vmem:[#allocation13 + $0x28] sm:$0xff]  ;;  %4724 = vst [vmem:[#allocation28_spill] sm:$0xff] %v3954_v44  ;;  %4725 = vst [vmem:[#allocation29_spill] sm:$0xff] %v3959_v47 }
  0xc4   : > { %2414 = vmatpush1.bf16.msra.mxu1 %v3848_v27  ;;  %2384 = vmatprep.subr.bf16.mxu0 %v3850_v28  ;;  %v3939_v30 = vpack.c.bf16 %v677_v26, %v673_v24  ;;  %4726 = vst [vmem:[#allocation30_spill] sm:$0xff] %v3964_v53  ;;  %4727 = vst [vmem:[#allocation31_spill] sm:$0xff] %v3971_v7 }
  0xc5   : > { %2416 = vmatprep.subr.bf16.mxu1 %v3853_v32  ;;  %873 = vmatprep.mubr.f32.mxu0 %v4574_v8 }
  0xc6   : > { %944 = vmatprep.mubr.f32.mxu1 %v4574_v8  ;;  %4721 = vst [vmem:[#allocation25_spill] sm:$0xff] %v3939_v30 }
  0xc7   : > { %2386 = vmatpush1.bf16.msra.mxu0 %v3858_v38 }
  0xc8   : > { %2418 = vmatpush1.bf16.msra.mxu1 %v3862_v40  ;;  %2388 = vmatprep.subr.bf16.mxu0 %v3864_v41 }
  0xc9   : > { %2420 = vmatprep.subr.bf16.mxu1 %v3867_v46 }
  0xcb   : > { %2390 = vmatpush1.bf16.msra.mxu0 %v3872_v55 }
  0xcc   : > { %2422 = vmatpush1.bf16.msra.mxu1 %v3876_v57  ;;  %2392 = vmatprep.subr.bf16.mxu0 %v3878_v58 }
  0xcd   : > { %2424 = vmatprep.subr.bf16.mxu1 %v3881_v63 }
  0xcf   : > { %2394 = vmatpush1.bf16.msra.mxu0 %v3884_v9 }
  0xd0   : > { %2426 = vmatpush1.bf16.msra.mxu1 %v3888_v10  ;;  %2396 = vmatprep.subr.bf16.mxu0 %v3890_v11 }
  0xd1   : > { %2428 = vmatprep.subr.bf16.mxu1 %v3893_v17 }
  0xd3   : > { %2398 = vmatpush1.bf16.msra.mxu0 %v3896_v21 }
  0xd4   : > { %2430 = vmatpush1.bf16.msra.mxu1 %v3900_v22  ;;  %2432 = vmatprep.subr.bf16.mxu0 %v3797_v39 }
  0xd5   : > { %2464 = vmatprep.subr.bf16.mxu1 %v3799_v43 }
  0xd6   : > { %874 = vmatmul.mubr.f32.vlgmr.msra.gmra.mrb[0].mxu0 %v801_v23 }
  0xd7   : > { %945 = vmatmul.mubr.f32.vlgmr.msra.gmra.mrb[0].mxu1 %v801_v23  ;;  %2434 = vmatpush1.bf16.msra.mxu0 %v3802_v50 }
  0xd8   : > { %2466 = vmatpush1.bf16.msra.mxu1 %v3805_v51  ;;  %2436 = vmatprep.subr.bf16.mxu0 %v3807_v52 }
  0xd9   : > { %2468 = vmatprep.subr.bf16.mxu1 %v3810_v56  ;;  %1044 = vmatprep.mubr.f32.mxu0 %v4574_v8 }
  0xda   : > { %1115 = vmatprep.mubr.f32.mxu1 %v4574_v8  ;;  %v695_v8 = vld [vmem:[#allocation13 + $0xb8] sm:$0xff] }
  0xdb   : > { %2438 = vmatpush1.bf16.msra.mxu0 %v3813_v62 }
  0xdc   : > { %2470 = vmatpush1.bf16.msra.mxu1 %v3818_v0  ;;  %2440 = vmatprep.subr.bf16.mxu0 %v3820_v1 }
  0xdd   : > { %2472 = vmatprep.subr.bf16.mxu1 %v3823_v5 }
  0xdf   : > { %2442 = vmatpush1.bf16.msra.mxu0 %v3828_v12 }
  0xe0   : > { %2474 = vmatpush1.bf16.msra.mxu1 %v3833_v14  ;;  %2444 = vmatprep.subr.bf16.mxu0 %v3835_v15 }
  0xe1   : > { %2476 = vmatprep.subr.bf16.mxu1 %v3838_v19 }
  0xe3   : > { %2446 = vmatpush1.bf16.msra.mxu0 %v3843_v25 }
  0xe4   : > { %2478 = vmatpush1.bf16.msra.mxu1 %v3848_v27  ;;  %2448 = vmatprep.subr.bf16.mxu0 %v3850_v28 }
  0xe5   : > { %2480 = vmatprep.subr.bf16.mxu1 %v3853_v32 }
  0xe7   : > { %2450 = vmatpush1.bf16.msra.mxu0 %v3858_v38 }
  0xe8   : > { %2482 = vmatpush1.bf16.msra.mxu1 %v3862_v40  ;;  %2452 = vmatprep.subr.bf16.mxu0 %v3864_v41 }
  0xe9   : > { %2484 = vmatprep.subr.bf16.mxu1 %v3867_v46 }
  0xeb   : > { %2454 = vmatpush1.bf16.msra.mxu0 %v3872_v55 }
  0xec   : > { %2486 = vmatpush1.bf16.msra.mxu1 %v3876_v57  ;;  %2456 = vmatprep.subr.bf16.mxu0 %v3878_v58 }
  0xed   : > { %2488 = vmatprep.subr.bf16.mxu1 %v3881_v63 }
  0xef   : > { %2458 = vmatpush1.bf16.msra.mxu0 %v3884_v9 }
  0xf0   : > { %2490 = vmatpush1.bf16.msra.mxu1 %v3888_v10  ;;  %2460 = vmatprep.subr.bf16.mxu0 %v3890_v11 }
  0xf1   : > { %2492 = vmatprep.subr.bf16.mxu1 %v3893_v17 }
  0xf3   : > { %2462 = vmatpush1.bf16.msra.mxu0 %v3896_v21 }
  0xf4   : > { %2494 = vmatpush1.bf16.msra.mxu1 %v3900_v22  ;;  %2496 = vmatprep.subr.bf16.mxu0 %v3939_v30 }
  0xf5   : > { %2560 = vmatprep.subr.bf16.mxu1 %v3941_v33 }
 0x1a9   : > { %v875_v48 = vpop.f32.mrb[0].mxu0 }
 0x1aa   : > { %v3135_v49 = vadd.f32 %v875_v48, %v3954_v44  ;;  %v946_v54 = vpop.f32.mrb[0].mxu1  ;;  %v877_v59 = vpop.f32.mrb[1].mxu0 }
 0x1ab   : > { %v3136_v61 = vadd.f32 %v877_v59, %v3959_v47  ;;  %v948_v2 = vpop.f32.mrb[1].mxu1  ;;  %v3143_v6 = vadd.f32 %v946_v54, %v3964_v53 }
 0x1ac   : > { %v955_v3 = vmul.f32 0.5, %v3135_v49  ;;  %v3144_v13 = vadd.f32 %v948_v2, %v3971_v7  ;;  %v676_v2 = vld [vmem:[#allocation13 + $0x20] sm:$0xff] }
 0x1ad   : > { %v959_v4 = vmul.f32 0.5, %v3136_v61  ;;  %v672_v61 = vld [vmem:[#allocation13] sm:$0xff] }
 0x1ae   : > { %3252 = vtanh.f32 %v955_v3  ;;  %v964_v16 = vmul.f32 0.5, %v3144_v13  ;;  %v674_v3 = vld [vmem:[#allocation13 + $0x10] sm:$0xff]  ;;  %v685_v13 = vld [vmem:[#allocation13 + $0x68] sm:$0xff]  ;;  %v3977_v60 = vpack.c.bf16 %v676_v2, %v672_v61 }
 0x1af   : > { %3254 = vtanh.f32 %v959_v4  ;;  %v678_v4 = vld [vmem:[#allocation13 + $0x30] sm:$0xff] }
 0x1b0   : > { %3256 = vtanh.f32 %v3143_v6  ;;  %v681_v6 = vld [vmem:[#allocation13 + $0x48] sm:$0xff]  ;;  %4728 = vst [vmem:[#allocation32_spill] sm:$0xff] %v3977_v60 }
 0x1b1   : > { %3258 = vtanh.f32 %v964_v16  ;;  %v687_v16 = vld [vmem:[#allocation13 + $0x78] sm:$0xff] }
 0x1b8   : > { %v3253_v18 = vpop.eup %3252 }
 0x1b9   : > { %v3255_v20 = vpop.eup %3254  ;;  %v957_v23 = vmul.f32 0.5, %v3253_v18  ;;  %v683_v18 = vld [vmem:[#allocation13 + $0x58] sm:$0xff] }
 0x1ba   : > { %v961_v24 = vmul.f32 0.5, %v3255_v20  ;;  %v3257_v31 = vpop.eup %3256 }
 0x1bb   : > { %v958_v26 = vadd.f32 0.5, %v957_v23  ;;  %v3259_v37 = vpop.eup %3258 }
 0x1bc   : > { %v962_v34 = vadd.f32 0.5, %v961_v24  ;;  %v966_v59 = vmul.f32 0.5, %v3259_v37  ;;  %v3979_v24 = vpack.c.bf16 %v678_v4, %v674_v3  ;;  %v686_v37 = vld [vmem:[#allocation13 + $0x70] sm:$0xff]  ;;  %v688_v3 = vld [vmem:[#allocation13 + $0x80] sm:$0xff] }
 0x1bd   : > { %v969_v48 = vmul.f32 %v3257_v31, %v958_v26  ;;  %v680_v26 = vld [vmem:[#allocation13 + $0x40] sm:$0xff] }
 0x1be   : > { %v968_v49 = vmul.f32 %v962_v34, %v802_v29  ;;  %v967_v20 = vadd.f32 0.5, %v966_v59  ;;  %4729 = vst [vmem:[#allocation33_spill] sm:$0xff] %v3979_v24  ;;  %v684_v29 = vld [vmem:[#allocation13 + $0x60] sm:$0xff]  ;;  %v3983_v34 = vpack.c.bf16 %v685_v13, %v681_v6  ;;  %v803_v59 = vld [vmem:[#allocation5] sm:$0xff]  ;;  %v3997_v6 = vpack.c.bf16 %v693_v42, %v689_v45 }
 0x1bf   : > { %v3991_v61 = vpack.c.bf16 %v684_v29, %v680_v26  ;;  %v692_v4 = vld [vmem:[#allocation13 + $0xa0] sm:$0xff]  ;;  %v3999_v13 = vpack.c.bf16 %v695_v8, %v691_v36 }
 0x1c0   : > { %v3974_v54 = vadd.f32 %v969_v48, %v968_v49  ;;  %4730 = vst [vmem:[#allocation34_spill] sm:$0xff] %v3983_v34  ;;  %v3985_v48 = vpack.c.bf16 %v687_v16, %v683_v18  ;;  %v682_v49 = vld [vmem:[#allocation13 + $0x50] sm:$0xff]  ;;  %4734 = vst [vmem:[#allocation38_spill] sm:$0xff] %v3997_v6  ;;  %v4003_v26 = vpack.c.bf16 %v692_v4, %v688_v3  ;;  %v696_v42 = vld [vmem:[#allocation13 + $0xc0] sm:$0xff] }
 0x1c1   : > { %4732 = vst [vmem:[#allocation36_spill] sm:$0xff] %v3991_v61  ;;  %v3993_v2 = vpack.c.bf16 %v686_v37, %v682_v49  ;;  %4735 = vst [vmem:[#allocation39_spill] sm:$0xff] %v3999_v13  ;;  %v690_v18 = vld [vmem:[#allocation13 + $0x90] sm:$0xff]  ;;  %v700_v45 = vld [vmem:[#allocation13 + $0xe0] sm:$0xff] }
 0x1c2   : > { %3260 = vtanh.f32 %v3974_v54  ;;  %4731 = vst [vmem:[#allocation35_spill] sm:$0xff] %v3985_v48  ;;  %v694_v16 = vld [vmem:[#allocation13 + $0xb0] sm:$0xff]  ;;  %4736 = vst [vmem:[#allocation40_spill] sm:$0xff] %v4003_v26  ;;  %v4015_v3 = vpack.c.bf16 %v700_v45, %v696_v42 }
 0x1c3   : > { %4733 = vst [vmem:[#allocation37_spill] sm:$0xff] %v3993_v2  ;;  %v4005_v29 = vpack.c.bf16 %v694_v16, %v690_v18  ;;  %v698_v49 = vld [vmem:[#allocation13 + $0xd0] sm:$0xff]  ;;  %v704_v18 = vld [vmem:[#allocation13 + $0x100] sm:$0xff] }
 0x1c4   : > { %v702_v37 = vld [vmem:[#allocation13 + $0xf0] sm:$0xff]  ;;  %4740 = vst [vmem:[#allocation44_spill] sm:$0xff] %v4015_v3  ;;  %v708_v16 = vld [vmem:[#allocation13 + $0x120] sm:$0xff] }
 0x1c5   : > { %4737 = vst [vmem:[#allocation41_spill] sm:$0xff] %v4005_v29  ;;  %v4017_v4 = vpack.c.bf16 %v702_v37, %v698_v49  ;;  %v4027_v42 = vpack.c.bf16 %v708_v16, %v704_v18  ;;  %v712_v49 = vld [vmem:[#allocation13 + $0x140] sm:$0xff] }
 0x1c6   : > { %v716_v37 = vld [vmem:[#allocation13 + $0x160] sm:$0xff] }
 0x1c7   : > { %4741 = vst [vmem:[#allocation45_spill] sm:$0xff] %v4017_v4  ;;  %4744 = vst [vmem:[#allocation48_spill] sm:$0xff] %v4027_v42  ;;  %v4039_v18 = vpack.c.bf16 %v716_v37, %v712_v49 }
 0x1c9   : > { %4748 = vst [vmem:[#allocation52_spill] sm:$0xff] %v4039_v18 }
 0x1cc   : > { %v3261_v23 = vpop.eup %3260 }
 0x1cd   : > { %v3981_v31 = vmul.f32 %v3261_v23, %v967_v20  ;;  %v697_v20 = vld [vmem:[#allocation13 + $0xc8] sm:$0xff] }
 0x1ce   : > { %v701_v23 = vld [vmem:[#allocation13 + $0xe8] sm:$0xff] }
 0x1cf   : > { %1045 = vmatmul.mubr.f32.vlgmr.msra.gmra.mrb[2].mxu0 %v3981_v31  ;;  %1116 = vmatmul.mubr.f32.vlgmr.msra.gmra.mrb[2].mxu1 %v3981_v31  ;;  %v4009_v8 = vpack.c.bf16 %v701_v23, %v697_v20  ;;  %v706_v20 = vld [vmem:[#allocation13 + $0x110] sm:$0xff] }
 0x1d0   : > { %2498 = vmatpush1.bf16.msra.mxu0 %v3977_v60  ;;  %2562 = vmatpush1.bf16.msra.mxu1 %v3979_v24  ;;  %v703_v24 = vld [vmem:[#allocation13 + $0xf8] sm:$0xff]  ;;  %v710_v23 = vld [vmem:[#allocation13 + $0x130] sm:$0xff] }
 0x1d1   : > { %2500 = vmatprep.subr.bf16.mxu0 %v3983_v34  ;;  %2564 = vmatprep.subr.bf16.mxu1 %v3985_v48  ;;  %4738 = vst [vmem:[#allocation42_spill] sm:$0xff] %v4009_v8  ;;  %v4011_v36 = vpack.c.bf16 %v703_v24, %v699_v35  ;;  %v707_v48 = vld [vmem:[#allocation13 + $0x118] sm:$0xff]  ;;  %v4029_v45 = vpack.c.bf16 %v710_v23, %v706_v20  ;;  %v720_v20 = vld [vmem:[#allocation13 + $0x180] sm:$0xff] }
 0x1d2   : > { %1211 = vmatprep.mubr.f32.mxu0 %v803_v59  ;;  %1282 = vmatprep.mubr.f32.mxu1 %v803_v59  ;;  %v705_v59 = vld [vmem:[#allocation13 + $0x108] sm:$0xff]  ;;  %v724_v23 = vld [vmem:[#allocation13 + $0x1a0] sm:$0xff] }
 0x1d3   : > { %4739 = vst [vmem:[#allocation43_spill] sm:$0xff] %v4011_v36  ;;  %4745 = vst [vmem:[#allocation49_spill] sm:$0xff] %v4029_v45  ;;  %v4051_v49 = vpack.c.bf16 %v724_v23, %v720_v20 }
 0x1d4   : > { %2502 = vmatpush1.bf16.msra.mxu0 %v3991_v61  ;;  %2566 = vmatpush1.bf16.msra.mxu1 %v3993_v2  ;;  %v709_v61 = vld [vmem:[#allocation13 + $0x128] sm:$0xff]  ;;  %v711_v2 = vld [vmem:[#allocation13 + $0x138] sm:$0xff] }
 0x1d5   : > { %2504 = vmatprep.subr.bf16.mxu0 %v3997_v6  ;;  %2568 = vmatprep.subr.bf16.mxu1 %v3999_v13  ;;  %v4021_v35 = vpack.c.bf16 %v709_v61, %v705_v59  ;;  %v4023_v24 = vpack.c.bf16 %v711_v2, %v707_v48  ;;  %v713_v13 = vld [vmem:[#allocation13 + $0x148] sm:$0xff]  ;;  %v715_v6 = vld [vmem:[#allocation13 + $0x158] sm:$0xff]  ;;  %v714_v2 = vld [vmem:[#allocation13 + $0x150] sm:$0xff]  ;;  %4752 = vst [vmem:[#allocation56_spill] sm:$0xff] %v4051_v49 }
 0x1d6   : > { %v718_v59 = vld [vmem:[#allocation13 + $0x170] sm:$0xff] }
 0x1d7   : > { %4742 = vst [vmem:[#allocation46_spill] sm:$0xff] %v4021_v35  ;;  %4743 = vst [vmem:[#allocation47_spill] sm:$0xff] %v4023_v24  ;;  %v4041_v16 = vpack.c.bf16 %v718_v59, %v714_v2  ;;  %v728_v2 = vld [vmem:[#allocation13 + $0x1c0] sm:$0xff] }
 0x1d8   : > { %2506 = vmatpush1.bf16.msra.mxu0 %v4003_v26  ;;  %2570 = vmatpush1.bf16.msra.mxu1 %v4005_v29  ;;  %v717_v26 = vld [vmem:[#allocation13 + $0x168] sm:$0xff]  ;;  %v719_v29 = vld [vmem:[#allocation13 + $0x178] sm:$0xff]  ;;  %v732_v59 = vld [vmem:[#allocation13 + $0x1e0] sm:$0xff] }
 0x1d9   : > { %2508 = vmatprep.subr.bf16.mxu0 %v4009_v8  ;;  %2572 = vmatprep.subr.bf16.mxu1 %v4011_v36  ;;  %v4033_v48 = vpack.c.bf16 %v717_v26, %v713_v13  ;;  %v4035_v61 = vpack.c.bf16 %v719_v29, %v715_v6  ;;  %v721_v36 = vld [vmem:[#allocation13 + $0x188] sm:$0xff]  ;;  %v723_v8 = vld [vmem:[#allocation13 + $0x198] sm:$0xff]  ;;  %4749 = vst [vmem:[#allocation53_spill] sm:$0xff] %v4041_v16  ;;  %v722_v26 = vld [vmem:[#allocation13 + $0x190] sm:$0xff] }
 0x1da   : > { %v726_v29 = vld [vmem:[#allocation13 + $0x1b0] sm:$0xff]  ;;  %v4063_v20 = vpack.c.bf16 %v732_v59, %v728_v2 }
 0x1db   : > { %4746 = vst [vmem:[#allocation50_spill] sm:$0xff] %v4033_v48  ;;  %4747 = vst [vmem:[#allocation51_spill] sm:$0xff] %v4035_v61  ;;  %v4053_v37 = vpack.c.bf16 %v726_v29, %v722_v26  ;;  %v736_v26 = vld [vmem:[#allocation13 + $0x200] sm:$0xff] }
 0x1dc   : > { %2510 = vmatpush1.bf16.msra.mxu0 %v4015_v3  ;;  %2574 = vmatpush1.bf16.msra.mxu1 %v4017_v4  ;;  %v725_v3 = vld [vmem:[#allocation13 + $0x1a8] sm:$0xff]  ;;  %v727_v4 = vld [vmem:[#allocation13 + $0x1b8] sm:$0xff]  ;;  %4756 = vst [vmem:[#allocation60_spill] sm:$0xff] %v4063_v20  ;;  %v740_v29 = vld [vmem:[#allocation13 + $0x220] sm:$0xff] }
 0x1dd   : > { %2512 = vmatprep.subr.bf16.mxu0 %v4021_v35  ;;  %2576 = vmatprep.subr.bf16.mxu1 %v4023_v24  ;;  %v4045_v6 = vpack.c.bf16 %v725_v3, %v721_v36  ;;  %v4047_v13 = vpack.c.bf16 %v727_v4, %v723_v8  ;;  %v729_v24 = vld [vmem:[#allocation13 + $0x1c8] sm:$0xff]  ;;  %v731_v35 = vld [vmem:[#allocation13 + $0x1d8] sm:$0xff]  ;;  %4753 = vst [vmem:[#allocation57_spill] sm:$0xff] %v4053_v37  ;;  %v730_v3 = vld [vmem:[#allocation13 + $0x1d0] sm:$0xff] }
 0x1de   : > { %v734_v4 = vld [vmem:[#allocation13 + $0x1f0] sm:$0xff]  ;;  %v4075_v2 = vpack.c.bf16 %v740_v29, %v736_v26 }
 0x1df   : > { %4750 = vst [vmem:[#allocation54_spill] sm:$0xff] %v4045_v6  ;;  %4751 = vst [vmem:[#allocation55_spill] sm:$0xff] %v4047_v13  ;;  %v4065_v23 = vpack.c.bf16 %v734_v4, %v730_v3  ;;  %v744_v3 = vld [vmem:[#allocation13 + $0x240] sm:$0xff] }
 0x1e0   : > { %2514 = vmatpush1.bf16.msra.mxu0 %v4027_v42  ;;  %2578 = vmatpush1.bf16.msra.mxu1 %v4029_v45  ;;  %v733_v42 = vld [vmem:[#allocation13 + $0x1e8] sm:$0xff]  ;;  %v735_v45 = vld [vmem:[#allocation13 + $0x1f8] sm:$0xff]  ;;  %4760 = vst [vmem:[#allocation64_spill] sm:$0xff] %v4075_v2  ;;  %v748_v4 = vld [vmem:[#allocation13 + $0x260] sm:$0xff] }
 0x1e1   : > { %2516 = vmatprep.subr.bf16.mxu0 %v4033_v48  ;;  %2580 = vmatprep.subr.bf16.mxu1 %v4035_v61  ;;  %v4057_v8 = vpack.c.bf16 %v733_v42, %v729_v24  ;;  %v4059_v36 = vpack.c.bf16 %v735_v45, %v731_v35  ;;  %v737_v61 = vld [vmem:[#allocation13 + $0x208] sm:$0xff]  ;;  %v739_v48 = vld [vmem:[#allocation13 + $0x218] sm:$0xff]  ;;  %4757 = vst [vmem:[#allocation61_spill] sm:$0xff] %v4065_v23  ;;  %v738_v42 = vld [vmem:[#allocation13 + $0x210] sm:$0xff] }
 0x1e2   : > { %v742_v45 = vld [vmem:[#allocation13 + $0x230] sm:$0xff]  ;;  %v4087_v26 = vpack.c.bf16 %v748_v4, %v744_v3 }
 0x1e3   : > { %4754 = vst [vmem:[#allocation58_spill] sm:$0xff] %v4057_v8  ;;  %4755 = vst [vmem:[#allocation59_spill] sm:$0xff] %v4059_v36  ;;  %v4077_v59 = vpack.c.bf16 %v742_v45, %v738_v42  ;;  %v752_v42 = vld [vmem:[#allocation13 + $0x280] sm:$0xff] }
 0x1e4   : > { %2518 = vmatpush1.bf16.msra.mxu0 %v4039_v18  ;;  %2582 = vmatpush1.bf16.msra.mxu1 %v4041_v16  ;;  %v741_v18 = vld [vmem:[#allocation13 + $0x228] sm:$0xff]  ;;  %v743_v16 = vld [vmem:[#allocation13 + $0x238] sm:$0xff]  ;;  %4764 = vst [vmem:[#allocation68_spill] sm:$0xff] %v4087_v26  ;;  %v756_v45 = vld [vmem:[#allocation13 + $0x2a0] sm:$0xff] }
 0x1e5   : > { %2520 = vmatprep.subr.bf16.mxu0 %v4045_v6  ;;  %2584 = vmatprep.subr.bf16.mxu1 %v4047_v13  ;;  %v4069_v35 = vpack.c.bf16 %v741_v18, %v737_v61  ;;  %v4071_v24 = vpack.c.bf16 %v743_v16, %v739_v48  ;;  %v745_v13 = vld [vmem:[#allocation13 + $0x248] sm:$0xff]  ;;  %v747_v6 = vld [vmem:[#allocation13 + $0x258] sm:$0xff]  ;;  %4761 = vst [vmem:[#allocation65_spill] sm:$0xff] %v4077_v59  ;;  %v746_v18 = vld [vmem:[#allocation13 + $0x250] sm:$0xff] }
 0x1e6   : > { %v750_v16 = vld [vmem:[#allocation13 + $0x270] sm:$0xff]  ;;  %v4099_v3 = vpack.c.bf16 %v756_v45, %v752_v42 }
 0x1e7   : > { %4758 = vst [vmem:[#allocation62_spill] sm:$0xff] %v4069_v35  ;;  %4759 = vst [vmem:[#allocation63_spill] sm:$0xff] %v4071_v24  ;;  %v4089_v29 = vpack.c.bf16 %v750_v16, %v746_v18  ;;  %v760_v18 = vld [vmem:[#allocation13 + $0x2c0] sm:$0xff] }
 0x1e8   : > { %2522 = vmatpush1.bf16.msra.mxu0 %v4051_v49  ;;  %2586 = vmatpush1.bf16.msra.mxu1 %v4053_v37  ;;  %v749_v49 = vld [vmem:[#allocation13 + $0x268] sm:$0xff]  ;;  %v751_v37 = vld [vmem:[#allocation13 + $0x278] sm:$0xff]  ;;  %4768 = vst [vmem:[#allocation72_spill] sm:$0xff] %v4099_v3  ;;  %v764_v16 = vld [vmem:[#allocation13 + $0x2e0] sm:$0xff] }
 0x1e9   : > { %2524 = vmatprep.subr.bf16.mxu0 %v4057_v8  ;;  %2588 = vmatprep.subr.bf16.mxu1 %v4059_v36  ;;  %v4081_v48 = vpack.c.bf16 %v749_v49, %v745_v13  ;;  %v4083_v61 = vpack.c.bf16 %v751_v37, %v747_v6  ;;  %v753_v36 = vld [vmem:[#allocation13 + $0x288] sm:$0xff]  ;;  %v755_v8 = vld [vmem:[#allocation13 + $0x298] sm:$0xff]  ;;  %4765 = vst [vmem:[#allocation69_spill] sm:$0xff] %v4089_v29  ;;  %v754_v49 = vld [vmem:[#allocation13 + $0x290] sm:$0xff] }
 0x1ea   : > { %v758_v37 = vld [vmem:[#allocation13 + $0x2b0] sm:$0xff]  ;;  %v4111_v42 = vpack.c.bf16 %v764_v16, %v760_v18 }
 0x1eb   : > { %4762 = vst [vmem:[#allocation66_spill] sm:$0xff] %v4081_v48  ;;  %4763 = vst [vmem:[#allocation67_spill] sm:$0xff] %v4083_v61  ;;  %v4101_v4 = vpack.c.bf16 %v758_v37, %v754_v49  ;;  %v768_v49 = vld [vmem:[#allocation13 + $0x300] sm:$0xff] }
 0x1ec   : > { %2526 = vmatpush1.bf16.msra.mxu0 %v4063_v20  ;;  %2590 = vmatpush1.bf16.msra.mxu1 %v4065_v23  ;;  %v757_v20 = vld [vmem:[#allocation13 + $0x2a8] sm:$0xff]  ;;  %v759_v23 = vld [vmem:[#allocation13 + $0x2b8] sm:$0xff]  ;;  %4772 = vst [vmem:[#allocation76_spill] sm:$0xff] %v4111_v42  ;;  %v772_v37 = vld [vmem:[#allocation13 + $0x320] sm:$0xff] }
 0x1ed   : > { %2528 = vmatprep.subr.bf16.mxu0 %v4069_v35  ;;  %2592 = vmatprep.subr.bf16.mxu1 %v4071_v24  ;;  %v4093_v6 = vpack.c.bf16 %v757_v20, %v753_v36  ;;  %v4095_v13 = vpack.c.bf16 %v759_v23, %v755_v8  ;;  %v761_v24 = vld [vmem:[#allocation13 + $0x2c8] sm:$0xff]  ;;  %v763_v35 = vld [vmem:[#allocation13 + $0x2d8] sm:$0xff]  ;;  %4769 = vst [vmem:[#allocation73_spill] sm:$0xff] %v4101_v4  ;;  %v762_v20 = vld [vmem:[#allocation13 + $0x2d0] sm:$0xff] }
 0x1ee   : > { %v766_v23 = vld [vmem:[#allocation13 + $0x2f0] sm:$0xff]  ;;  %v4123_v18 = vpack.c.bf16 %v772_v37, %v768_v49 }
 0x1ef   : > { %4766 = vst [vmem:[#allocation70_spill] sm:$0xff] %v4093_v6  ;;  %4767 = vst [vmem:[#allocation71_spill] sm:$0xff] %v4095_v13  ;;  %v4113_v45 = vpack.c.bf16 %v766_v23, %v762_v20  ;;  %v776_v20 = vld [vmem:[#allocation13 + $0x340] sm:$0xff] }
 0x1f0   : > { %2530 = vmatpush1.bf16.msra.mxu0 %v4075_v2  ;;  %2594 = vmatpush1.bf16.msra.mxu1 %v4077_v59  ;;  %v765_v2 = vld [vmem:[#allocation13 + $0x2e8] sm:$0xff]  ;;  %v767_v59 = vld [vmem:[#allocation13 + $0x2f8] sm:$0xff]  ;;  %4776 = vst [vmem:[#allocation80_spill] sm:$0xff] %v4123_v18  ;;  %v780_v23 = vld [vmem:[#allocation13 + $0x360] sm:$0xff] }
 0x1f1   : > { %2532 = vmatprep.subr.bf16.mxu0 %v4081_v48  ;;  %2596 = vmatprep.subr.bf16.mxu1 %v4083_v61  ;;  %v4105_v8 = vpack.c.bf16 %v765_v2, %v761_v24  ;;  %v4107_v36 = vpack.c.bf16 %v767_v59, %v763_v35  ;;  %v769_v61 = vld [vmem:[#allocation13 + $0x308] sm:$0xff]  ;;  %v771_v48 = vld [vmem:[#allocation13 + $0x318] sm:$0xff]  ;;  %4773 = vst [vmem:[#allocation77_spill] sm:$0xff] %v4113_v45  ;;  %v770_v2 = vld [vmem:[#allocation13 + $0x310] sm:$0xff] }
 0x1f2   : > { %v774_v59 = vld [vmem:[#allocation13 + $0x330] sm:$0xff]  ;;  %v4135_v49 = vpack.c.bf16 %v780_v23, %v776_v20 }
 0x1f3   : > { %4770 = vst [vmem:[#allocation74_spill] sm:$0xff] %v4105_v8  ;;  %4771 = vst [vmem:[#allocation75_spill] sm:$0xff] %v4107_v36  ;;  %v4125_v16 = vpack.c.bf16 %v774_v59, %v770_v2  ;;  %v784_v2 = vld [vmem:[#allocation13 + $0x380] sm:$0xff] }
 0x1f4   : > { %2534 = vmatpush1.bf16.msra.mxu0 %v4087_v26  ;;  %2598 = vmatpush1.bf16.msra.mxu1 %v4089_v29  ;;  %v773_v26 = vld [vmem:[#allocation13 + $0x328] sm:$0xff]  ;;  %v775_v29 = vld [vmem:[#allocation13 + $0x338] sm:$0xff]  ;;  %v788_v59 = vld [vmem:[#allocation13 + $0x3a0] sm:$0xff] }
 0x1f5   : > { %2536 = vmatprep.subr.bf16.mxu0 %v4093_v6  ;;  %2600 = vmatprep.subr.bf16.mxu1 %v4095_v13  ;;  %v4117_v35 = vpack.c.bf16 %v773_v26, %v769_v61  ;;  %v4119_v24 = vpack.c.bf16 %v775_v29, %v771_v48  ;;  %v777_v13 = vld [vmem:[#allocation13 + $0x348] sm:$0xff]  ;;  %v779_v6 = vld [vmem:[#allocation13 + $0x358] sm:$0xff]  ;;  %4777 = vst [vmem:[#allocation81_spill] sm:$0xff] %v4125_v16  ;;  %v778_v26 = vld [vmem:[#allocation13 + $0x350] sm:$0xff] }
 0x1f6   : > { %v782_v29 = vld [vmem:[#allocation13 + $0x370] sm:$0xff]  ;;  %v4147_v20 = vpack.c.bf16 %v788_v59, %v784_v2 }
 0x1f7   : > { %4774 = vst [vmem:[#allocation78_spill] sm:$0xff] %v4117_v35  ;;  %4775 = vst [vmem:[#allocation79_spill] sm:$0xff] %v4119_v24  ;;  %v4137_v37 = vpack.c.bf16 %v782_v29, %v778_v26  ;;  %v792_v26 = vld [vmem:[#allocation13 + $0x3c0] sm:$0xff]  ;;  %v798_v29 = vld [vmem:[#allocation13 + $0x3f0] sm:$0xff] }
 0x1f8   : > { %2538 = vmatpush1.bf16.msra.mxu0 %v4099_v3  ;;  %2602 = vmatpush1.bf16.msra.mxu1 %v4101_v4  ;;  %v781_v3 = vld [vmem:[#allocation13 + $0x368] sm:$0xff]  ;;  %v783_v4 = vld [vmem:[#allocation13 + $0x378] sm:$0xff] }
 0x1f9   : > { %2540 = vmatprep.subr.bf16.mxu0 %v4105_v8  ;;  %2604 = vmatprep.subr.bf16.mxu1 %v4107_v36  ;;  %v4129_v48 = vpack.c.bf16 %v781_v3, %v777_v13  ;;  %v4131_v61 = vpack.c.bf16 %v783_v4, %v779_v6  ;;  %v785_v36 = vld [vmem:[#allocation13 + $0x388] sm:$0xff]  ;;  %v787_v8 = vld [vmem:[#allocation13 + $0x398] sm:$0xff]  ;;  %v786_v3 = vld [vmem:[#allocation13 + $0x390] sm:$0xff] }
 0x1fa   : > { %v790_v4 = vld [vmem:[#allocation13 + $0x3b0] sm:$0xff] }
 0x1fb   : > { %v4149_v23 = vpack.c.bf16 %v790_v4, %v786_v3 }
 0x1fc   : > { %2542 = vmatpush1.bf16.msra.mxu0 %v4111_v42  ;;  %2606 = vmatpush1.bf16.msra.mxu1 %v4113_v45  ;;  %v789_v42 = vld [vmem:[#allocation13 + $0x3a8] sm:$0xff]  ;;  %v791_v45 = vld [vmem:[#allocation13 + $0x3b8] sm:$0xff] }
 0x1fd   : > { %2544 = vmatprep.subr.bf16.mxu0 %v4117_v35  ;;  %2608 = vmatprep.subr.bf16.mxu1 %v4119_v24  ;;  %v4141_v6 = vpack.c.bf16 %v789_v42, %v785_v36  ;;  %v4143_v13 = vpack.c.bf16 %v791_v45, %v787_v8  ;;  %v793_v24 = vld [vmem:[#allocation13 + $0x3c8] sm:$0xff]  ;;  %v795_v35 = vld [vmem:[#allocation13 + $0x3d8] sm:$0xff]  ;;  %v796_v42 = vld [vmem:[#allocation13 + $0x3e0] sm:$0xff] }
 0x1fe   : > { %v794_v45 = vld [vmem:[#allocation13 + $0x3d0] sm:$0xff]  ;;  %v4159_v2 = vpack.c.bf16 %v796_v42, %v792_v26 }
 0x1ff   : > { %v4161_v59 = vpack.c.bf16 %v798_v29, %v794_v45 }
 0x200   : > { %2546 = vmatpush1.bf16.msra.mxu0 %v4123_v18  ;;  %2610 = vmatpush1.bf16.msra.mxu1 %v4125_v16  ;;  %v797_v18 = vld [vmem:[#allocation13 + $0x3e8] sm:$0xff]  ;;  %v799_v16 = vld [vmem:[#allocation13 + $0x3f8] sm:$0xff] }
 0x201   : > { %2548 = vmatprep.subr.bf16.mxu0 %v4129_v48  ;;  %2612 = vmatprep.subr.bf16.mxu1 %v4131_v61  ;;  %v4153_v8 = vpack.c.bf16 %v797_v18, %v793_v24  ;;  %v4155_v36 = vpack.c.bf16 %v799_v16, %v795_v35  ;;  %v4778_v35 = vmov 0.0  }
 0x204   : > { %2550 = vmatpush1.bf16.msra.mxu0 %v4135_v49  ;;  %2614 = vmatpush1.bf16.msra.mxu1 %v4137_v37 }
 0x205   : > { %2552 = vmatprep.subr.bf16.mxu0 %v4141_v6  ;;  %2616 = vmatprep.subr.bf16.mxu1 %v4143_v13 }
 0x208   : > { %2554 = vmatpush1.bf16.msra.mxu0 %v4147_v20  ;;  %2618 = vmatpush1.bf16.msra.mxu1 %v4149_v23 }
 0x209   : > { %2556 = vmatprep.subr.bf16.mxu0 %v4153_v8  ;;  %2620 = vmatprep.subr.bf16.mxu1 %v4155_v36 }
 0x20c   : > { %2558 = vmatpush1.bf16.msra.mxu0 %v4159_v2  ;;  %2622 = vmatpush1.bf16.msra.mxu1 %v4161_v59 }
 0x20d   : > { %2624 = vmatprep.subr.bf16.mxu0 %v3797_v39  ;;  %2656 = vmatprep.subr.bf16.mxu1 %v3799_v43 }
 0x20f   : > { %1212 = vmatmul.mubr.f32.vlgmr.msra.gmra.mrb[8].mxu0 %v3981_v31  ;;  %1283 = vmatmul.mubr.f32.vlgmr.msra.gmra.mrb[8].mxu1 %v3981_v31 }
 0x210   : > { %2626 = vmatpush1.bf16.msra.mxu0 %v3802_v50  ;;  %2658 = vmatpush1.bf16.msra.mxu1 %v3805_v51 }
 0x211   : > { %2628 = vmatprep.subr.bf16.mxu0 %v3807_v52  ;;  %2660 = vmatprep.subr.bf16.mxu1 %v3810_v56 }
 0x212   : > { %1397 = vmatprep.mubr.f32.mxu0 %v4778_v35  ;;  %1468 = vmatprep.mubr.f32.mxu1 %v4778_v35 }
 0x214   : > { %2630 = vmatpush1.bf16.msra.mxu0 %v3813_v62  ;;  %2662 = vmatpush1.bf16.msra.mxu1 %v3818_v0 }
 0x215   : > { %2632 = vmatprep.subr.bf16.mxu0 %v3820_v1  ;;  %2664 = vmatprep.subr.bf16.mxu1 %v3823_v5 }
 0x218   : > { %2634 = vmatpush1.bf16.msra.mxu0 %v3828_v12  ;;  %2666 = vmatpush1.bf16.msra.mxu1 %v3833_v14 }
 0x219   : > { %2636 = vmatprep.subr.bf16.mxu0 %v3835_v15  ;;  %2668 = vmatprep.subr.bf16.mxu1 %v3838_v19 }
 0x21c   : > { %2638 = vmatpush1.bf16.msra.mxu0 %v3843_v25  ;;  %2670 = vmatpush1.bf16.msra.mxu1 %v3848_v27 }
 0x21d   : > { %2640 = vmatprep.subr.bf16.mxu0 %v3850_v28  ;;  %2672 = vmatprep.subr.bf16.mxu1 %v3853_v32 }
 0x220   : > { %2642 = vmatpush1.bf16.msra.mxu0 %v3858_v38  ;;  %2674 = vmatpush1.bf16.msra.mxu1 %v3862_v40 }
 0x221   : > { %2644 = vmatprep.subr.bf16.mxu0 %v3864_v41  ;;  %2676 = vmatprep.subr.bf16.mxu1 %v3867_v46 }
 0x224   : > { %2646 = vmatpush1.bf16.msra.mxu0 %v3872_v55  ;;  %2678 = vmatpush1.bf16.msra.mxu1 %v3876_v57 }
 0x225   : > { %2648 = vmatprep.subr.bf16.mxu0 %v3878_v58  ;;  %2680 = vmatprep.subr.bf16.mxu1 %v3881_v63 }
 0x228   : > { %2650 = vmatpush1.bf16.msra.mxu0 %v3884_v9  ;;  %2682 = vmatpush1.bf16.msra.mxu1 %v3888_v10 }
 0x229   : > { %2652 = vmatprep.subr.bf16.mxu0 %v3890_v11  ;;  %2684 = vmatprep.subr.bf16.mxu1 %v3893_v17 }
 0x22c   : > { %2654 = vmatpush1.bf16.msra.mxu0 %v3896_v21  ;;  %2686 = vmatpush1.bf16.msra.mxu1 %v3900_v22 }
 0x22d   : > { %2688 = vmatprep.subr.bf16.mxu0 %v3939_v30  ;;  %2752 = vmatprep.subr.bf16.mxu1 %v3941_v33 }
 0x2a2   : > { %v1046_v31 = vpop.f32.mrb[2].mxu0  ;;  %v1117_v24 = vpop.f32.mrb[2].mxu1 }
 0x2a3   : > { %v3137_v18 = vadd.f32 %v1046_v31, %v3954_v44  ;;  %v1048_v16 = vpop.f32.mrb[3].mxu0  ;;  %v1119_v3 = vpop.f32.mrb[3].mxu1  ;;  %v3145_v45 = vadd.f32 %v1117_v24, %v3964_v53 }
 0x2a4   : > { %v3138_v4 = vadd.f32 %v1048_v16, %v3959_v47  ;;  %v3146_v29 = vadd.f32 %v1119_v3, %v3971_v7 }
 0x2a5   : > { %v1289_v26 = vmul.f32 0.5, %v3137_v18 }
 0x2a6   : > { %v1293_v42 = vmul.f32 0.5, %v3138_v4  ;;  %v1298_v30 = vmul.f32 0.5, %v3146_v29  ;;  %v4789_v29 = vld [vmem:[#allocation44_spill] sm:$0xff] }
 0x2a7   : > { %3262 = vtanh.f32 %v1289_v26 }
 0x2a8   : > { %3264 = vtanh.f32 %v1293_v42 }
 0x2a9   : > { %3266 = vtanh.f32 %v3145_v45  ;;  %v4788_v45 = vld [vmem:[#allocation43_spill] sm:$0xff] }
 0x2aa   : > { %3268 = vtanh.f32 %v1298_v30  ;;  %v4784_v30 = vld [vmem:[#allocation39_spill] sm:$0xff] }
 0x2b1   : > { %v3263_v22 = vpop.eup %3262 }
 0x2b2   : > { %v3265_v33 = vpop.eup %3264  ;;  %v1291_v21 = vmul.f32 0.5, %v3263_v22  ;;  %v4783_v22 = vld [vmem:[#allocation38_spill] sm:$0xff] }
 0x2b3   : > { %v1295_v17 = vmul.f32 0.5, %v3265_v33  ;;  %v3267_v44 = vpop.eup %3266  ;;  %v4785_v33 = vld [vmem:[#allocation40_spill] sm:$0xff] }
 0x2b4   : > { %v1292_v31 = vadd.f32 0.5, %v1291_v21  ;;  %v3269_v24 = vpop.eup %3268  ;;  %v4782_v21 = vld [vmem:[#allocation37_spill] sm:$0xff] }
 0x2b5   : > { %v1296_v11 = vadd.f32 0.5, %v1295_v17  ;;  %v1300_v4 = vmul.f32 0.5, %v3269_v24  ;;  %v4779_v17 = vld [vmem:[#allocation33_spill] sm:$0xff]  ;;  %v4792_v24 = vld [vmem:[#allocation47_spill] sm:$0xff] }
 0x2b6   : > { %v1303_v10 = vmul.f32 %v3267_v44, %v1292_v31  ;;  %v4786_v44 = vld [vmem:[#allocation41_spill] sm:$0xff] }
 0x2b7   : > { %v1302_v18 = vmul.f32 %v1296_v11, %v3974_v54  ;;  %v1301_v26 = vadd.f32 0.5, %v1300_v4  ;;  %v4781_v11 = vld [vmem:[#allocation36_spill] sm:$0xff]  ;;  %v4787_v54 = vld [vmem:[#allocation42_spill] sm:$0xff]  ;;  %v4790_v31 = vld [vmem:[#allocation45_spill] sm:$0xff] }
 0x2b8   : > { %v4793_v4 = vld [vmem:[#allocation48_spill] sm:$0xff] }
 0x2b9   : > { %v4210_v16 = vadd.f32 %v1303_v10, %v1302_v18  ;;  %v4780_v10 = vld [vmem:[#allocation35_spill] sm:$0xff]  ;;  %v4791_v18 = vld [vmem:[#allocation46_spill] sm:$0xff] }
 0x2bb   : > { %3270 = vtanh.f32 %v4210_v16 }
 0x2c5   : > { %v3271_v3 = vpop.eup %3270 }
 0x2c6   : > { %v4213_v42 = vmul.f32 %v3271_v3, %v1301_v26  ;;  %v4794_v26 = vld [vmem:[#allocation49_spill] sm:$0xff]  ;;  %v4795_v3 = vld [vmem:[#allocation50_spill] sm:$0xff] }
 0x2c8   : > { %1398 = vmatmul.mubr.f32.vlgmr.msra.gmra.mrb[4].mxu0 %v4213_v42  ;;  %1469 = vmatmul.mubr.f32.vlgmr.msra.gmra.mrb[4].mxu1 %v4213_v42 }
 0x2c9   : > { %2690 = vmatpush1.bf16.msra.mxu0 %v3977_v60  ;;  %2754 = vmatpush1.bf16.msra.mxu1 %v4779_v17  ;;  %v4814_v60 = vld [vmem:[#allocation62_spill] sm:$0xff] }
 0x2ca   : > { %2692 = vmatprep.subr.bf16.mxu0 %v3983_v34  ;;  %2756 = vmatprep.subr.bf16.mxu1 %v4780_v10 }
 0x2cd   : > { %2694 = vmatpush1.bf16.msra.mxu0 %v4781_v11  ;;  %2758 = vmatpush1.bf16.msra.mxu1 %v4782_v21  ;;  %v4808_v21 = vld [vmem:[#allocation58_spill] sm:$0xff] }
 0x2ce   : > { %2696 = vmatprep.subr.bf16.mxu0 %v4783_v22  ;;  %2760 = vmatprep.subr.bf16.mxu1 %v4784_v30  ;;  %v4807_v30 = vld [vmem:[#allocation57_spill] sm:$0xff] }
 0x2d1   : > { %2698 = vmatpush1.bf16.msra.mxu0 %v4785_v33  ;;  %2762 = vmatpush1.bf16.msra.mxu1 %v4786_v44  ;;  %v4796_v33 = vld [vmem:[#allocation51_spill] sm:$0xff] }
 0x2d2   : > { %2700 = vmatprep.subr.bf16.mxu0 %v4787_v54  ;;  %2764 = vmatprep.subr.bf16.mxu1 %v4788_v45  ;;  %v800_v45 = vld [vmem:[%s4565_s5] sm:$0xf] }
 0x2d3   : > { %v4797_v54 = vld [vmem:[#allocation52_spill] sm:$0xff] }
 0x2d5   : > { %2702 = vmatpush1.bf16.msra.mxu0 %v4789_v29  ;;  %2766 = vmatpush1.bf16.msra.mxu1 %v4790_v31  ;;  %v4798_v29 = vld [vmem:[#allocation53_spill] sm:$0xff]  ;;  %v4799_v31 = vld [vmem:[#allocation54_spill] sm:$0xff] }
 0x2d6   : > { %2704 = vmatprep.subr.bf16.mxu0 %v4791_v18  ;;  %2768 = vmatprep.subr.bf16.mxu1 %v4792_v24  ;;  %v4800_v18 = vld [vmem:[#allocation55_spill] sm:$0xff] }
 0x2d7   : > { %v4801_v24 = vld [vmem:[#allocation27_spill] sm:$0xff] }
 0x2d9   : > { %2706 = vmatpush1.bf16.msra.mxu0 %v4793_v4  ;;  %2770 = vmatpush1.bf16.msra.mxu1 %v4794_v26  ;;  %v4802_v4 = vsub.s32 0, %v4801_v24 }
 0x2da   : > { %2708 = vmatprep.subr.bf16.mxu0 %v4795_v3  ;;  %2772 = vmatprep.subr.bf16.mxu1 %v4796_v33  ;;  %v4804_v3 = vsub.s32 1, %v4801_v24  ;;  %v4806_v33 = vld [vmem:[#allocation56_spill] sm:$0xff] }
 0x2db   : > { %v4246_v44 = vrot.slane %v800_v45, %v4802_v4 }
 0x2dc   : > { %v4250_v26 = vrot.slane %v800_v45, %v4804_v3 }
 0x2dd   : > { %2710 = vmatpush1.bf16.msra.mxu0 %v4797_v54  ;;  %2774 = vmatpush1.bf16.msra.mxu1 %v4798_v29  ;;  %4803 = vst [vmem:[#allocation27_spill] sm:$0xff] %v4246_v44  ;;  %v4809_v29 = vld [vmem:[#allocation59_spill] sm:$0xff] }
 0x2de   : > { %2712 = vmatprep.subr.bf16.mxu0 %v4799_v31  ;;  %2776 = vmatprep.subr.bf16.mxu1 %v4800_v18  ;;  %4805 = vst [vmem:[#allocation82_spill] sm:$0xff] %v4250_v26  ;;  %v4810_v31 = vsub.s32 2, %v4801_v24 }
 0x2e0   : > { %v4259_v4 = vrot.slane %v800_v45, %v4810_v31  ;;  %v4816_v31 = vsub.s32 3, %v4801_v24 }
 0x2e1   : > { %2714 = vmatpush1.bf16.msra.mxu0 %v4806_v33  ;;  %2778 = vmatpush1.bf16.msra.mxu1 %v4807_v30  ;;  %v4812_v33 = vld [vmem:[#allocation60_spill] sm:$0xff]  ;;  %v4813_v30 = vld [vmem:[#allocation61_spill] sm:$0xff] }
 0x2e2   : > { %v1213_v22 = vpop.f32.mrb[8].mxu0  ;;  %v1284_v54 = vpop.f32.mrb[8].mxu1  ;;  %2716 = vmatprep.subr.bf16.mxu0 %v4808_v21  ;;  %2780 = vmatprep.subr.bf16.mxu1 %v4809_v29  ;;  %4811 = vst [vmem:[#allocation83_spill] sm:$0xff] %v4259_v4  ;;  %v4815_v21 = vld [vmem:[#allocation63_spill] sm:$0xff]  ;;  %v4818_v29 = vld [vmem:[#allocation64_spill] sm:$0xff] }
 0x2e3   : > { %v1214_v18 = vadd.f32 %v1213_v22, %v4246_v44  ;;  %v1215_v11 = vpop.f32.mrb[9].mxu0  ;;  %v1286_v10 = vpop.f32.mrb[9].mxu1  ;;  %v1285_v22 = vadd.f32 %v1284_v54, %v4259_v4  ;;  %v4269_v44 = vrot.slane %v800_v45, %v4816_v31  ;;  %v4824_v54 = vld [vmem:[#allocation70_spill] sm:$0xff]  ;;  %v4825_v45 = vld [vmem:[#allocation71_spill] sm:$0xff]  ;;  %v4826_v31 = vld [vmem:[#allocation72_spill] sm:$0xff] }
 0x2e4   : > { %v1216_v3 = vadd.f32 %v1215_v11, %v4250_v26  ;;  %v4819_v11 = vld [vmem:[#allocation65_spill] sm:$0xff]  ;;  %v4830_v4 = vld [vmem:[#allocation76_spill] sm:$0xff] }
 0x2e5   : > { %v1307_v34 = vmul.f32 0.5, %v1214_v18  ;;  %2718 = vmatpush1.bf16.msra.mxu0 %v4812_v33  ;;  %2782 = vmatpush1.bf16.msra.mxu1 %v4813_v30  ;;  %4817 = vst [vmem:[#allocation60_spill] sm:$0xff] %v4269_v44  ;;  %v4820_v18 = vld [vmem:[#allocation66_spill] sm:$0xff]  ;;  %v4821_v30 = vld [vmem:[#allocation67_spill] sm:$0xff] }
 0x2e6   : > { %v1311_v17 = vmul.f32 0.5, %v1216_v3  ;;  %2720 = vmatprep.subr.bf16.mxu0 %v4814_v60  ;;  %2784 = vmatprep.subr.bf16.mxu1 %v4815_v21  ;;  %v1287_v3 = vadd.f32 %v1286_v10, %v4269_v44  ;;  %v4822_v21 = vld [vmem:[#allocation68_spill] sm:$0xff] }
 0x2e7   : > { %3272 = vtanh.f32 %v1307_v34  ;;  %v4823_v34 = vld [vmem:[#allocation69_spill] sm:$0xff] }
 0x2e8   : > { %3274 = vtanh.f32 %v1311_v17  ;;  %v1316_v17 = vmul.f32 0.5, %v1287_v3  ;;  %v4831_v3 = vld [vmem:[#allocation77_spill] sm:$0xff] }
 0x2e9   : > { %2722 = vmatpush1.bf16.msra.mxu0 %v4818_v29  ;;  %2786 = vmatpush1.bf16.msra.mxu1 %v4819_v11  ;;  %3276 = vtanh.f32 %v1285_v22  ;;  %v4827_v11 = vld [vmem:[#allocation73_spill] sm:$0xff]  ;;  %v4829_v22 = vld [vmem:[#allocation75_spill] sm:$0xff] }
 0x2ea   : > { %2724 = vmatprep.subr.bf16.mxu0 %v4820_v18  ;;  %2788 = vmatprep.subr.bf16.mxu1 %v4821_v30  ;;  %v4828_v30 = vld [vmem:[#allocation74_spill] sm:$0xff]  ;;  %3278 = vtanh.f32 %v1316_v17 }
 0x2ed   : > { %2726 = vmatpush1.bf16.msra.mxu0 %v4822_v21  ;;  %2790 = vmatpush1.bf16.msra.mxu1 %v4823_v34  ;;  %v804_v34 = vld [vmem:[#allocation6] sm:$0xff] }
 0x2ee   : > { %2728 = vmatprep.subr.bf16.mxu0 %v4824_v54  ;;  %2792 = vmatprep.subr.bf16.mxu1 %v4825_v45 }
 0x2f1   : > { %v3273_v24 = vpop.eup %3272  ;;  %2730 = vmatpush1.bf16.msra.mxu0 %v4826_v31  ;;  %2794 = vmatpush1.bf16.msra.mxu1 %v4827_v11  ;;  %v4832_v31 = vld [vmem:[#allocation78_spill] sm:$0xff]  ;;  %v4833_v11 = vld [vmem:[#allocation79_spill] sm:$0xff] }
 0x2f2   : > { %v3275_v18 = vpop.eup %3274  ;;  %v1309_v29 = vmul.f32 0.5, %v3273_v24  ;;  %2732 = vmatprep.subr.bf16.mxu0 %v4828_v30  ;;  %2796 = vmatprep.subr.bf16.mxu1 %v4829_v22  ;;  %v4834_v30 = vld [vmem:[#allocation80_spill] sm:$0xff] }
 0x2f3   : > { %v1313_v10 = vmul.f32 0.5, %v3275_v18  ;;  %v3277_v44 = vpop.eup %3276  ;;  %v4835_v18 = vld [vmem:[#allocation81_spill] sm:$0xff] }
 0x2f4   : > { %v1310_v21 = vadd.f32 0.5, %v1309_v29  ;;  %v3279_v29 = vpop.eup %3278 }
 0x2f5   : > { %v1314_v54 = vadd.f32 0.5, %v1313_v10  ;;  %2734 = vmatpush1.bf16.msra.mxu0 %v4830_v4  ;;  %2798 = vmatpush1.bf16.msra.mxu1 %v4831_v3 }
 0x2f6   : > { %v1321_v45 = vmul.f32 %v3277_v44, %v1310_v21  ;;  %2736 = vmatprep.subr.bf16.mxu0 %v4832_v31  ;;  %2800 = vmatprep.subr.bf16.mxu1 %v4833_v11  ;;  %v1318_v21 = vmul.f32 0.5, %v3279_v29 }
 0x2f7   : > { %v1320_v24 = vmul.f32 %v1314_v54, %v804_v34 }
 0x2f8   : > { %v1319_v44 = vadd.f32 0.5, %v1318_v21  ;;  %v4845_v21 = vld [vmem:[#allocation32_spill] sm:$0xff] }
 0x2f9   : > { %v4288_v60 = vadd.f32 %v1321_v45, %v1320_v24  ;;  %2738 = vmatpush1.bf16.msra.mxu0 %v4834_v30  ;;  %2802 = vmatpush1.bf16.msra.mxu1 %v4835_v18 }
 0x2fa   : > { %2740 = vmatprep.subr.bf16.mxu0 %v4129_v48  ;;  %2804 = vmatprep.subr.bf16.mxu1 %v4131_v61 }
 0x2fb   : > { %3280 = vtanh.f32 %v4288_v60 }
 0x2fd   : > { %2742 = vmatpush1.bf16.msra.mxu0 %v4135_v49  ;;  %2806 = vmatpush1.bf16.msra.mxu1 %v4137_v37 }
 0x2fe   : > { %2744 = vmatprep.subr.bf16.mxu0 %v4141_v6  ;;  %2808 = vmatprep.subr.bf16.mxu1 %v4143_v13 }
 0x301   : > { %2746 = vmatpush1.bf16.msra.mxu0 %v4147_v20  ;;  %2810 = vmatpush1.bf16.msra.mxu1 %v4149_v23 }
 0x302   : > { %2748 = vmatprep.subr.bf16.mxu0 %v4153_v8  ;;  %2812 = vmatprep.subr.bf16.mxu1 %v4155_v36 }
 0x305   : > { %v3281_v34 = vpop.eup %3280  ;;  %2750 = vmatpush1.bf16.msra.mxu0 %v4159_v2  ;;  %2814 = vmatpush1.bf16.msra.mxu1 %v4161_v59 }
 0x306   : > { %v1324_v54 = vmul.f32 %v3281_v34, %v1319_v44  ;;  %2816 = vmatprep.subr.bf16.mxu0 %v3797_v39  ;;  %2848 = vmatprep.subr.bf16.mxu1 %v3799_v43  ;;  %v4836_v39 = vld [vmem:[#allocation20_spill] sm:$0xff]  ;;  %v4837_v43 = vld [vmem:[#allocation21_spill] sm:$0xff]  ;;  %v4847_v34 = vld [vmem:[#allocation34_spill] sm:$0xff] }
 0x307   : > { %v4846_v44 = vld [vmem:[#allocation33_spill] sm:$0xff] }
 0x308   : > { %1325 = vst [vmem:[%s3791_s29] sm:$0xff] %v1324_v54  ;;  %1543 = vmatprep.mubr.f32.mxu0 %v1324_v54  ;;  %1614 = vmatprep.mubr.f32.mxu1 %v1324_v54  ;;  %v4849_v54 = vld [vmem:[#allocation36_spill] sm:$0xff] }
 0x309   : > { %1544 = vmatmul.mubr.f32.vlgmr.msra.gmra.mrb[10].mxu0 %v4213_v42  ;;  %1615 = vmatmul.mubr.f32.vlgmr.msra.gmra.mrb[10].mxu1 %v4213_v42 }
 0x30a   : > { %2818 = vmatpush1.bf16.msra.mxu0 %v3802_v50  ;;  %2850 = vmatpush1.bf16.msra.mxu1 %v3805_v51  ;;  %v4838_v50 = vld [vmem:[#allocation22_spill] sm:$0xff]  ;;  %v4839_v51 = vld [vmem:[#allocation23_spill] sm:$0xff] }
 0x30b   : > { %2820 = vmatprep.subr.bf16.mxu0 %v3807_v52  ;;  %2852 = vmatprep.subr.bf16.mxu1 %v3810_v56  ;;  %v4840_v52 = vld [vmem:[#allocation24_spill] sm:$0xff]  ;;  %v4841_v56 = vld [vmem:[#allocation25_spill] sm:$0xff] }
 0x30c   : > { %1730 = vmatprep.mubr.f32.mxu0 %v4778_v35  ;;  %1801 = vmatprep.mubr.f32.mxu1 %v4778_v35 }
 0x30e   : > { %2822 = vmatpush1.bf16.msra.mxu0 %v3813_v62  ;;  %2854 = vmatpush1.bf16.msra.mxu1 %v3818_v0  ;;  %v4842_v62 = vld [vmem:[#allocation26_spill] sm:$0xff] }
 0x30f   : > { %2824 = vmatprep.subr.bf16.mxu0 %v3820_v1  ;;  %2856 = vmatprep.subr.bf16.mxu1 %v3823_v5  ;;  %v4843_v5 = vld [vmem:[#allocation28_spill] sm:$0xff] }
 0x312   : > { %2826 = vmatpush1.bf16.msra.mxu0 %v3828_v12  ;;  %2858 = vmatpush1.bf16.msra.mxu1 %v3833_v14 }
 0x313   : > { %2828 = vmatprep.subr.bf16.mxu0 %v3835_v15  ;;  %2860 = vmatprep.subr.bf16.mxu1 %v3838_v19 }
 0x316   : > { %2830 = vmatpush1.bf16.msra.mxu0 %v3843_v25  ;;  %2862 = vmatpush1.bf16.msra.mxu1 %v3848_v27 }
 0x317   : > { %2832 = vmatprep.subr.bf16.mxu0 %v3850_v28  ;;  %2864 = vmatprep.subr.bf16.mxu1 %v3853_v32 }
 0x31a   : > { %2834 = vmatpush1.bf16.msra.mxu0 %v3858_v38  ;;  %2866 = vmatpush1.bf16.msra.mxu1 %v3862_v40 }
 0x31b   : > { %2836 = vmatprep.subr.bf16.mxu0 %v3864_v41  ;;  %2868 = vmatprep.subr.bf16.mxu1 %v3867_v46 }
 0x31e   : > { %2838 = vmatpush1.bf16.msra.mxu0 %v3872_v55  ;;  %2870 = vmatpush1.bf16.msra.mxu1 %v3876_v57 }
 0x31f   : > { %2840 = vmatprep.subr.bf16.mxu0 %v3878_v58  ;;  %2872 = vmatprep.subr.bf16.mxu1 %v3881_v63 }
 0x322   : > { %2842 = vmatpush1.bf16.msra.mxu0 %v3884_v9  ;;  %2874 = vmatpush1.bf16.msra.mxu1 %v4836_v39  ;;  %v4850_v39 = vld [vmem:[#allocation37_spill] sm:$0xff] }
 0x323   : > { %2844 = vmatprep.subr.bf16.mxu0 %v4837_v43  ;;  %2876 = vmatprep.subr.bf16.mxu1 %v4838_v50  ;;  %v4851_v43 = vld [vmem:[#allocation38_spill] sm:$0xff]  ;;  %v4852_v50 = vld [vmem:[#allocation39_spill] sm:$0xff] }
 0x326   : > { %2846 = vmatpush1.bf16.msra.mxu0 %v4839_v51  ;;  %2878 = vmatpush1.bf16.msra.mxu1 %v4840_v52  ;;  %v4853_v51 = vld [vmem:[#allocation40_spill] sm:$0xff]  ;;  %v4854_v52 = vld [vmem:[#allocation41_spill] sm:$0xff] }
 0x327   : > { %2880 = vmatprep.subr.bf16.mxu0 %v4841_v56  ;;  %2944 = vmatprep.subr.bf16.mxu1 %v4842_v62 }
 0x39b   : > { %v1399_v0 = vpop.f32.mrb[4].mxu0  ;;  %v1470_v1 = vpop.f32.mrb[4].mxu1 }
 0x39c   : > { %v3139_v12 = vadd.f32 %v1399_v0, %v4843_v5  ;;  %v1401_v14 = vpop.f32.mrb[5].mxu0  ;;  %v1472_v15 = vpop.f32.mrb[5].mxu1  ;;  %v3147_v28 = vadd.f32 %v1470_v1, %v3964_v53  ;;  %v4855_v0 = vld [vmem:[#allocation42_spill] sm:$0xff]  ;;  %v4856_v1 = vld [vmem:[#allocation43_spill] sm:$0xff] }
 0x39d   : > { %v3140_v19 = vadd.f32 %v1401_v14, %v3959_v47  ;;  %v3148_v32 = vadd.f32 %v1472_v15, %v3971_v7  ;;  %v4858_v14 = vld [vmem:[#allocation45_spill] sm:$0xff]  ;;  %v4859_v15 = vld [vmem:[#allocation46_spill] sm:$0xff]  ;;  %v4876_v5 = vld [vmem:[#allocation63_spill] sm:$0xff] }
 0x39e   : > { %v1621_v25 = vmul.f32 0.5, %v3139_v12  ;;  %v4857_v12 = vld [vmem:[#allocation44_spill] sm:$0xff]  ;;  %v4874_v7 = vld [vmem:[#allocation61_spill] sm:$0xff]  ;;  %v4875_v47 = vld [vmem:[#allocation62_spill] sm:$0xff] }
 0x39f   : > { %v1625_v27 = vmul.f32 0.5, %v3140_v19  ;;  %v1630_v38 = vmul.f32 0.5, %v3148_v32  ;;  %v4860_v19 = vld [vmem:[#allocation47_spill] sm:$0xff] }
 0x3a0   : > { %3282 = vtanh.f32 %v1621_v25  ;;  %v4861_v25 = vld [vmem:[#allocation48_spill] sm:$0xff]  ;;  %v4864_v32 = vld [vmem:[#allocation51_spill] sm:$0xff] }
 0x3a1   : > { %3284 = vtanh.f32 %v1625_v27  ;;  %v4862_v27 = vld [vmem:[#allocation49_spill] sm:$0xff] }
 0x3a2   : > { %3286 = vtanh.f32 %v3147_v28  ;;  %v4863_v28 = vld [vmem:[#allocation50_spill] sm:$0xff] }
 0x3a3   : > { %3288 = vtanh.f32 %v1630_v38  ;;  %v4865_v38 = vld [vmem:[#allocation52_spill] sm:$0xff] }
 0x3aa   : > { %v3283_v40 = vpop.eup %3282 }
 0x3ab   : > { %v3285_v41 = vpop.eup %3284  ;;  %v1623_v46 = vmul.f32 0.5, %v3283_v40  ;;  %v4866_v40 = vld [vmem:[#allocation53_spill] sm:$0xff] }
 0x3ac   : > { %v1627_v55 = vmul.f32 0.5, %v3285_v41  ;;  %v3287_v58 = vpop.eup %3286  ;;  %v4867_v41 = vld [vmem:[#allocation54_spill] sm:$0xff] }
 0x3ad   : > { %v1624_v57 = vadd.f32 0.5, %v1623_v46  ;;  %v3289_v45 = vpop.eup %3288  ;;  %v4868_v46 = vld [vmem:[#allocation55_spill] sm:$0xff] }
 0x3ae   : > { %v1628_v63 = vadd.f32 0.5, %v1627_v55  ;;  %v1632_v17 = vmul.f32 0.5, %v3289_v45  ;;  %v4869_v55 = vld [vmem:[#allocation56_spill] sm:$0xff]  ;;  %v4873_v45 = vld [vmem:[#allocation27_spill] sm:$0xff] }
 0x3af   : > { %v1635_v9 = vmul.f32 %v3287_v58, %v1624_v57  ;;  %v4870_v57 = vld [vmem:[#allocation57_spill] sm:$0xff]  ;;  %v4871_v58 = vld [vmem:[#allocation58_spill] sm:$0xff] }
 0x3b0   : > { %v1634_v35 = vmul.f32 %v1628_v63, %v4210_v16  ;;  %v1633_v10 = vadd.f32 0.5, %v1632_v17  ;;  %v4848_v16 = vld [vmem:[#allocation35_spill] sm:$0xff] }
 0x3b1   : > { %v4872_v63 = vld [vmem:[#allocation59_spill] sm:$0xff] }
 0x3b2   : > { %v4349_v42 = vadd.f32 %v1635_v9, %v1634_v35 }
 0x3b4   : > { %4844 = vst [vmem:[#allocation75_spill] sm:$0xff] %v4349_v42  ;;  %3290 = vtanh.f32 %v4349_v42 }
 0x3be   : > { %v3291_v24 = vpop.eup %3290 }
 0x3bf   : > { %v4352_v29 = vmul.f32 %v3291_v24, %v1633_v10 }
 0x3c1   : > { %1731 = vmatmul.mubr.f32.vlgmr.msra.gmra.mrb[6].mxu0 %v4352_v29  ;;  %1802 = vmatmul.mubr.f32.vlgmr.msra.gmra.mrb[6].mxu1 %v4352_v29 }
 0x3c2   : > { %2882 = vmatpush1.bf16.msra.mxu0 %v4845_v21  ;;  %2946 = vmatpush1.bf16.msra.mxu1 %v4846_v44 }
 0x3c3   : > { %2884 = vmatprep.subr.bf16.mxu0 %v4847_v34  ;;  %2948 = vmatprep.subr.bf16.mxu1 %v4848_v16 }
 0x3c6   : > { %2886 = vmatpush1.bf16.msra.mxu0 %v4849_v54  ;;  %2950 = vmatpush1.bf16.msra.mxu1 %v4850_v39 }
 0x3c7   : > { %2888 = vmatprep.subr.bf16.mxu0 %v4851_v43  ;;  %2952 = vmatprep.subr.bf16.mxu1 %v4852_v50 }
 0x3ca   : > { %2890 = vmatpush1.bf16.msra.mxu0 %v4853_v51  ;;  %2954 = vmatpush1.bf16.msra.mxu1 %v4854_v52 }
 0x3cb   : > { %2892 = vmatprep.subr.bf16.mxu0 %v4855_v0  ;;  %2956 = vmatprep.subr.bf16.mxu1 %v4856_v1 }
 0x3ce   : > { %2894 = vmatpush1.bf16.msra.mxu0 %v4857_v12  ;;  %2958 = vmatpush1.bf16.msra.mxu1 %v4858_v14 }
 0x3cf   : > { %2896 = vmatprep.subr.bf16.mxu0 %v4859_v15  ;;  %2960 = vmatprep.subr.bf16.mxu1 %v4860_v19 }
 0x3d2   : > { %2898 = vmatpush1.bf16.msra.mxu0 %v4861_v25  ;;  %2962 = vmatpush1.bf16.msra.mxu1 %v4862_v27 }
 0x3d3   : > { %2900 = vmatprep.subr.bf16.mxu0 %v4863_v28  ;;  %2964 = vmatprep.subr.bf16.mxu1 %v4864_v32 }
 0x3d6   : > { %2902 = vmatpush1.bf16.msra.mxu0 %v4865_v38  ;;  %2966 = vmatpush1.bf16.msra.mxu1 %v4866_v40 }
 0x3d7   : > { %2904 = vmatprep.subr.bf16.mxu0 %v4867_v41  ;;  %2968 = vmatprep.subr.bf16.mxu1 %v4868_v46 }
 0x3da   : > { %2906 = vmatpush1.bf16.msra.mxu0 %v4869_v55  ;;  %2970 = vmatpush1.bf16.msra.mxu1 %v4870_v57  ;;  %v4878_v55 = vld [vmem:[#allocation64_spill] sm:$0xff] }
 0x3db   : > { %2908 = vmatprep.subr.bf16.mxu0 %v4871_v58  ;;  %2972 = vmatprep.subr.bf16.mxu1 %v4872_v63  ;;  %v4877_v63 = vld [vmem:[#allocation83_spill] sm:$0xff] }
 0x3dc   : > { %v1545_v9 = vpop.f32.mrb[10].mxu0  ;;  %v1616_v35 = vpop.f32.mrb[10].mxu1 }
 0x3dd   : > { %v1546_v17 = vadd.f32 %v1545_v9, %v4873_v45  ;;  %v1547_v10 = vpop.f32.mrb[11].mxu0  ;;  %v1618_v24 = vpop.f32.mrb[11].mxu1  ;;  %v1617_v57 = vadd.f32 %v1616_v35, %v4877_v63  ;;  %v4879_v9 = vld [vmem:[#allocation65_spill] sm:$0xff]  ;;  %v4880_v45 = vld [vmem:[#allocation66_spill] sm:$0xff]  ;;  %v4887_v35 = vld [vmem:[#allocation72_spill] sm:$0xff] }
 0x3de   : > { %v1548_v42 = vadd.f32 %v1547_v10, %v4250_v26  ;;  %2910 = vmatpush1.bf16.msra.mxu0 %v4812_v33  ;;  %2974 = vmatpush1.bf16.msra.mxu1 %v4874_v7  ;;  %v4881_v10 = vld [vmem:[#allocation67_spill] sm:$0xff]  ;;  %v4882_v26 = vld [vmem:[#allocation60_spill] sm:$0xff]  ;;  %v4888_v63 = vld [vmem:[#allocation73_spill] sm:$0xff] }
 0x3df   : > { %v1639_v53 = vmul.f32 0.5, %v1546_v17  ;;  %2912 = vmatprep.subr.bf16.mxu0 %v4875_v47  ;;  %2976 = vmatprep.subr.bf16.mxu1 %v4876_v5  ;;  %v1619_v17 = vadd.f32 %v1618_v24, %v4882_v26  ;;  %v4883_v7 = vld [vmem:[#allocation68_spill] sm:$0xff]  ;;  %v4884_v47 = vld [vmem:[#allocation69_spill] sm:$0xff] }
 0x3e0   : > { %v1643_v58 = vmul.f32 0.5, %v1548_v42  ;;  %v4885_v42 = vld [vmem:[#allocation70_spill] sm:$0xff] }
 0x3e1   : > { %3292 = vtanh.f32 %v1639_v53  ;;  %v4886_v53 = vld [vmem:[#allocation71_spill] sm:$0xff] }
 0x3e2   : > { %3294 = vtanh.f32 %v1643_v58  ;;  %2914 = vmatpush1.bf16.msra.mxu0 %v4878_v55  ;;  %2978 = vmatpush1.bf16.msra.mxu1 %v4879_v9  ;;  %v1648_v58 = vmul.f32 0.5, %v1619_v17 }
 0x3e3   : > { %2916 = vmatprep.subr.bf16.mxu0 %v4880_v45  ;;  %2980 = vmatprep.subr.bf16.mxu1 %v4881_v10  ;;  %3296 = vtanh.f32 %v1617_v57  ;;  %v4889_v45 = vld [vmem:[#allocation74_spill] sm:$0xff] }
 0x3e4   : > { %3298 = vtanh.f32 %v1648_v58  ;;  %v4909_v58 = vld [vmem:[#allocation83_spill] sm:$0xff] }
 0x3e6   : > { %2918 = vmatpush1.bf16.msra.mxu0 %v4883_v7  ;;  %2982 = vmatpush1.bf16.msra.mxu1 %v4884_v47 }
 0x3e7   : > { %2920 = vmatprep.subr.bf16.mxu0 %v4885_v42  ;;  %2984 = vmatprep.subr.bf16.mxu1 %v4886_v53 }
 0x3ea   : > { %2922 = vmatpush1.bf16.msra.mxu0 %v4887_v35  ;;  %2986 = vmatpush1.bf16.msra.mxu1 %v4888_v63 }
 0x3eb   : > { %v3293_v9 = vpop.eup %3292  ;;  %2924 = vmatprep.subr.bf16.mxu0 %v4889_v45  ;;  %2988 = vmatprep.subr.bf16.mxu1 %v4829_v22 }
 0x3ec   : > { %v3295_v57 = vpop.eup %3294  ;;  %v1641_v24 = vmul.f32 0.5, %v3293_v9 }
 0x3ed   : > { %v1645_v26 = vmul.f32 0.5, %v3295_v57  ;;  %v3297_v53 = vpop.eup %3296  ;;  %v4910_v57 = vld [vmem:[#allocation60_spill] sm:$0xff] }
 0x3ee   : > { %v1642_v7 = vadd.f32 0.5, %v1641_v24  ;;  %2926 = vmatpush1.bf16.msra.mxu0 %v4830_v4  ;;  %2990 = vmatpush1.bf16.msra.mxu1 %v4831_v3 }
 0x3ef   : > { %v1646_v17 = vadd.f32 0.5, %v1645_v26  ;;  %2928 = vmatprep.subr.bf16.mxu0 %v4832_v31  ;;  %2992 = vmatprep.subr.bf16.mxu1 %v4833_v11 }
 0x3f0   : > { %v1653_v63 = vmul.f32 %v3297_v53, %v1642_v7  ;;  %v3299_v7 = vpop.eup %3298 }
 0x3f1   : > { %v1652_v45 = vmul.f32 %v1646_v17, %v4288_v60  ;;  %v1650_v60 = vmul.f32 0.5, %v3299_v7 }
 0x3f2   : > { %2930 = vmatpush1.bf16.msra.mxu0 %v4834_v30  ;;  %2994 = vmatpush1.bf16.msra.mxu1 %v4835_v18 }
 0x3f3   : > { %v4411_v9 = vadd.f32 %v1653_v63, %v1652_v45  ;;  %2932 = vmatprep.subr.bf16.mxu0 %v4129_v48  ;;  %2996 = vmatprep.subr.bf16.mxu1 %v4131_v61  ;;  %v1651_v26 = vadd.f32 0.5, %v1650_v60 }
 0x3f5   : > { %3300 = vtanh.f32 %v4411_v9 }
 0x3f6   : > { %2934 = vmatpush1.bf16.msra.mxu0 %v4135_v49  ;;  %2998 = vmatpush1.bf16.msra.mxu1 %v4137_v37 }
 0x3f7   : > { %2936 = vmatprep.subr.bf16.mxu0 %v4141_v6  ;;  %3000 = vmatprep.subr.bf16.mxu1 %v4143_v13 }
 0x3fa   : > { %2938 = vmatpush1.bf16.msra.mxu0 %v4147_v20  ;;  %3002 = vmatpush1.bf16.msra.mxu1 %v4149_v23 }
 0x3fb   : > { %2940 = vmatprep.subr.bf16.mxu0 %v4153_v8  ;;  %3004 = vmatprep.subr.bf16.mxu1 %v4155_v36 }
 0x3fe   : > { %2942 = vmatpush1.bf16.msra.mxu0 %v4159_v2  ;;  %3006 = vmatpush1.bf16.msra.mxu1 %v4161_v59 }
 0x3ff   : > { %v3301_v63 = vpop.eup %3300  ;;  %3008 = vmatprep.subr.bf16.mxu0 %v4841_v56  ;;  %3072 = vmatprep.subr.bf16.mxu1 %v4842_v62  ;;  %v4890_v56 = vld [vmem:[#allocation56_spill] sm:$0xff]  ;;  %v4891_v62 = vld [vmem:[#allocation57_spill] sm:$0xff] }
 0x400   : > { %v1656_v45 = vmul.f32 %v3301_v63, %v1651_v26 }
 0x402   : > { %2293 = vst [vmem:[%s3791_s29 + $0x8] sm:$0xff] %v1656_v45  ;;  %1876 = vmatprep.mubr.f32.mxu0 %v1656_v45  ;;  %1947 = vmatprep.mubr.f32.mxu1 %v1656_v45 }
 0x403   : > { %1877 = vmatmul.mubr.f32.vlgmr.msra.gmra.mrb[12].mxu0 %v4352_v29  ;;  %1948 = vmatmul.mubr.f32.vlgmr.msra.gmra.mrb[12].mxu1 %v4352_v29  ;;  %v4892_v29 = vld [vmem:[#allocation58_spill] sm:$0xff] }
 0x404   : > { %3010 = vmatpush1.bf16.msra.mxu0 %v4845_v21  ;;  %3074 = vmatpush1.bf16.msra.mxu1 %v4846_v44  ;;  %v4893_v21 = vld [vmem:[#allocation59_spill] sm:$0xff]  ;;  %v4894_v44 = vld [vmem:[#allocation61_spill] sm:$0xff] }
 0x405   : > { %3012 = vmatprep.subr.bf16.mxu0 %v4847_v34  ;;  %3076 = vmatprep.subr.bf16.mxu1 %v4848_v16  ;;  %v4895_v34 = vld [vmem:[#allocation62_spill] sm:$0xff]  ;;  %v4896_v16 = vld [vmem:[#allocation65_spill] sm:$0xff] }
 0x408   : > { %3014 = vmatpush1.bf16.msra.mxu0 %v4849_v54  ;;  %3078 = vmatpush1.bf16.msra.mxu1 %v4850_v39  ;;  %v4897_v54 = vld [vmem:[#allocation66_spill] sm:$0xff]  ;;  %v4898_v39 = vld [vmem:[#allocation68_spill] sm:$0xff] }
 0x409   : > { %3016 = vmatprep.subr.bf16.mxu0 %v4851_v43  ;;  %3080 = vmatprep.subr.bf16.mxu1 %v4852_v50  ;;  %v4900_v43 = vld [vmem:[#allocation73_spill] sm:$0xff] }
 0x40c   : > { %3018 = vmatpush1.bf16.msra.mxu0 %v4853_v51  ;;  %3082 = vmatpush1.bf16.msra.mxu1 %v4854_v52 }
 0x40d   : > { %3020 = vmatprep.subr.bf16.mxu0 %v4855_v0  ;;  %3084 = vmatprep.subr.bf16.mxu1 %v4856_v1  ;;  %v4906_v0 = vld [vmem:[#allocation75_spill] sm:$0xff] }
 0x410   : > { %3022 = vmatpush1.bf16.msra.mxu0 %v4857_v12  ;;  %3086 = vmatpush1.bf16.msra.mxu1 %v4858_v14 }
 0x411   : > { %3024 = vmatprep.subr.bf16.mxu0 %v4859_v15  ;;  %3088 = vmatprep.subr.bf16.mxu1 %v4860_v19 }
 0x414   : > { %3026 = vmatpush1.bf16.msra.mxu0 %v4861_v25  ;;  %3090 = vmatpush1.bf16.msra.mxu1 %v4862_v27 }
 0x415   : > { %3028 = vmatprep.subr.bf16.mxu0 %v4863_v28  ;;  %3092 = vmatprep.subr.bf16.mxu1 %v4864_v32 }
 0x418   : > { %3030 = vmatpush1.bf16.msra.mxu0 %v4865_v38  ;;  %3094 = vmatpush1.bf16.msra.mxu1 %v4866_v40  ;;  %v4907_v38 = vld [vmem:[#allocation27_spill] sm:$0xff] }
 0x419   : > { %3032 = vmatprep.subr.bf16.mxu0 %v4867_v41  ;;  %3096 = vmatprep.subr.bf16.mxu1 %v4868_v46 }
 0x41c   : > { %3034 = vmatpush1.bf16.msra.mxu0 %v4890_v56  ;;  %3098 = vmatpush1.bf16.msra.mxu1 %v4891_v62 }
 0x41d   : > { %3036 = vmatprep.subr.bf16.mxu0 %v4892_v29  ;;  %3100 = vmatprep.subr.bf16.mxu1 %v4893_v21 }
 0x420   : > { %3038 = vmatpush1.bf16.msra.mxu0 %v4812_v33  ;;  %3102 = vmatpush1.bf16.msra.mxu1 %v4894_v44  ;;  %v4899_v33 = vld [vmem:[#allocation71_spill] sm:$0xff] }
 0x421   : > { %3040 = vmatprep.subr.bf16.mxu0 %v4895_v34  ;;  %3104 = vmatprep.subr.bf16.mxu1 %v4876_v5  ;;  %v4901_v5 = vld [vmem:[#allocation74_spill] sm:$0xff] }
 0x424   : > { %3042 = vmatpush1.bf16.msra.mxu0 %v4878_v55  ;;  %3106 = vmatpush1.bf16.msra.mxu1 %v4896_v16  ;;  %v4908_v55 = vld [vmem:[#allocation82_spill] sm:$0xff] }
 0x425   : > { %3044 = vmatprep.subr.bf16.mxu0 %v4897_v54  ;;  %3108 = vmatprep.subr.bf16.mxu1 %v4881_v10 }
 0x428   : > { %3046 = vmatpush1.bf16.msra.mxu0 %v4898_v39  ;;  %3110 = vmatpush1.bf16.msra.mxu1 %v4884_v47 }
 0x429   : > { %3048 = vmatprep.subr.bf16.mxu0 %v4885_v42  ;;  %3112 = vmatprep.subr.bf16.mxu1 %v4899_v33 }
 0x42c   : > { %3050 = vmatpush1.bf16.msra.mxu0 %v4887_v35  ;;  %3114 = vmatpush1.bf16.msra.mxu1 %v4900_v43 }
 0x42d   : > { %3052 = vmatprep.subr.bf16.mxu0 %v4901_v5  ;;  %3116 = vmatprep.subr.bf16.mxu1 %v4829_v22 }
 0x430   : > { %3054 = vmatpush1.bf16.msra.mxu0 %v4830_v4  ;;  %3118 = vmatpush1.bf16.msra.mxu1 %v4831_v3 }
 0x431   : > { %3056 = vmatprep.subr.bf16.mxu0 %v4832_v31  ;;  %3120 = vmatprep.subr.bf16.mxu1 %v4833_v11 }
 0x434   : > { %3058 = vmatpush1.bf16.msra.mxu0 %v4834_v30  ;;  %3122 = vmatpush1.bf16.msra.mxu1 %v4835_v18  ;;  %v4903_v30 = vld [vmem:[#allocation29_spill] sm:$0xff] }
 0x435   : > { %3060 = vmatprep.subr.bf16.mxu0 %v4129_v48  ;;  %3124 = vmatprep.subr.bf16.mxu1 %v4131_v61  ;;  %v4902_v61 = vld [vmem:[#allocation28_spill] sm:$0xff] }
 0x438   : > { %3062 = vmatpush1.bf16.msra.mxu0 %v4135_v49  ;;  %3126 = vmatpush1.bf16.msra.mxu1 %v4137_v37 }
 0x439   : > { %3064 = vmatprep.subr.bf16.mxu0 %v4141_v6  ;;  %3128 = vmatprep.subr.bf16.mxu1 %v4143_v13 }
 0x43c   : > { %3066 = vmatpush1.bf16.msra.mxu0 %v4147_v20  ;;  %3130 = vmatpush1.bf16.msra.mxu1 %v4149_v23  ;;  %v4904_v23 = vld [vmem:[#allocation30_spill] sm:$0xff] }
 0x43d   : > { %3068 = vmatprep.subr.bf16.mxu0 %v4153_v8  ;;  %3132 = vmatprep.subr.bf16.mxu1 %v4155_v36  ;;  %v4905_v8 = vld [vmem:[#allocation31_spill] sm:$0xff] }
 0x440   : > { %3070 = vmatpush1.bf16.msra.mxu0 %v4159_v2  ;;  %3134 = vmatpush1.bf16.msra.mxu1 %v4161_v59 }
 0x494   : > { %v1732_v47 = vpop.f32.mrb[6].mxu0  ;;  %v1803_v48 = vpop.f32.mrb[6].mxu1 }
 0x495   : > { %v3141_v49 = vadd.f32 %v1732_v47, %v4902_v61  ;;  %v1734_v37 = vpop.f32.mrb[7].mxu0  ;;  %v1805_v6 = vpop.f32.mrb[7].mxu1  ;;  %v3149_v11 = vadd.f32 %v1803_v48, %v4904_v23 }
 0x496   : > { %v3142_v13 = vadd.f32 %v1734_v37, %v4903_v30  ;;  %v3150_v36 = vadd.f32 %v1805_v6, %v4905_v8 }
 0x497   : > { %v1954_v4 = vmul.f32 0.5, %v3141_v49 }
 0x498   : > { %v1958_v20 = vmul.f32 0.5, %v3142_v13  ;;  %v1963_v2 = vmul.f32 0.5, %v3150_v36 }
 0x499   : > { %3302 = vtanh.f32 %v1954_v4 }
 0x49a   : > { %3304 = vtanh.f32 %v1958_v20 }
 0x49b   : > { %3306 = vtanh.f32 %v3149_v11 }
 0x49c   : > { %3308 = vtanh.f32 %v1963_v2 }
 0x4a3   : > { %v3303_v31 = vpop.eup %3302 }
 0x4a4   : > { %v3305_v59 = vpop.eup %3304  ;;  %v1956_v22 = vmul.f32 0.5, %v3303_v31 }
 0x4a5   : > { %v1960_v3 = vmul.f32 0.5, %v3305_v59  ;;  %v3307_v50 = vpop.eup %3306 }
 0x4a6   : > { %v1957_v18 = vadd.f32 0.5, %v1956_v22  ;;  %v3309_v14 = vpop.eup %3308 }
 0x4a7   : > { %v1961_v51 = vadd.f32 0.5, %v1960_v3  ;;  %v1965_v15 = vmul.f32 0.5, %v3309_v14 }
 0x4a8   : > { %v1968_v52 = vmul.f32 %v3307_v50, %v1957_v18 }
 0x4a9   : > { %v1967_v1 = vmul.f32 %v1961_v51, %v4906_v0  ;;  %v1966_v19 = vadd.f32 0.5, %v1965_v15 }
 0x4ab   : > { %v1969_v12 = vadd.f32 %v1968_v52, %v1967_v1 }
 0x4ad   : > { %3310 = vtanh.f32 %v1969_v12  ;;  %2155 = vst [vmem:[#allocation4] sm:$0xff] %v1969_v12 }
 0x4b7   : > { %v3311_v25 = vpop.eup %3310 }
 0x4b8   : > { %v1971_v27 = vmul.f32 %v3311_v25, %v1966_v19 }
 0x4ba   : > { %2154 = vst [vmem:[#allocation3] sm:$0xff] %v1971_v27 }
 0x4d6   : > { %v1878_v28 = vpop.f32.mrb[12].mxu0  ;;  %v1949_v32 = vpop.f32.mrb[12].mxu1 }
 0x4d7   : > { %v1879_v40 = vadd.f32 %v1878_v28, %v4907_v38  ;;  %v1880_v41 = vpop.f32.mrb[13].mxu0  ;;  %v1951_v46 = vpop.f32.mrb[13].mxu1  ;;  %v1950_v35 = vadd.f32 %v1949_v32, %v4909_v58 }
 0x4d8   : > { %v1881_v10 = vadd.f32 %v1880_v41, %v4908_v55  ;;  %v1952_v24 = vadd.f32 %v1951_v46, %v4910_v57 }
 0x4d9   : > { %v1972_v42 = vmul.f32 0.5, %v1879_v40 }
 0x4da   : > { %v1976_v53 = vmul.f32 0.5, %v1881_v10  ;;  %v1981_v17 = vmul.f32 0.5, %v1952_v24 }
 0x4db   : > { %3312 = vtanh.f32 %v1972_v42 }
 0x4dc   : > { %3314 = vtanh.f32 %v1976_v53 }
 0x4dd   : > { %3316 = vtanh.f32 %v1950_v35 }
 0x4de   : > { %3318 = vtanh.f32 %v1981_v17 }
 0x4e5   : > { %v3313_v7 = vpop.eup %3312 }
 0x4e6   : > { %v3315_v60 = vpop.eup %3314  ;;  %v1974_v26 = vmul.f32 0.5, %v3313_v7 }
 0x4e7   : > { %v1978_v63 = vmul.f32 0.5, %v3315_v60  ;;  %v3317_v56 = vpop.eup %3316 }
 0x4e8   : > { %v1975_v45 = vadd.f32 0.5, %v1974_v26  ;;  %v3319_v34 = vpop.eup %3318 }
 0x4e9   : > { %v1979_v62 = vadd.f32 0.5, %v1978_v63  ;;  %v1983_v16 = vmul.f32 0.5, %v3319_v34 }
 0x4ea   : > { %v1986_v29 = vmul.f32 %v3317_v56, %v1975_v45 }
 0x4eb   : > { %v1985_v21 = vmul.f32 %v1979_v62, %v4411_v9  ;;  %v1984_v54 = vadd.f32 0.5, %v1983_v16 }
 0x4ed   : > { %v1987_v44 = vadd.f32 %v1986_v29, %v1985_v21 }
 0x4ef   : > { %3320 = vtanh.f32 %v1987_v44 }
 0x4f9   : > { %v3321_v39 = vpop.eup %3320 }
 0x4fa   : > { %v1989_v33 = vmul.f32 %v3321_v39, %v1984_v54 }
 0x4fc   : > { %2294 = vst [vmem:[%s3791_s29 + $0x10] sm:$0xff] %v1989_v33  ;;  %2056 = vmatprep.mubr.f32.mxu0 %v1989_v33  ;;  %2127 = vmatprep.mubr.f32.mxu1 %v1989_v33 }
 0x4fd   : > { %2057 = vmatmul.mubr.f32.vlgmr.msra.gmra.mrb[14].mxu0 %v1971_v27  ;;  %2128 = vmatmul.mubr.f32.vlgmr.msra.gmra.mrb[14].mxu1 %v1971_v27 }
 0x5d0   : > { %v2058_v43 = vpop.f32.mrb[14].mxu0  ;;  %v2129_v5 = vpop.f32.mrb[14].mxu1 }
 0x5d1   : > { %v2059_v47 = vadd.f32 %v2058_v43, %v4907_v38  ;;  %v2060_v48 = vpop.f32.mrb[15].mxu0  ;;  %v2131_v61 = vpop.f32.mrb[15].mxu1  ;;  %v2130_v6 = vadd.f32 %v2129_v5, %v4909_v58 }
 0x5d2   : > { %v2061_v9 = vadd.f32 %v2060_v48, %v4908_v55  ;;  %v2132_v30 = vadd.f32 %v2131_v61, %v4910_v57 }
 0x5d3   : > { %v2134_v49 = vmul.f32 0.5, %v2059_v47 }
 0x5d4   : > { %v2138_v37 = vmul.f32 0.5, %v2061_v9  ;;  %v2143_v13 = vmul.f32 0.5, %v2132_v30 }
 0x5d5   : > { %3322 = vtanh.f32 %v2134_v49 }
 0x5d6   : > { %3324 = vtanh.f32 %v2138_v37 }
 0x5d7   : > { %3326 = vtanh.f32 %v2130_v6 }
 0x5d8   : > { %3328 = vtanh.f32 %v2143_v13 }
 0x5df   : > { %v3323_v4 = vpop.eup %3322 }
 0x5e0   : > { %v3325_v20 = vpop.eup %3324  ;;  %v2136_v23 = vmul.f32 0.5, %v3323_v4 }
 0x5e1   : > { %v2140_v11 = vmul.f32 0.5, %v3325_v20  ;;  %v3327_v36 = vpop.eup %3326 }
 0x5e2   : > { %v2137_v8 = vadd.f32 0.5, %v2136_v23  ;;  %v3329_v3 = vpop.eup %3328 }
 0x5e3   : > { %v2141_v2 = vadd.f32 0.5, %v2140_v11  ;;  %v2145_v18 = vmul.f32 0.5, %v3329_v3 }
 0x5e4   : > { %v2148_v31 = vmul.f32 %v3327_v36, %v2137_v8 }
 0x5e5   : > { %v2147_v59 = vmul.f32 %v2141_v2, %v1987_v44  ;;  %v2146_v50 = vadd.f32 0.5, %v2145_v18 }
 0x5e7   : > { %v2149_v22 = vadd.f32 %v2148_v31, %v2147_v59 }
 0x5e9   : > { %3330 = vtanh.f32 %v2149_v22  ;;  %2157 = vst [vmem:[#allocation6] sm:$0xff] %v2149_v22 }
 0x5f3   : > { %v3331_v51 = vpop.eup %3330 }
 0x5f4   : > { %v2151_v52 = vmul.f32 %v3331_v51, %v2146_v50 }
 0x5f6   : > { %2295 = vst [vmem:[%s3791_s29 + $0x18] sm:$0xff] %v2151_v52  ;;  %2156 = vst [vmem:[#allocation5] sm:$0xff] %v2151_v52 }
 0x5f7   : > { %3459 = shalt.err (!%p3456_p10)
}
 0x5f8   : > { %s3460_s29 = scalar_lea.hbm %s4513_s11, 512  ;;  %s3464_s26 = scalar_lea.hbm %s4566_s6, 1024 }
 0x5f9   : > { %p3461_p3 = scmp.ne.s32.totalorder %s4513_s11, %s3460_s29  ;;  %p3465_p0 = scmp.lt.u32.totalorder %s4513_s11, %s4566_s6 }
 0x5fa   : > { %p3466_p6 = scmp.lt.u32.totalorder %s3464_s26, %s3460_s29  ;;  %p3468_p11 = scmp.lt.u32.totalorder %s3460_s29, %s4513_s11 }
 0x5fb   : > { %p3462_p12 = pnand %p3461_p3, %p3725_p5 }
 0x5fc   : > { %p3467_p8 = por %p3466_p6, %p3465_p0 }
 0x5fd   : > { %p3463_p9 = pneg %p3462_p12 }
 0x5fe   : > { %p3469_p7 = por %p3468_p11, %p3467_p8 }
 0x600   : > { %p3470_p13 = pnand %p3469_p7, %p3463_p9 }
 0x602   : > { %3473 = shalt.err (!%p3470_p13)
}
 0x603   : > { %s3533_s20 = smov 128   ;;  %s3534_s8 = smov 8  }
 0x604   : > { %3181 = dma.vmem_to_hbm [thread:$0]  (%p3725_p5), %s4515_s9, 512, %s4513_s11, %s2159_s13, %s3533_s20, %s3533_s20, %s3534_s8  }
 0x605 PF: > { %s2187_s12 = sand.u32 1, %s3508_s21   ;;  %p4911_p1 = scmp.ne.s32.totalorder %s4702_s28, 0 }
 0x606   : > { %p4912_p2 = scmp.ge.s32.totalorder %s3520_s24, 2  ;;  %s2188_s25 = scalar_lea.sflag [#allocation9], %s2187_s12 }
 0x608   : > { %p3198_p4 = pnand %p4912_p2, %p4911_p1 }
 0x60a   : > { %3503 = dma.done.wait (!%p3198_p4), %s2188_s25, 512  }
 0x60b   : > { %3505 = vsyncadd (!%p3198_p4), %s2188_s25, 4294966784  ;;  %p21_p10 = scmp.ge.s32.totalorder %s3711_s18, 4   ;;  %s4913_s21 = smov %s3512_s22 }
 0x60c   : > { %s4914_s22 = smov %s3516_s23  ;;  %s4915_s23 = smov %s3721_s14 }
 0x60d   : > { %s4916_s24 = smov %s3711_s18  ;;  %23 = sbr.rel (!%p21_p10) target bundleno = 7 (0x7), region = 111 }
 0x614   :  { %2193 = vsyncpa [#allocation8], 1 }
 0x615   :  { %2195 = vsyncpa [#allocation8 + $0x1], 1 }
 0x616   :  { %2196 = vsyncpa [#allocation11], 1 }
 0x617   :  { %2197 = vsyncpa [#allocation14], 1 }
 0x618   :  { %2198 = vsyncpa [#allocation9], 1 }
 0x619   :  { %2200 = vsyncpa [#allocation9 + $0x1], 1 }

</bundles_post_ra>
